<compile_context>
chip_gen: v6e
topology: v6e:2x2x1
jax: 0.10.0
libtpu: 0.0.40
codegen_flags: <defaults>
</compile_context>

<pallas_src>
import functools

import numpy as np
import jax
import jax.numpy as jnp
from jax.experimental import pallas as pl
from jax.experimental.pallas import tpu as pltpu

NEG_SLOPE = 0.01      # nn.LeakyReLU default
BN_EPS = 1e-5         # nn.BatchNorm2d default
CPAD = 128            # lane-dense padded output-channel count (all layers <= 64)
TM_MAX = 1024         # max rows per M tile (sweet spot per pipelining data)
_VMEM = pltpu.MemorySpace.VMEM


def _round_up(x, m):
    return ((x + m - 1) // m) * m


def _choose_tm(m):
    # Row tile: big enough to amortize per-step overhead, multiple of 16 so
    # bf16 (16,128) native tiles are respected, capped for VMEM headroom.
    if m >= TM_MAX:
        return TM_MAX
    return _round_up(max(m, 16), 16)


# ----------------------------------------------------------------------------
# Kernel 1: im2col-matmul (bf16 -> f32 acc) + bias + LeakyReLU + partial BN stats
# ----------------------------------------------------------------------------
def _conv_bias_lrelu_kernel(p_ref, w_ref, b_ref, y_ref, s_ref, *, tm, m_valid):
    # p_ref: (tm, Kpad) bf16 im2col rows;  w_ref: (Kpad, CPAD) bf16;
    # b_ref: (1, CPAD) f32;  y_ref: (tm, CPAD) f32;  s_ref: (1, 2, CPAD) f32.
    acc = jnp.dot(p_ref[...], w_ref[...], preferred_element_type=jnp.float32)
    acc = acc + b_ref[...]
    acc = jnp.where(acc >= 0, acc, NEG_SLOPE * acc)            # LeakyReLU
    y_ref[...] = acc
    # Row-masked per-channel partial sums for exact training-mode BatchNorm
    # under M tiling (padded rows excluded).
    row = pl.program_id(0) * tm + jax.lax.broadcasted_iota(jnp.int32, (tm, 1), 0)
    valid = (row < m_valid).astype(jnp.float32)
    av = acc * valid
    s1 = jnp.sum(av, axis=0, keepdims=True)                    # sum(x)
    s2 = jnp.sum(av * acc, axis=0, keepdims=True)              # sum(x^2)
    s_ref[...] = jnp.concatenate([s1, s2], axis=0)[None]


def conv_bias_lrelu(patches, w_mat, bias, *, m_valid, tm):
    mpad, kpad = patches.shape
    num_tiles = mpad // tm
    kernel = functools.partial(_conv_bias_lrelu_kernel, tm=tm, m_valid=m_valid)
    # VMEM: double-buffered patches/weights (bf16) + outputs (f32) + stats.
    vmem_need = (2 * tm * kpad * 2 + 2 * kpad * CPAD * 2 + 2 * CPAD * 4
                 + 2 * tm * CPAD * 4 + 2 * 2 * CPAD * 4)
    vmem_limit = int(min(48 * 2**20, max(32 * 2**20, 2 * vmem_need)))
    flops = 2 * mpad * kpad * CPAD
    bytes_accessed = (mpad * kpad * 2 + kpad * CPAD * 2 + CPAD * 4
                      + mpad * CPAD * 4 + num_tiles * 2 * CPAD * 4)
    y, stats = pl.pallas_call(
        kernel,
        out_shape=(jax.ShapeDtypeStruct((mpad, CPAD), jnp.float32),
                   jax.ShapeDtypeStruct((num_tiles, 2, CPAD), jnp.float32)),
        grid=(num_tiles,),
        in_specs=[
            pl.BlockSpec((tm, kpad), lambda i: (i, 0), memory_space=_VMEM),
            pl.BlockSpec((kpad, CPAD), lambda i: (0, 0), memory_space=_VMEM),
            pl.BlockSpec((1, CPAD), lambda i: (0, 0), memory_space=_VMEM),
        ],
        out_specs=(
            pl.BlockSpec((tm, CPAD), lambda i: (i, 0), memory_space=_VMEM),
            pl.BlockSpec((1, 2, CPAD), lambda i: (i, 0, 0), memory_space=_VMEM),
        ),
        compiler_params=pltpu.CompilerParams(
            dimension_semantics=("parallel",),
            vmem_limit_bytes=vmem_limit),
        cost_estimate=pl.CostEstimate(flops=flops, transcendentals=0,
                                      bytes_accessed=bytes_accessed),
    )(patches, w_mat, bias)
    return y, stats


# ----------------------------------------------------------------------------
# Kernel 2: folded BatchNorm affine (x*scale + shift) + optional LeakyReLU
# ----------------------------------------------------------------------------
def _bn_affine_kernel(y_ref, scale_ref, shift_ref, o_ref, *, post_lrelu):
    out = y_ref[...] * scale_ref[...] + shift_ref[...]
    if post_lrelu:
        out = jnp.where(out >= 0, out, NEG_SLOPE * out)
    o_ref[...] = out


def bn_affine_apply(y, scale, shift, *, post_lrelu, tm):
    mpad, cpad = y.shape
    num_tiles = mpad // tm
    kernel = functools.partial(_bn_affine_kernel, post_lrelu=post_lrelu)
    vmem_need = 2 * 2 * tm * cpad * 4 + 2 * 2 * cpad * 4
    vmem_limit = int(min(48 * 2**20, max(32 * 2**20, 2 * vmem_need)))
    return pl.pallas_call(
        kernel,
        out_shape=jax.ShapeDtypeStruct((mpad, cpad), jnp.float32),
        grid=(num_tiles,),
        in_specs=[
            pl.BlockSpec((tm, cpad), lambda i: (i, 0), memory_space=_VMEM),
            pl.BlockSpec((1, cpad), lambda i: (0, 0), memory_space=_VMEM),
            pl.BlockSpec((1, cpad), lambda i: (0, 0), memory_space=_VMEM),
        ],
        out_specs=pl.BlockSpec((tm, cpad), lambda i: (i, 0), memory_space=_VMEM),
        compiler_params=pltpu.CompilerParams(
            dimension_semantics=("parallel",),
            vmem_limit_bytes=vmem_limit),
        cost_estimate=pl.CostEstimate(
            flops=2 * mpad * cpad, transcendentals=0,
            bytes_accessed=2 * mpad * cpad * 4 + 2 * 2 * cpad * 4),
    )(y, scale, shift)


# ----------------------------------------------------------------------------
# JAX glue: im2col (bf16, halves patch HBM traffic) and bilinear 2x upsample
# ----------------------------------------------------------------------------
def im2col_3x3(x_nhwc, stride):
    """3x3, pad=1 im2col -> (M, Cin*9) bf16; (kh,kw) fastest within each cin,
    matching the weight reshape in init_params."""
    N, H, W, C = x_nhwc.shape
    xp = jnp.pad(x_nhwc, ((0, 0), (1, 1), (1, 1), (0, 0)))
    Ho = (H + 2 - 3) // stride + 1
    Wo = (W + 2 - 3) // stride + 1
    cols = []
    for kh in range(3):
        for kw in range(3):
            sl = xp[:, kh:kh + (Ho - 1) * stride + 1:stride,
                       kw:kw + (Wo - 1) * stride + 1:stride, :]
            cols.append(sl)                              # (N, Ho, Wo, C)
    patches = jnp.stack(cols, axis=3)                    # (N, Ho, Wo, 9, C)
    patches = jnp.transpose(patches, (0, 1, 2, 4, 3))    # (N, Ho, Wo, C, 9)
    M = N * Ho * Wo
    K = C * 9
    return patches.reshape(M, K).astype(jnp.bfloat16), (N, Ho, Wo, M, K)


def _upsample_matrix(h_in):
    # nn.Upsample(scale_factor=2, mode='bilinear'), align_corners=False.
    h_out = 2 * h_in
    U = np.zeros((h_out, h_in), dtype=np.float32)
    for i in range(h_out):
        src = max(0.0, (i + 0.5) / 2.0 - 0.5)
        i0 = min(int(np.floor(src)), h_in - 1)
        i1 = min(i0 + 1, h_in - 1)
        w1 = src - i0
        U[i, i0] += 1.0 - w1
        U[i, i1] += w1
    return jnp.asarray(U)


def upsample2x(x_nhwc):
    # Separable bilinear 2x as two small dense matmuls (stays on the MXU).
    N, H, W, C = x_nhwc.shape
    Uh = _upsample_matrix(H)                              # (2H, H)
    Uw = _upsample_matrix(W)                              # (2W, W)
    x = jnp.tensordot(Uh, x_nhwc, axes=[[1], [1]])        # (2H, N, W, C)
    x = jnp.tensordot(Uw, x, axes=[[1], [2]])             # (2W, 2H, N, C)
    return jnp.transpose(x, (2, 1, 0, 3))                 # (N, 2H, 2W, C)


# ----------------------------------------------------------------------------
# Model
# ----------------------------------------------------------------------------
_LAYER_SPECS = {
    'enc1': (1, 16), 'enc2': (16, 32), 'enc3': (32, 64),
    'dec1': (64, 32), 'dec2': (32, 16), 'dec3': (16, 1),
}


def init_params(key):
    params = {}
    for name, (cin, cout) in _LAYER_SPECS.items():
        key, k1, k2, k3, k4 = jax.random.split(key, 5)
        w = jax.random.normal(k1, (cout, cin, 3, 3), jnp.float32) / np.sqrt(cin * 9)
        b = 0.05 * jax.random.normal(k2, (cout,), jnp.float32)
        gamma = 1.0 + 0.1 * jax.random.normal(k3, (cout,), jnp.float32)
        beta = 0.1 * jax.random.normal(k4, (cout,), jnp.float32)
        K = cin * 9
        Kpad = _round_up(K, 128)
        # (Cout, Cin, 3, 3) -> (Cin*9, Cout), zero-padded to lane-dense
        # (Kpad, CPAD); MXU operand stored as bf16.
        w_mat = jnp.transpose(w.reshape(cout, K))
        w_mat = jnp.pad(w_mat, ((0, Kpad - K), (0, CPAD - cout))).astype(jnp.bfloat16)
        params[name] = {
            'w': w_mat,
            'b': jnp.pad(b, (0, CPAD - cout)).reshape(1, CPAD),
            'gamma': jnp.pad(gamma, (0, CPAD - cout)).reshape(1, CPAD),
            'beta': jnp.pad(beta, (0, CPAD - cout)).reshape(1, CPAD),
        }
    return params


def _conv_block(x_nhwc, params, name, *, stride, do_bn, post_lrelu):
    _, cout = _LAYER_SPECS[name]
    p = params[name]
    patches, (N, Ho, Wo, M, K) = im2col_3x3(x_nhwc, stride)
    Kpad = _round_up(K, 128)
    tm = _choose_tm(M)
    Mpad = _round_up(M, tm)
    patches = jnp.pad(patches, ((0, Mpad - M), (0, Kpad - K)))
    y, stats = conv_bias_lrelu(patches, p['w'], p['b'], m_valid=M, tm=tm)
    if do_bn:
        # Combine per-tile partial sums -> exact batch statistics over (N,H,W),
        # then fold BN into a single per-channel affine applied by kernel 2.
        s = jnp.sum(stats, axis=0)                                # (2, CPAD)
        mean = s[0] / M
        var = jnp.maximum(s[1] / M - mean * mean, 0.0)            # biased var
        scale = p['gamma'] * jax.lax.rsqrt(var + BN_EPS)          # (1, CPAD)
        shift = p['beta'] - mean * scale
        y = bn_affine_apply(y, scale, shift, post_lrelu=post_lrelu, tm=tm)
    return y[:M, :cout].reshape(N, Ho, Wo, cout)


@jax.jit
def encdec_forward(x_nchw, params):
    x = jnp.transpose(x_nchw, (0, 2, 3, 1))    # NCHW -> NHWC
    # encoder: Conv(s=2) + LeakyReLU + BN   (enc3 has an extra LeakyReLU)
    x = _conv_block(x, params, 'enc1', stride=2, do_bn=True, post_lrelu=False)
    x = _conv_block(x, params, 'enc2', stride=2, do_bn=True, post_lrelu=False)
    x = _conv_block(x, params, 'enc3', stride=2, do_bn=True, post_lrelu=True)
    # decoder: Upsample(x2 bilinear) + Conv(s=1) + LeakyReLU (+ BN)
    x = upsample2x(x)
    x = _conv_block(x, params, 'dec1', stride=1, do_bn=True, post_lrelu=False)
    x = upsample2x(x)
    x = _conv_block(x, params, 'dec2', stride=1, do_bn=True, post_lrelu=False)
    x = upsample2x(x)
    x = _conv_block(x, params, 'dec3', stride=1, do_bn=False, post_lrelu=False)
    return jnp.transpose(x, (0, 3, 1, 2))      # NHWC -> NCHW


if __name__ == "__main__":
    key = jax.random.PRNGKey(0)
    kx, kp = jax.random.split(key)
    x = jax.random.normal(kx, (2, 1, 16, 16), jnp.float32)  # NCHW, like PyTorch
    params = init_params(kp)

    out = encdec_forward(x, params)
    out = jax.block_until_ready(out)
    assert out.shape == (2, 1, 16, 16), out.shape
    assert bool(jnp.all(jnp.isfinite(out)))
    print("KERNEL_OK")
</pallas_src>

<mosaic_0001>
module attributes {stable_mosaic.version = 11 : i64} {
  func.func @_conv_bias_lrelu_kernel(%arg0: i32, %arg1: memref<128x128xbf16, #tpu.memory_space<vmem>>, %arg2: memref<128x128xbf16, #tpu.memory_space<vmem>>, %arg3: memref<1x128xf32, #tpu.memory_space<vmem>>, %arg4: memref<128x128xf32, #tpu.memory_space<vmem>>, %arg5: memref<1x2x128xf32, #tpu.memory_space<vmem>>) attributes {dimension_semantics = [#tpu.dimension_semantics<parallel>], iteration_bounds = array<i64: 1>, scalar_prefetch = 0 : i64, scratch_operands = 0 : i64, tpu.core_type = #tpu.core_type<tc>, window_params = [{transform_indices = @transform_0, window_bounds = array<i64: 128, 128>}, {pipeline_mode = #tpu.pipeline_mode<synchronous>, transform_indices = @transform_1, window_bounds = array<i64: 128, 128>}, {pipeline_mode = #tpu.pipeline_mode<synchronous>, transform_indices = @transform_2, window_bounds = array<i64: 1, 128>}, {transform_indices = @transform_3, window_bounds = array<i64: 128, 128>}, {transform_indices = @transform_4, window_bounds = array<i64: 1, 2, 128>}]} {
    %c0 = arith.constant 0 : index
    %c0_0 = arith.constant 0 : index
    %0 = vector.load %arg1[%c0, %c0_0] : memref<128x128xbf16, #tpu.memory_space<vmem>>, vector<128x128xbf16>
    %c0_1 = arith.constant 0 : index
    %c0_2 = arith.constant 0 : index
    %1 = vector.load %arg2[%c0_1, %c0_2] : memref<128x128xbf16, #tpu.memory_space<vmem>>, vector<128x128xbf16>
    %cst = arith.constant dense<0.000000e+00> : vector<128x128xf32>
    %2 = tpu.matmul %0, %1, %cst {dimension_numbers = #tpu.dot_dimension_numbers<[1], [0], [0], [1], [0, 0, 1, 1], [], []>} : vector<128x128xbf16>, vector<128x128xbf16>, vector<128x128xf32> -> vector<128x128xf32>
    %c0_3 = arith.constant 0 : index
    %c0_4 = arith.constant 0 : index
    %3 = vector.load %arg3[%c0_3, %c0_4] : memref<1x128xf32, #tpu.memory_space<vmem>>, vector<1x128xf32>
    %4 = vector.broadcast %3 : vector<1x128xf32> to vector<128x128xf32>
    %5 = arith.addf %2, %4 : vector<128x128xf32>
    %cst_5 = arith.constant 0.000000e+00 : f32
    %6 = vector.broadcast %cst_5 : f32 to vector<128x128xf32>
    %7 = arith.cmpf oge, %5, %6 : vector<128x128xf32>
    %cst_6 = arith.constant 0.00999999977 : f32
    %8 = vector.broadcast %cst_6 : f32 to vector<128x128xf32>
    %9 = arith.mulf %8, %5 : vector<128x128xf32>
    %10 = arith.select %7, %5, %9 : vector<128x128xi1>, vector<128x128xf32>
    %c0_7 = arith.constant 0 : index
    %c0_8 = arith.constant 0 : index
    %11 = vector.load %arg4[%c0_7, %c0_8] : memref<128x128xf32, #tpu.memory_space<vmem>>, vector<128x128xf32>
    tpu.vector_store %arg4[%c0_7, %c0_8], %10 {strides = array<i32>} : memref<128x128xf32, #tpu.memory_space<vmem>>, vector<128x128xf32>,
    %c128_i32 = arith.constant 128 : i32
    %12 = arith.muli %arg0, %c128_i32 : i32
    %13 = tpu.iota {dimensions = array<i32: 0>} : vector<128x1xi32>
    %14 = vector.broadcast %12 : i32 to vector<128x1xi32>
    %15 = arith.addi %14, %13 : vector<128x1xi32>
    %c128_i32_9 = arith.constant 128 : i32
    %16 = vector.broadcast %c128_i32_9 : i32 to vector<128x1xi32>
    %17 = arith.cmpi slt, %15, %16 : vector<128x1xi32>
    %18 = arith.extui %17 : vector<128x1xi1> to vector<128x1xi32>
    %19 = arith.sitofp %18 : vector<128x1xi32> to vector<128x1xf32>
    %20 = vector.broadcast %19 : vector<128x1xf32> to vector<128x128xf32>
    %21 = arith.mulf %10, %20 : vector<128x128xf32>
    %cst_10 = arith.constant dense<0.000000e+00> : vector<128xf32>
    %22 = vector.multi_reduction <add>, %21, %cst_10 [0] : vector<128x128xf32> to vector<128xf32>
    %23 = vector.shape_cast %22 : vector<128xf32> to vector<1x128xf32>
    %24 = arith.mulf %21, %10 : vector<128x128xf32>
    %cst_11 = arith.constant dense<0.000000e+00> : vector<128xf32>
    %25 = vector.multi_reduction <add>, %24, %cst_11 [0] : vector<128x128xf32> to vector<128xf32>
    %26 = vector.shape_cast %25 : vector<128xf32> to vector<1x128xf32>
    %27 = tpu.concatenate %23, %26 in 0 : vector<1x128xf32>, vector<1x128xf32> -> vector<2x128xf32>
    %28 = vector.shape_cast %27 : vector<2x128xf32> to vector<1x2x128xf32>
    %c0_12 = arith.constant 0 : index
    %c0_13 = arith.constant 0 : index
    %c0_14 = arith.constant 0 : index
    %29 = vector.load %arg5[%c0_12, %c0_13, %c0_14] : memref<1x2x128xf32, #tpu.memory_space<vmem>>, vector<1x2x128xf32>
    tpu.vector_store %arg5[%c0_12, %c0_13, %c0_14], %28 {strides = array<i32>} : memref<1x2x128xf32, #tpu.memory_space<vmem>>, vector<1x2x128xf32>,
    return
  }
  func.func @transform_0(%arg0: i32) -> (i32, i32) {
    %c0_i32 = arith.constant 0 : i32
    %c0_i32_0 = arith.constant 0 : i32
    return %arg0, %c0_i32 : i32, i32
  }
  func.func @transform_1(%arg0: i32) -> (i32, i32) {
    %c0_i32 = arith.constant 0 : i32
    %c0_i32_0 = arith.constant 0 : i32
    %c0_i32_1 = arith.constant 0 : i32
    return %c0_i32, %c0_i32_0 : i32, i32
  }
  func.func @transform_2(%arg0: i32) -> (i32, i32) {
    %c0_i32 = arith.constant 0 : i32
    %c0_i32_0 = arith.constant 0 : i32
    %c0_i32_1 = arith.constant 0 : i32
    return %c0_i32, %c0_i32_0 : i32, i32
  }
  func.func @transform_3(%arg0: i32) -> (i32, i32) {
    %c0_i32 = arith.constant 0 : i32
    %c0_i32_0 = arith.constant 0 : i32
    return %arg0, %c0_i32 : i32, i32
  }
  func.func @transform_4(%arg0: i32) -> (i32, i32, i32) {
    %c0_i32 = arith.constant 0 : i32
    %c0_i32_0 = arith.constant 0 : i32
    %c0_i32_1 = arith.constant 0 : i32
    return %arg0, %c0_i32, %c0_i32_0 : i32, i32, i32
  }
}

module attributes {stable_mosaic.version = 11 : i64} {
  func.func @_bn_affine_kernel(%arg0: i32, %arg1: memref<128x128xf32, #tpu.memory_space<vmem>>, %arg2: memref<1x128xf32, #tpu.memory_space<vmem>>, %arg3: memref<1x128xf32, #tpu.memory_space<vmem>>, %arg4: memref<128x128xf32, #tpu.memory_space<vmem>>) attributes {dimension_semantics = [#tpu.dimension_semantics<parallel>], iteration_bounds = array<i64: 1>, scalar_prefetch = 0 : i64, scratch_operands = 0 : i64, tpu.core_type = #tpu.core_type<tc>, window_params = [{transform_indices = @transform_0, window_bounds = array<i64: 128, 128>}, {pipeline_mode = #tpu.pipeline_mode<synchronous>, transform_indices = @transform_1, window_bounds = array<i64: 1, 128>}, {pipeline_mode = #tpu.pipeline_mode<synchronous>, transform_indices = @transform_2, window_bounds = array<i64: 1, 128>}, {transform_indices = @transform_3, window_bounds = array<i64: 128, 128>}]} {
    %c0 = arith.constant 0 : index
    %c0_0 = arith.constant 0 : index
    %0 = vector.load %arg1[%c0, %c0_0] : memref<128x128xf32, #tpu.memory_space<vmem>>, vector<128x128xf32>
    %c0_1 = arith.constant 0 : index
    %c0_2 = arith.constant 0 : index
    %1 = vector.load %arg2[%c0_1, %c0_2] : memref<1x128xf32, #tpu.memory_space<vmem>>, vector<1x128xf32>
    %2 = vector.broadcast %1 : vector<1x128xf32> to vector<128x128xf32>
    %3 = arith.mulf %0, %2 : vector<128x128xf32>
    %c0_3 = arith.constant 0 : index
    %c0_4 = arith.constant 0 : index
    %4 = vector.load %arg3[%c0_3, %c0_4] : memref<1x128xf32, #tpu.memory_space<vmem>>, vector<1x128xf32>
    %5 = vector.broadcast %4 : vector<1x128xf32> to vector<128x128xf32>
    %6 = arith.addf %3, %5 : vector<128x128xf32>
    %c0_5 = arith.constant 0 : index
    %c0_6 = arith.constant 0 : index
    %7 = vector.load %arg4[%c0_5, %c0_6] : memref<128x128xf32, #tpu.memory_space<vmem>>, vector<128x128xf32>
    tpu.vector_store %arg4[%c0_5, %c0_6], %6 {strides = array<i32>} : memref<128x128xf32, #tpu.memory_space<vmem>>, vector<128x128xf32>,
    return
  }
  func.func @transform_0(%arg0: i32) -> (i32, i32) {
    %c0_i32 = arith.constant 0 : i32
    %c0_i32_0 = arith.constant 0 : i32
    return %arg0, %c0_i32 : i32, i32
  }
  func.func @transform_1(%arg0: i32) -> (i32, i32) {
    %c0_i32 = arith.constant 0 : i32
    %c0_i32_0 = arith.constant 0 : i32
    %c0_i32_1 = arith.constant 0 : i32
    return %c0_i32, %c0_i32_0 : i32, i32
  }
  func.func @transform_2(%arg0: i32) -> (i32, i32) {
    %c0_i32 = arith.constant 0 : i32
    %c0_i32_0 = arith.constant 0 : i32
    %c0_i32_1 = arith.constant 0 : i32
    return %c0_i32, %c0_i32_0 : i32, i32
  }
  func.func @transform_3(%arg0: i32) -> (i32, i32) {
    %c0_i32 = arith.constant 0 : i32
    %c0_i32_0 = arith.constant 0 : i32
    return %arg0, %c0_i32 : i32, i32
  }
}

module attributes {stable_mosaic.version = 11 : i64} {
  func.func @_conv_bias_lrelu_kernel(%arg0: i32, %arg1: memref<32x256xbf16, #tpu.memory_space<vmem>>, %arg2: memref<256x128xbf16, #tpu.memory_space<vmem>>, %arg3: memref<1x128xf32, #tpu.memory_space<vmem>>, %arg4: memref<32x128xf32, #tpu.memory_space<vmem>>, %arg5: memref<1x2x128xf32, #tpu.memory_space<vmem>>) attributes {dimension_semantics = [#tpu.dimension_semantics<parallel>], iteration_bounds = array<i64: 1>, scalar_prefetch = 0 : i64, scratch_operands = 0 : i64, tpu.core_type = #tpu.core_type<tc>, window_params = [{transform_indices = @transform_0, window_bounds = array<i64: 32, 256>}, {pipeline_mode = #tpu.pipeline_mode<synchronous>, transform_indices = @transform_1, window_bounds = array<i64: 256, 128>}, {pipeline_mode = #tpu.pipeline_mode<synchronous>, transform_indices = @transform_2, window_bounds = array<i64: 1, 128>}, {transform_indices = @transform_3, window_bounds = array<i64: 32, 128>}, {transform_indices = @transform_4, window_bounds = array<i64: 1, 2, 128>}]} {
    %c0 = arith.constant 0 : index
    %c0_0 = arith.constant 0 : index
    %0 = vector.load %arg1[%c0, %c0_0] : memref<32x256xbf16, #tpu.memory_space<vmem>>, vector<32x256xbf16>
    %c0_1 = arith.constant 0 : index
    %c0_2 = arith.constant 0 : index
    %1 = vector.load %arg2[%c0_1, %c0_2] : memref<256x128xbf16, #tpu.memory_space<vmem>>, vector<256x128xbf16>
    %cst = arith.constant dense<0.000000e+00> : vector<32x128xf32>
    %2 = tpu.matmul %0, %1, %cst {dimension_numbers = #tpu.dot_dimension_numbers<[1], [0], [0], [1], [0, 0, 1, 1], [], []>} : vector<32x256xbf16>, vector<256x128xbf16>, vector<32x128xf32> -> vector<32x128xf32>
    %c0_3 = arith.constant 0 : index
    %c0_4 = arith.constant 0 : index
    %3 = vector.load %arg3[%c0_3, %c0_4] : memref<1x128xf32, #tpu.memory_space<vmem>>, vector<1x128xf32>
    %4 = vector.broadcast %3 : vector<1x128xf32> to vector<32x128xf32>
    %5 = arith.addf %2, %4 : vector<32x128xf32>
    %cst_5 = arith.constant 0.000000e+00 : f32
    %6 = vector.broadcast %cst_5 : f32 to vector<32x128xf32>
    %7 = arith.cmpf oge, %5, %6 : vector<32x128xf32>
    %cst_6 = arith.constant 0.00999999977 : f32
    %8 = vector.broadcast %cst_6 : f32 to vector<32x128xf32>
    %9 = arith.mulf %8, %5 : vector<32x128xf32>
    %10 = arith.select %7, %5, %9 : vector<32x128xi1>, vector<32x128xf32>
    %c0_7 = arith.constant 0 : index
    %c0_8 = arith.constant 0 : index
    %11 = vector.load %arg4[%c0_7, %c0_8] : memref<32x128xf32, #tpu.memory_space<vmem>>, vector<32x128xf32>
    tpu.vector_store %arg4[%c0_7, %c0_8], %10 {strides = array<i32>} : memref<32x128xf32, #tpu.memory_space<vmem>>, vector<32x128xf32>,
    %c32_i32 = arith.constant 32 : i32
    %12 = arith.muli %arg0, %c32_i32 : i32
    %13 = tpu.iota {dimensions = array<i32: 0>} : vector<32x1xi32>
    %14 = vector.broadcast %12 : i32 to vector<32x1xi32>
    %15 = arith.addi %14, %13 : vector<32x1xi32>
    %c32_i32_9 = arith.constant 32 : i32
    %16 = vector.broadcast %c32_i32_9 : i32 to vector<32x1xi32>
    %17 = arith.cmpi slt, %15, %16 : vector<32x1xi32>
    %18 = arith.extui %17 : vector<32x1xi1> to vector<32x1xi32>
    %19 = arith.sitofp %18 : vector<32x1xi32> to vector<32x1xf32>
    %20 = vector.broadcast %19 : vector<32x1xf32> to vector<32x128xf32>
    %21 = arith.mulf %10, %20 : vector<32x128xf32>
    %cst_10 = arith.constant dense<0.000000e+00> : vector<128xf32>
    %22 = vector.multi_reduction <add>, %21, %cst_10 [0] : vector<32x128xf32> to vector<128xf32>
    %23 = vector.shape_cast %22 : vector<128xf32> to vector<1x128xf32>
    %24 = arith.mulf %21, %10 : vector<32x128xf32>
    %cst_11 = arith.constant dense<0.000000e+00> : vector<128xf32>
    %25 = vector.multi_reduction <add>, %24, %cst_11 [0] : vector<32x128xf32> to vector<128xf32>
    %26 = vector.shape_cast %25 : vector<128xf32> to vector<1x128xf32>
    %27 = tpu.concatenate %23, %26 in 0 : vector<1x128xf32>, vector<1x128xf32> -> vector<2x128xf32>
    %28 = vector.shape_cast %27 : vector<2x128xf32> to vector<1x2x128xf32>
    %c0_12 = arith.constant 0 : index
    %c0_13 = arith.constant 0 : index
    %c0_14 = arith.constant 0 : index
    %29 = vector.load %arg5[%c0_12, %c0_13, %c0_14] : memref<1x2x128xf32, #tpu.memory_space<vmem>>, vector<1x2x128xf32>
    tpu.vector_store %arg5[%c0_12, %c0_13, %c0_14], %28 {strides = array<i32>} : memref<1x2x128xf32, #tpu.memory_space<vmem>>, vector<1x2x128xf32>,
    return
  }
  func.func @transform_0(%arg0: i32) -> (i32, i32) {
    %c0_i32 = arith.constant 0 : i32
    %c0_i32_0 = arith.constant 0 : i32
    return %arg0, %c0_i32 : i32, i32
  }
  func.func @transform_1(%arg0: i32) -> (i32, i32) {
    %c0_i32 = arith.constant 0 : i32
    %c0_i32_0 = arith.constant 0 : i32
    %c0_i32_1 = arith.constant 0 : i32
    return %c0_i32, %c0_i32_0 : i32, i32
  }
  func.func @transform_2(%arg0: i32) -> (i32, i32) {
    %c0_i32 = arith.constant 0 : i32
    %c0_i32_0 = arith.constant 0 : i32
    %c0_i32_1 = arith.constant 0 : i32
    return %c0_i32, %c0_i32_0 : i32, i32
  }
  func.func @transform_3(%arg0: i32) -> (i32, i32) {
    %c0_i32 = arith.constant 0 : i32
    %c0_i32_0 = arith.constant 0 : i32
    return %arg0, %c0_i32 : i32, i32
  }
  func.func @transform_4(%arg0: i32) -> (i32, i32, i32) {
    %c0_i32 = arith.constant 0 : i32
    %c0_i32_0 = arith.constant 0 : i32
    %c0_i32_1 = arith.constant 0 : i32
    return %arg0, %c0_i32, %c0_i32_0 : i32, i32, i32
  }
}

module attributes {stable_mosaic.version = 11 : i64} {
  func.func @_bn_affine_kernel(%arg0: i32, %arg1: memref<32x128xf32, #tpu.memory_space<vmem>>, %arg2: memref<1x128xf32, #tpu.memory_space<vmem>>, %arg3: memref<1x128xf32, #tpu.memory_space<vmem>>, %arg4: memref<32x128xf32, #tpu.memory_space<vmem>>) attributes {dimension_semantics = [#tpu.dimension_semantics<parallel>], iteration_bounds = array<i64: 1>, scalar_prefetch = 0 : i64, scratch_operands = 0 : i64, tpu.core_type = #tpu.core_type<tc>, window_params = [{transform_indices = @transform_0, window_bounds = array<i64: 32, 128>}, {pipeline_mode = #tpu.pipeline_mode<synchronous>, transform_indices = @transform_1, window_bounds = array<i64: 1, 128>}, {pipeline_mode = #tpu.pipeline_mode<synchronous>, transform_indices = @transform_2, window_bounds = array<i64: 1, 128>}, {transform_indices = @transform_3, window_bounds = array<i64: 32, 128>}]} {
    %c0 = arith.constant 0 : index
    %c0_0 = arith.constant 0 : index
    %0 = vector.load %arg1[%c0, %c0_0] : memref<32x128xf32, #tpu.memory_space<vmem>>, vector<32x128xf32>
    %c0_1 = arith.constant 0 : index
    %c0_2 = arith.constant 0 : index
    %1 = vector.load %arg2[%c0_1, %c0_2] : memref<1x128xf32, #tpu.memory_space<vmem>>, vector<1x128xf32>
    %2 = vector.broadcast %1 : vector<1x128xf32> to vector<32x128xf32>
    %3 = arith.mulf %0, %2 : vector<32x128xf32>
    %c0_3 = arith.constant 0 : index
    %c0_4 = arith.constant 0 : index
    %4 = vector.load %arg3[%c0_3, %c0_4] : memref<1x128xf32, #tpu.memory_space<vmem>>, vector<1x128xf32>
    %5 = vector.broadcast %4 : vector<1x128xf32> to vector<32x128xf32>
    %6 = arith.addf %3, %5 : vector<32x128xf32>
    %c0_5 = arith.constant 0 : index
    %c0_6 = arith.constant 0 : index
    %7 = vector.load %arg4[%c0_5, %c0_6] : memref<32x128xf32, #tpu.memory_space<vmem>>, vector<32x128xf32>
    tpu.vector_store %arg4[%c0_5, %c0_6], %6 {strides = array<i32>} : memref<32x128xf32, #tpu.memory_space<vmem>>, vector<32x128xf32>,
    return
  }
  func.func @transform_0(%arg0: i32) -> (i32, i32) {
    %c0_i32 = arith.constant 0 : i32
    %c0_i32_0 = arith.constant 0 : i32
    return %arg0, %c0_i32 : i32, i32
  }
  func.func @transform_1(%arg0: i32) -> (i32, i32) {
    %c0_i32 = arith.constant 0 : i32
    %c0_i32_0 = arith.constant 0 : i32
    %c0_i32_1 = arith.constant 0 : i32
    return %c0_i32, %c0_i32_0 : i32, i32
  }
  func.func @transform_2(%arg0: i32) -> (i32, i32) {
    %c0_i32 = arith.constant 0 : i32
    %c0_i32_0 = arith.constant 0 : i32
    %c0_i32_1 = arith.constant 0 : i32
    return %c0_i32, %c0_i32_0 : i32, i32
  }
  func.func @transform_3(%arg0: i32) -> (i32, i32) {
    %c0_i32 = arith.constant 0 : i32
    %c0_i32_0 = arith.constant 0 : i32
    return %arg0, %c0_i32 : i32, i32
  }
}

module attributes {stable_mosaic.version = 11 : i64} {
  func.func @_conv_bias_lrelu_kernel(%arg0: i32, %arg1: memref<16x384xbf16, #tpu.memory_space<vmem>>, %arg2: memref<384x128xbf16, #tpu.memory_space<vmem>>, %arg3: memref<1x128xf32, #tpu.memory_space<vmem>>, %arg4: memref<16x128xf32, #tpu.memory_space<vmem>>, %arg5: memref<1x2x128xf32, #tpu.memory_space<vmem>>) attributes {dimension_semantics = [#tpu.dimension_semantics<parallel>], iteration_bounds = array<i64: 1>, scalar_prefetch = 0 : i64, scratch_operands = 0 : i64, tpu.core_type = #tpu.core_type<tc>, window_params = [{transform_indices = @transform_0, window_bounds = array<i64: 16, 384>}, {pipeline_mode = #tpu.pipeline_mode<synchronous>, transform_indices = @transform_1, window_bounds = array<i64: 384, 128>}, {pipeline_mode = #tpu.pipeline_mode<synchronous>, transform_indices = @transform_2, window_bounds = array<i64: 1, 128>}, {transform_indices = @transform_3, window_bounds = array<i64: 16, 128>}, {transform_indices = @transform_4, window_bounds = array<i64: 1, 2, 128>}]} {
    %c0 = arith.constant 0 : index
    %c0_0 = arith.constant 0 : index
    %0 = vector.load %arg1[%c0, %c0_0] : memref<16x384xbf16, #tpu.memory_space<vmem>>, vector<16x384xbf16>
    %c0_1 = arith.constant 0 : index
    %c0_2 = arith.constant 0 : index
    %1 = vector.load %arg2[%c0_1, %c0_2] : memref<384x128xbf16, #tpu.memory_space<vmem>>, vector<384x128xbf16>
    %cst = arith.constant dense<0.000000e+00> : vector<16x128xf32>
    %2 = tpu.matmul %0, %1, %cst {dimension_numbers = #tpu.dot_dimension_numbers<[1], [0], [0], [1], [0, 0, 1, 1], [], []>} : vector<16x384xbf16>, vector<384x128xbf16>, vector<16x128xf32> -> vector<16x128xf32>
    %c0_3 = arith.constant 0 : index
    %c0_4 = arith.constant 0 : index
    %3 = vector.load %arg3[%c0_3, %c0_4] : memref<1x128xf32, #tpu.memory_space<vmem>>, vector<1x128xf32>
    %4 = vector.broadcast %3 : vector<1x128xf32> to vector<16x128xf32>
    %5 = arith.addf %2, %4 : vector<16x128xf32>
    %cst_5 = arith.constant 0.000000e+00 : f32
    %6 = vector.broadcast %cst_5 : f32 to vector<16x128xf32>
    %7 = arith.cmpf oge, %5, %6 : vector<16x128xf32>
    %cst_6 = arith.constant 0.00999999977 : f32
    %8 = vector.broadcast %cst_6 : f32 to vector<16x128xf32>
    %9 = arith.mulf %8, %5 : vector<16x128xf32>
    %10 = arith.select %7, %5, %9 : vector<16x128xi1>, vector<16x128xf32>
    %c0_7 = arith.constant 0 : index
    %c0_8 = arith.constant 0 : index
    %11 = vector.load %arg4[%c0_7, %c0_8] : memref<16x128xf32, #tpu.memory_space<vmem>>, vector<16x128xf32>
    tpu.vector_store %arg4[%c0_7, %c0_8], %10 {strides = array<i32>} : memref<16x128xf32, #tpu.memory_space<vmem>>, vector<16x128xf32>,
    %c16_i32 = arith.constant 16 : i32
    %12 = arith.muli %arg0, %c16_i32 : i32
    %13 = tpu.iota {dimensions = array<i32: 0>} : vector<16x1xi32>
    %14 = vector.broadcast %12 : i32 to vector<16x1xi32>
    %15 = arith.addi %14, %13 : vector<16x1xi32>
    %c8_i32 = arith.constant 8 : i32
    %16 = vector.broadcast %c8_i32 : i32 to vector<16x1xi32>
    %17 = arith.cmpi slt, %15, %16 : vector<16x1xi32>
    %18 = arith.extui %17 : vector<16x1xi1> to vector<16x1xi32>
    %19 = arith.sitofp %18 : vector<16x1xi32> to vector<16x1xf32>
    %20 = vector.broadcast %19 : vector<16x1xf32> to vector<16x128xf32>
    %21 = arith.mulf %10, %20 : vector<16x128xf32>
    %cst_9 = arith.constant dense<0.000000e+00> : vector<128xf32>
    %22 = vector.multi_reduction <add>, %21, %cst_9 [0] : vector<16x128xf32> to vector<128xf32>
    %23 = vector.shape_cast %22 : vector<128xf32> to vector<1x128xf32>
    %24 = arith.mulf %21, %10 : vector<16x128xf32>
    %cst_10 = arith.constant dense<0.000000e+00> : vector<128xf32>
    %25 = vector.multi_reduction <add>, %24, %cst_10 [0] : vector<16x128xf32> to vector<128xf32>
    %26 = vector.shape_cast %25 : vector<128xf32> to vector<1x128xf32>
    %27 = tpu.concatenate %23, %26 in 0 : vector<1x128xf32>, vector<1x128xf32> -> vector<2x128xf32>
    %28 = vector.shape_cast %27 : vector<2x128xf32> to vector<1x2x128xf32>
    %c0_11 = arith.constant 0 : index
    %c0_12 = arith.constant 0 : index
    %c0_13 = arith.constant 0 : index
    %29 = vector.load %arg5[%c0_11, %c0_12, %c0_13] : memref<1x2x128xf32, #tpu.memory_space<vmem>>, vector<1x2x128xf32>
    tpu.vector_store %arg5[%c0_11, %c0_12, %c0_13], %28 {strides = array<i32>} : memref<1x2x128xf32, #tpu.memory_space<vmem>>, vector<1x2x128xf32>,
    return
  }
  func.func @transform_0(%arg0: i32) -> (i32, i32) {
    %c0_i32 = arith.constant 0 : i32
    %c0_i32_0 = arith.constant 0 : i32
    return %arg0, %c0_i32 : i32, i32
  }
  func.func @transform_1(%arg0: i32) -> (i32, i32) {
    %c0_i32 = arith.constant 0 : i32
    %c0_i32_0 = arith.constant 0 : i32
    %c0_i32_1 = arith.constant 0 : i32
    return %c0_i32, %c0_i32_0 : i32, i32
  }
  func.func @transform_2(%arg0: i32) -> (i32, i32) {
    %c0_i32 = arith.constant 0 : i32
    %c0_i32_0 = arith.constant 0 : i32
    %c0_i32_1 = arith.constant 0 : i32
    return %c0_i32, %c0_i32_0 : i32, i32
  }
  func.func @transform_3(%arg0: i32) -> (i32, i32) {
    %c0_i32 = arith.constant 0 : i32
    %c0_i32_0 = arith.constant 0 : i32
    return %arg0, %c0_i32 : i32, i32
  }
  func.func @transform_4(%arg0: i32) -> (i32, i32, i32) {
    %c0_i32 = arith.constant 0 : i32
    %c0_i32_0 = arith.constant 0 : i32
    %c0_i32_1 = arith.constant 0 : i32
    return %arg0, %c0_i32, %c0_i32_0 : i32, i32, i32
  }
}

module attributes {stable_mosaic.version = 11 : i64} {
  func.func @_bn_affine_kernel(%arg0: i32, %arg1: memref<16x128xf32, #tpu.memory_space<vmem>>, %arg2: memref<1x128xf32, #tpu.memory_space<vmem>>, %arg3: memref<1x128xf32, #tpu.memory_space<vmem>>, %arg4: memref<16x128xf32, #tpu.memory_space<vmem>>) attributes {dimension_semantics = [#tpu.dimension_semantics<parallel>], iteration_bounds = array<i64: 1>, scalar_prefetch = 0 : i64, scratch_operands = 0 : i64, tpu.core_type = #tpu.core_type<tc>, window_params = [{transform_indices = @transform_0, window_bounds = array<i64: 16, 128>}, {pipeline_mode = #tpu.pipeline_mode<synchronous>, transform_indices = @transform_1, window_bounds = array<i64: 1, 128>}, {pipeline_mode = #tpu.pipeline_mode<synchronous>, transform_indices = @transform_2, window_bounds = array<i64: 1, 128>}, {transform_indices = @transform_3, window_bounds = array<i64: 16, 128>}]} {
    %c0 = arith.constant 0 : index
    %c0_0 = arith.constant 0 : index
    %0 = vector.load %arg1[%c0, %c0_0] : memref<16x128xf32, #tpu.memory_space<vmem>>, vector<16x128xf32>
    %c0_1 = arith.constant 0 : index
    %c0_2 = arith.constant 0 : index
    %1 = vector.load %arg2[%c0_1, %c0_2] : memref<1x128xf32, #tpu.memory_space<vmem>>, vector<1x128xf32>
    %2 = vector.broadcast %1 : vector<1x128xf32> to vector<16x128xf32>
    %3 = arith.mulf %0, %2 : vector<16x128xf32>
    %c0_3 = arith.constant 0 : index
    %c0_4 = arith.constant 0 : index
    %4 = vector.load %arg3[%c0_3, %c0_4] : memref<1x128xf32, #tpu.memory_space<vmem>>, vector<1x128xf32>
    %5 = vector.broadcast %4 : vector<1x128xf32> to vector<16x128xf32>
    %6 = arith.addf %3, %5 : vector<16x128xf32>
    %cst = arith.constant 0.000000e+00 : f32
    %7 = vector.broadcast %cst : f32 to vector<16x128xf32>
    %8 = arith.cmpf oge, %6, %7 : vector<16x128xf32>
    %cst_5 = arith.constant 0.00999999977 : f32
    %9 = vector.broadcast %cst_5 : f32 to vector<16x128xf32>
    %10 = arith.mulf %9, %6 : vector<16x128xf32>
    %11 = arith.select %8, %6, %10 : vector<16x128xi1>, vector<16x128xf32>
    %c0_6 = arith.constant 0 : index
    %c0_7 = arith.constant 0 : index
    %12 = vector.load %arg4[%c0_6, %c0_7] : memref<16x128xf32, #tpu.memory_space<vmem>>, vector<16x128xf32>
    tpu.vector_store %arg4[%c0_6, %c0_7], %11 {strides = array<i32>} : memref<16x128xf32, #tpu.memory_space<vmem>>, vector<16x128xf32>,
    return
  }
  func.func @transform_0(%arg0: i32) -> (i32, i32) {
    %c0_i32 = arith.constant 0 : i32
    %c0_i32_0 = arith.constant 0 : i32
    return %arg0, %c0_i32 : i32, i32
  }
  func.func @transform_1(%arg0: i32) -> (i32, i32) {
    %c0_i32 = arith.constant 0 : i32
    %c0_i32_0 = arith.constant 0 : i32
    %c0_i32_1 = arith.constant 0 : i32
    return %c0_i32, %c0_i32_0 : i32, i32
  }
  func.func @transform_2(%arg0: i32) -> (i32, i32) {
    %c0_i32 = arith.constant 0 : i32
    %c0_i32_0 = arith.constant 0 : i32
    %c0_i32_1 = arith.constant 0 : i32
    return %c0_i32, %c0_i32_0 : i32, i32
  }
  func.func @transform_3(%arg0: i32) -> (i32, i32) {
    %c0_i32 = arith.constant 0 : i32
    %c0_i32_0 = arith.constant 0 : i32
    return %arg0, %c0_i32 : i32, i32
  }
}

module attributes {stable_mosaic.version = 11 : i64} {
  func.func @_conv_bias_lrelu_kernel(%arg0: i32, %arg1: memref<32x640xbf16, #tpu.memory_space<vmem>>, %arg2: memref<640x128xbf16, #tpu.memory_space<vmem>>, %arg3: memref<1x128xf32, #tpu.memory_space<vmem>>, %arg4: memref<32x128xf32, #tpu.memory_space<vmem>>, %arg5: memref<1x2x128xf32, #tpu.memory_space<vmem>>) attributes {dimension_semantics = [#tpu.dimension_semantics<parallel>], iteration_bounds = array<i64: 1>, scalar_prefetch = 0 : i64, scratch_operands = 0 : i64, tpu.core_type = #tpu.core_type<tc>, window_params = [{transform_indices = @transform_0, window_bounds = array<i64: 32, 640>}, {pipeline_mode = #tpu.pipeline_mode<synchronous>, transform_indices = @transform_1, window_bounds = array<i64: 640, 128>}, {pipeline_mode = #tpu.pipeline_mode<synchronous>, transform_indices = @transform_2, window_bounds = array<i64: 1, 128>}, {transform_indices = @transform_3, window_bounds = array<i64: 32, 128>}, {transform_indices = @transform_4, window_bounds = array<i64: 1, 2, 128>}]} {
    %c0 = arith.constant 0 : index
    %c0_0 = arith.constant 0 : index
    %0 = vector.load %arg1[%c0, %c0_0] : memref<32x640xbf16, #tpu.memory_space<vmem>>, vector<32x640xbf16>
    %c0_1 = arith.constant 0 : index
    %c0_2 = arith.constant 0 : index
    %1 = vector.load %arg2[%c0_1, %c0_2] : memref<640x128xbf16, #tpu.memory_space<vmem>>, vector<640x128xbf16>
    %cst = arith.constant dense<0.000000e+00> : vector<32x128xf32>
    %2 = tpu.matmul %0, %1, %cst {dimension_numbers = #tpu.dot_dimension_numbers<[1], [0], [0], [1], [0, 0, 1, 1], [], []>} : vector<32x640xbf16>, vector<640x128xbf16>, vector<32x128xf32> -> vector<32x128xf32>
    %c0_3 = arith.constant 0 : index
    %c0_4 = arith.constant 0 : index
    %3 = vector.load %arg3[%c0_3, %c0_4] : memref<1x128xf32, #tpu.memory_space<vmem>>, vector<1x128xf32>
    %4 = vector.broadcast %3 : vector<1x128xf32> to vector<32x128xf32>
    %5 = arith.addf %2, %4 : vector<32x128xf32>
    %cst_5 = arith.constant 0.000000e+00 : f32
    %6 = vector.broadcast %cst_5 : f32 to vector<32x128xf32>
    %7 = arith.cmpf oge, %5, %6 : vector<32x128xf32>
    %cst_6 = arith.constant 0.00999999977 : f32
    %8 = vector.broadcast %cst_6 : f32 to vector<32x128xf32>
    %9 = arith.mulf %8, %5 : vector<32x128xf32>
    %10 = arith.select %7, %5, %9 : vector<32x128xi1>, vector<32x128xf32>
    %c0_7 = arith.constant 0 : index
    %c0_8 = arith.constant 0 : index
    %11 = vector.load %arg4[%c0_7, %c0_8] : memref<32x128xf32, #tpu.memory_space<vmem>>, vector<32x128xf32>
    tpu.vector_store %arg4[%c0_7, %c0_8], %10 {strides = array<i32>} : memref<32x128xf32, #tpu.memory_space<vmem>>, vector<32x128xf32>,
    %c32_i32 = arith.constant 32 : i32
    %12 = arith.muli %arg0, %c32_i32 : i32
    %13 = tpu.iota {dimensions = array<i32: 0>} : vector<32x1xi32>
    %14 = vector.broadcast %12 : i32 to vector<32x1xi32>
    %15 = arith.addi %14, %13 : vector<32x1xi32>
    %c32_i32_9 = arith.constant 32 : i32
    %16 = vector.broadcast %c32_i32_9 : i32 to vector<32x1xi32>
    %17 = arith.cmpi slt, %15, %16 : vector<32x1xi32>
    %18 = arith.extui %17 : vector<32x1xi1> to vector<32x1xi32>
    %19 = arith.sitofp %18 : vector<32x1xi32> to vector<32x1xf32>
    %20 = vector.broadcast %19 : vector<32x1xf32> to vector<32x128xf32>
    %21 = arith.mulf %10, %20 : vector<32x128xf32>
    %cst_10 = arith.constant dense<0.000000e+00> : vector<128xf32>
    %22 = vector.multi_reduction <add>, %21, %cst_10 [0] : vector<32x128xf32> to vector<128xf32>
    %23 = vector.shape_cast %22 : vector<128xf32> to vector<1x128xf32>
    %24 = arith.mulf %21, %10 : vector<32x128xf32>
    %cst_11 = arith.constant dense<0.000000e+00> : vector<128xf32>
    %25 = vector.multi_reduction <add>, %24, %cst_11 [0] : vector<32x128xf32> to vector<128xf32>
    %26 = vector.shape_cast %25 : vector<128xf32> to vector<1x128xf32>
    %27 = tpu.concatenate %23, %26 in 0 : vector<1x128xf32>, vector<1x128xf32> -> vector<2x128xf32>
    %28 = vector.shape_cast %27 : vector<2x128xf32> to vector<1x2x128xf32>
    %c0_12 = arith.constant 0 : index
    %c0_13 = arith.constant 0 : index
    %c0_14 = arith.constant 0 : index
    %29 = vector.load %arg5[%c0_12, %c0_13, %c0_14] : memref<1x2x128xf32, #tpu.memory_space<vmem>>, vector<1x2x128xf32>
    tpu.vector_store %arg5[%c0_12, %c0_13, %c0_14], %28 {strides = array<i32>} : memref<1x2x128xf32, #tpu.memory_space<vmem>>, vector<1x2x128xf32>,
    return
  }
  func.func @transform_0(%arg0: i32) -> (i32, i32) {
    %c0_i32 = arith.constant 0 : i32
    %c0_i32_0 = arith.constant 0 : i32
    return %arg0, %c0_i32 : i32, i32
  }
  func.func @transform_1(%arg0: i32) -> (i32, i32) {
    %c0_i32 = arith.constant 0 : i32
    %c0_i32_0 = arith.constant 0 : i32
    %c0_i32_1 = arith.constant 0 : i32
    return %c0_i32, %c0_i32_0 : i32, i32
  }
  func.func @transform_2(%arg0: i32) -> (i32, i32) {
    %c0_i32 = arith.constant 0 : i32
    %c0_i32_0 = arith.constant 0 : i32
    %c0_i32_1 = arith.constant 0 : i32
    return %c0_i32, %c0_i32_0 : i32, i32
  }
  func.func @transform_3(%arg0: i32) -> (i32, i32) {
    %c0_i32 = arith.constant 0 : i32
    %c0_i32_0 = arith.constant 0 : i32
    return %arg0, %c0_i32 : i32, i32
  }
  func.func @transform_4(%arg0: i32) -> (i32, i32, i32) {
    %c0_i32 = arith.constant 0 : i32
    %c0_i32_0 = arith.constant 0 : i32
    %c0_i32_1 = arith.constant 0 : i32
    return %arg0, %c0_i32, %c0_i32_0 : i32, i32, i32
  }
}

module attributes {stable_mosaic.version = 11 : i64} {
  func.func @_conv_bias_lrelu_kernel(%arg0: i32, %arg1: memref<128x384xbf16, #tpu.memory_space<vmem>>, %arg2: memref<384x128xbf16, #tpu.memory_space<vmem>>, %arg3: memref<1x128xf32, #tpu.memory_space<vmem>>, %arg4: memref<128x128xf32, #tpu.memory_space<vmem>>, %arg5: memref<1x2x128xf32, #tpu.memory_space<vmem>>) attributes {dimension_semantics = [#tpu.dimension_semantics<parallel>], iteration_bounds = array<i64: 1>, scalar_prefetch = 0 : i64, scratch_operands = 0 : i64, tpu.core_type = #tpu.core_type<tc>, window_params = [{transform_indices = @transform_0, window_bounds = array<i64: 128, 384>}, {pipeline_mode = #tpu.pipeline_mode<synchronous>, transform_indices = @transform_1, window_bounds = array<i64: 384, 128>}, {pipeline_mode = #tpu.pipeline_mode<synchronous>, transform_indices = @transform_2, window_bounds = array<i64: 1, 128>}, {transform_indices = @transform_3, window_bounds = array<i64: 128, 128>}, {transform_indices = @transform_4, window_bounds = array<i64: 1, 2, 128>}]} {
    %c0 = arith.constant 0 : index
    %c0_0 = arith.constant 0 : index
    %0 = vector.load %arg1[%c0, %c0_0] : memref<128x384xbf16, #tpu.memory_space<vmem>>, vector<128x384xbf16>
    %c0_1 = arith.constant 0 : index
    %c0_2 = arith.constant 0 : index
    %1 = vector.load %arg2[%c0_1, %c0_2] : memref<384x128xbf16, #tpu.memory_space<vmem>>, vector<384x128xbf16>
    %cst = arith.constant dense<0.000000e+00> : vector<128x128xf32>
    %2 = tpu.matmul %0, %1, %cst {dimension_numbers = #tpu.dot_dimension_numbers<[1], [0], [0], [1], [0, 0, 1, 1], [], []>} : vector<128x384xbf16>, vector<384x128xbf16>, vector<128x128xf32> -> vector<128x128xf32>
    %c0_3 = arith.constant 0 : index
    %c0_4 = arith.constant 0 : index
    %3 = vector.load %arg3[%c0_3, %c0_4] : memref<1x128xf32, #tpu.memory_space<vmem>>, vector<1x128xf32>
    %4 = vector.broadcast %3 : vector<1x128xf32> to vector<128x128xf32>
    %5 = arith.addf %2, %4 : vector<128x128xf32>
    %cst_5 = arith.constant 0.000000e+00 : f32
    %6 = vector.broadcast %cst_5 : f32 to vector<128x128xf32>
    %7 = arith.cmpf oge, %5, %6 : vector<128x128xf32>
    %cst_6 = arith.constant 0.00999999977 : f32
    %8 = vector.broadcast %cst_6 : f32 to vector<128x128xf32>
    %9 = arith.mulf %8, %5 : vector<128x128xf32>
    %10 = arith.select %7, %5, %9 : vector<128x128xi1>, vector<128x128xf32>
    %c0_7 = arith.constant 0 : index
    %c0_8 = arith.constant 0 : index
    %11 = vector.load %arg4[%c0_7, %c0_8] : memref<128x128xf32, #tpu.memory_space<vmem>>, vector<128x128xf32>
    tpu.vector_store %arg4[%c0_7, %c0_8], %10 {strides = array<i32>} : memref<128x128xf32, #tpu.memory_space<vmem>>, vector<128x128xf32>,
    %c128_i32 = arith.constant 128 : i32
    %12 = arith.muli %arg0, %c128_i32 : i32
    %13 = tpu.iota {dimensions = array<i32: 0>} : vector<128x1xi32>
    %14 = vector.broadcast %12 : i32 to vector<128x1xi32>
    %15 = arith.addi %14, %13 : vector<128x1xi32>
    %c128_i32_9 = arith.constant 128 : i32
    %16 = vector.broadcast %c128_i32_9 : i32 to vector<128x1xi32>
    %17 = arith.cmpi slt, %15, %16 : vector<128x1xi32>
    %18 = arith.extui %17 : vector<128x1xi1> to vector<128x1xi32>
    %19 = arith.sitofp %18 : vector<128x1xi32> to vector<128x1xf32>
    %20 = vector.broadcast %19 : vector<128x1xf32> to vector<128x128xf32>
    %21 = arith.mulf %10, %20 : vector<128x128xf32>
    %cst_10 = arith.constant dense<0.000000e+00> : vector<128xf32>
    %22 = vector.multi_reduction <add>, %21, %cst_10 [0] : vector<128x128xf32> to vector<128xf32>
    %23 = vector.shape_cast %22 : vector<128xf32> to vector<1x128xf32>
    %24 = arith.mulf %21, %10 : vector<128x128xf32>
    %cst_11 = arith.constant dense<0.000000e+00> : vector<128xf32>
    %25 = vector.multi_reduction <add>, %24, %cst_11 [0] : vector<128x128xf32> to vector<128xf32>
    %26 = vector.shape_cast %25 : vector<128xf32> to vector<1x128xf32>
    %27 = tpu.concatenate %23, %26 in 0 : vector<1x128xf32>, vector<1x128xf32> -> vector<2x128xf32>
    %28 = vector.shape_cast %27 : vector<2x128xf32> to vector<1x2x128xf32>
    %c0_12 = arith.constant 0 : index
    %c0_13 = arith.constant 0 : index
    %c0_14 = arith.constant 0 : index
    %29 = vector.load %arg5[%c0_12, %c0_13, %c0_14] : memref<1x2x128xf32, #tpu.memory_space<vmem>>, vector<1x2x128xf32>
    tpu.vector_store %arg5[%c0_12, %c0_13, %c0_14], %28 {strides = array<i32>} : memref<1x2x128xf32, #tpu.memory_space<vmem>>, vector<1x2x128xf32>,
    return
  }
  func.func @transform_0(%arg0: i32) -> (i32, i32) {
    %c0_i32 = arith.constant 0 : i32
    %c0_i32_0 = arith.constant 0 : i32
    return %arg0, %c0_i32 : i32, i32
  }
  func.func @transform_1(%arg0: i32) -> (i32, i32) {
    %c0_i32 = arith.constant 0 : i32
    %c0_i32_0 = arith.constant 0 : i32
    %c0_i32_1 = arith.constant 0 : i32
    return %c0_i32, %c0_i32_0 : i32, i32
  }
  func.func @transform_2(%arg0: i32) -> (i32, i32) {
    %c0_i32 = arith.constant 0 : i32
    %c0_i32_0 = arith.constant 0 : i32
    %c0_i32_1 = arith.constant 0 : i32
    return %c0_i32, %c0_i32_0 : i32, i32
  }
  func.func @transform_3(%arg0: i32) -> (i32, i32) {
    %c0_i32 = arith.constant 0 : i32
    %c0_i32_0 = arith.constant 0 : i32
    return %arg0, %c0_i32 : i32, i32
  }
  func.func @transform_4(%arg0: i32) -> (i32, i32, i32) {
    %c0_i32 = arith.constant 0 : i32
    %c0_i32_0 = arith.constant 0 : i32
    %c0_i32_1 = arith.constant 0 : i32
    return %arg0, %c0_i32, %c0_i32_0 : i32, i32, i32
  }
}

module attributes {stable_mosaic.version = 11 : i64} {
  func.func @_conv_bias_lrelu_kernel(%arg0: i32, %arg1: memref<512x256xbf16, #tpu.memory_space<vmem>>, %arg2: memref<256x128xbf16, #tpu.memory_space<vmem>>, %arg3: memref<1x128xf32, #tpu.memory_space<vmem>>, %arg4: memref<512x128xf32, #tpu.memory_space<vmem>>, %arg5: memref<1x2x128xf32, #tpu.memory_space<vmem>>) attributes {dimension_semantics = [#tpu.dimension_semantics<parallel>], iteration_bounds = array<i64: 1>, scalar_prefetch = 0 : i64, scratch_operands = 0 : i64, tpu.core_type = #tpu.core_type<tc>, window_params = [{transform_indices = @transform_0, window_bounds = array<i64: 512, 256>}, {pipeline_mode = #tpu.pipeline_mode<synchronous>, transform_indices = @transform_1, window_bounds = array<i64: 256, 128>}, {pipeline_mode = #tpu.pipeline_mode<synchronous>, transform_indices = @transform_2, window_bounds = array<i64: 1, 128>}, {transform_indices = @transform_3, window_bounds = array<i64: 512, 128>}, {transform_indices = @transform_4, window_bounds = array<i64: 1, 2, 128>}]} {
    %c0 = arith.constant 0 : index
    %c0_0 = arith.constant 0 : index
    %0 = vector.load %arg1[%c0, %c0_0] : memref<512x256xbf16, #tpu.memory_space<vmem>>, vector<512x256xbf16>
    %c0_1 = arith.constant 0 : index
    %c0_2 = arith.constant 0 : index
    %1 = vector.load %arg2[%c0_1, %c0_2] : memref<256x128xbf16, #tpu.memory_space<vmem>>, vector<256x128xbf16>
    %cst = arith.constant dense<0.000000e+00> : vector<512x128xf32>
    %2 = tpu.matmul %0, %1, %cst {dimension_numbers = #tpu.dot_dimension_numbers<[1], [0], [0], [1], [0, 0, 1, 1], [], []>} : vector<512x256xbf16>, vector<256x128xbf16>, vector<512x128xf32> -> vector<512x128xf32>
    %c0_3 = arith.constant 0 : index
    %c0_4 = arith.constant 0 : index
    %3 = vector.load %arg3[%c0_3, %c0_4] : memref<1x128xf32, #tpu.memory_space<vmem>>, vector<1x128xf32>
    %4 = vector.broadcast %3 : vector<1x128xf32> to vector<512x128xf32>
    %5 = arith.addf %2, %4 : vector<512x128xf32>
    %cst_5 = arith.constant 0.000000e+00 : f32
    %6 = vector.broadcast %cst_5 : f32 to vector<512x128xf32>
    %7 = arith.cmpf oge, %5, %6 : vector<512x128xf32>
    %cst_6 = arith.constant 0.00999999977 : f32
    %8 = vector.broadcast %cst_6 : f32 to vector<512x128xf32>
    %9 = arith.mulf %8, %5 : vector<512x128xf32>
    %10 = arith.select %7, %5, %9 : vector<512x128xi1>, vector<512x128xf32>
    %c0_7 = arith.constant 0 : index
    %c0_8 = arith.constant 0 : index
    %11 = vector.load %arg4[%c0_7, %c0_8] : memref<512x128xf32, #tpu.memory_space<vmem>>, vector<512x128xf32>
    tpu.vector_store %arg4[%c0_7, %c0_8], %10 {strides = array<i32>} : memref<512x128xf32, #tpu.memory_space<vmem>>, vector<512x128xf32>,
    %c512_i32 = arith.constant 512 : i32
    %12 = arith.muli %arg0, %c512_i32 : i32
    %13 = tpu.iota {dimensions = array<i32: 0>} : vector<512x1xi32>
    %14 = vector.broadcast %12 : i32 to vector<512x1xi32>
    %15 = arith.addi %14, %13 : vector<512x1xi32>
    %c512_i32_9 = arith.constant 512 : i32
    %16 = vector.broadcast %c512_i32_9 : i32 to vector<512x1xi32>
    %17 = arith.cmpi slt, %15, %16 : vector<512x1xi32>
    %18 = arith.extui %17 : vector<512x1xi1> to vector<512x1xi32>
    %19 = arith.sitofp %18 : vector<512x1xi32> to vector<512x1xf32>
    %20 = vector.broadcast %19 : vector<512x1xf32> to vector<512x128xf32>
    %21 = arith.mulf %10, %20 : vector<512x128xf32>
    %cst_10 = arith.constant dense<0.000000e+00> : vector<128xf32>
    %22 = vector.multi_reduction <add>, %21, %cst_10 [0] : vector<512x128xf32> to vector<128xf32>
    %23 = vector.shape_cast %22 : vector<128xf32> to vector<1x128xf32>
    %24 = arith.mulf %21, %10 : vector<512x128xf32>
    %cst_11 = arith.constant dense<0.000000e+00> : vector<128xf32>
    %25 = vector.multi_reduction <add>, %24, %cst_11 [0] : vector<512x128xf32> to vector<128xf32>
    %26 = vector.shape_cast %25 : vector<128xf32> to vector<1x128xf32>
    %27 = tpu.concatenate %23, %26 in 0 : vector<1x128xf32>, vector<1x128xf32> -> vector<2x128xf32>
    %28 = vector.shape_cast %27 : vector<2x128xf32> to vector<1x2x128xf32>
    %c0_12 = arith.constant 0 : index
    %c0_13 = arith.constant 0 : index
    %c0_14 = arith.constant 0 : index
    %29 = vector.load %arg5[%c0_12, %c0_13, %c0_14] : memref<1x2x128xf32, #tpu.memory_space<vmem>>, vector<1x2x128xf32>
    tpu.vector_store %arg5[%c0_12, %c0_13, %c0_14], %28 {strides = array<i32>} : memref<1x2x128xf32, #tpu.memory_space<vmem>>, vector<1x2x128xf32>,
    return
  }
  func.func @transform_0(%arg0: i32) -> (i32, i32) {
    %c0_i32 = arith.constant 0 : i32
    %c0_i32_0 = arith.constant 0 : i32
    return %arg0, %c0_i32 : i32, i32
  }
  func.func @transform_1(%arg0: i32) -> (i32, i32) {
    %c0_i32 = arith.constant 0 : i32
    %c0_i32_0 = arith.constant 0 : i32
    %c0_i32_1 = arith.constant 0 : i32
    return %c0_i32, %c0_i32_0 : i32, i32
  }
  func.func @transform_2(%arg0: i32) -> (i32, i32) {
    %c0_i32 = arith.constant 0 : i32
    %c0_i32_0 = arith.constant 0 : i32
    %c0_i32_1 = arith.constant 0 : i32
    return %c0_i32, %c0_i32_0 : i32, i32
  }
  func.func @transform_3(%arg0: i32) -> (i32, i32) {
    %c0_i32 = arith.constant 0 : i32
    %c0_i32_0 = arith.constant 0 : i32
    return %arg0, %c0_i32 : i32, i32
  }
  func.func @transform_4(%arg0: i32) -> (i32, i32, i32) {
    %c0_i32 = arith.constant 0 : i32
    %c0_i32_0 = arith.constant 0 : i32
    %c0_i32_1 = arith.constant 0 : i32
    return %arg0, %c0_i32, %c0_i32_0 : i32, i32, i32
  }
}

</mosaic_0001>

<bundles_post_ra>
// kernel: encdec_forward.12
= control target key start
LH: loop header
LB: loop body
LE: loop exit
PB: predicated region body
PF: predicated region fallthrough
CT: control target
= control target key end

     0   :  { %s220_s0 = inlined_call_operand.vmem [shape: f32[128,128], index: 0, kind: input, shape index: {}]   ;;  %s221_s1 = inlined_call_operand.vmem [shape: f32[1,128], index: 1, kind: input, shape index: {}]   ;;  %s222_s2 = inlined_call_operand.vmem [shape: f32[1,128], index: 2, kind: input, shape index: {}]   ;;  %s223_s3 = inlined_call_operand.vmem [shape: f32[128,128], index: 3, kind: output, shape index: {}]  }
   0x1   :  { %v14_v0 = vld [vmem:[%s220_s0] sm:$0xff]  ;;  %v15_v4 = vld [vmem:[%s220_s0 + $0x8] sm:$0xff]  ;;  %v16_v5 = vld [vmem:[%s220_s0 + $0x10] sm:$0xff] }
   0x2   :  { %v96_v1 = vld [vmem:[%s221_s1] ss:$0 sm:$0xff]  ;;  %v17_v6 = vld [vmem:[%s220_s0 + $0x18] sm:$0xff]  ;;  %v19_v11 = vld [vmem:[%s220_s0 + $0x28] sm:$0xff] }
   0x3   :  { %v97_v2 = vld [vmem:[%s222_s2] ss:$0 sm:$0xff]  ;;  %v37_v3 = vmul.f32 %v96_v1, %v14_v0  ;;  %v38_v7 = vmul.f32 %v96_v1, %v15_v4  ;;  %v39_v8 = vmul.f32 %v96_v1, %v16_v5  ;;  %v40_v9 = vmul.f32 %v96_v1, %v17_v6  ;;  %v20_v12 = vld [vmem:[%s220_s0 + $0x30] sm:$0xff]  ;;  %v21_v17 = vld [vmem:[%s220_s0 + $0x38] sm:$0xff] }
   0x4   :  { %v18_v10 = vld [vmem:[%s220_s0 + $0x20] sm:$0xff]  ;;  %v42_v15 = vmul.f32 %v96_v1, %v19_v11  ;;  %v43_v16 = vmul.f32 %v96_v1, %v20_v12  ;;  %v23_v19 = vld [vmem:[%s220_s0 + $0x48] sm:$0xff]  ;;  %v44_v23 = vmul.f32 %v96_v1, %v21_v17  ;;  %v24_v24 = vld [vmem:[%s220_s0 + $0x50] sm:$0xff] }
   0x5   :  { %v60_v13 = vadd.f32 %v97_v2, %v37_v3  ;;  %v41_v14 = vmul.f32 %v96_v1, %v18_v10  ;;  %v22_v18 = vld [vmem:[%s220_s0 + $0x40] sm:$0xff]  ;;  %v61_v20 = vadd.f32 %v97_v2, %v38_v7  ;;  %v62_v21 = vadd.f32 %v97_v2, %v39_v8  ;;  %v25_v25 = vld [vmem:[%s220_s0 + $0x58] sm:$0xff]  ;;  %v27_v31 = vld [vmem:[%s220_s0 + $0x68] sm:$0xff] }
   0x6   :  { %v63_v22 = vadd.f32 %v97_v2, %v40_v9  ;;  %v26_v26 = vld [vmem:[%s220_s0 + $0x60] sm:$0xff]  ;;  %v65_v28 = vadd.f32 %v97_v2, %v42_v15  ;;  %v66_v29 = vadd.f32 %v97_v2, %v43_v16  ;;  %v45_v30 = vmul.f32 %v96_v1, %v22_v18  ;;  %v28_v32 = vld [vmem:[%s220_s0 + $0x70] sm:$0xff]  ;;  %v29_v33 = vld [vmem:[%s220_s0 + $0x78] sm:$0xff] }
   0x7   :  { %76 = vst [vmem:[%s223_s3] sm:$0xff] %v60_v13  ;;  %v64_v27 = vadd.f32 %v97_v2, %v41_v14  ;;  %77 = vst [vmem:[%s223_s3 + $0x8] sm:$0xff] %v61_v20  ;;  %v67_v34 = vadd.f32 %v97_v2, %v44_v23  ;;  %v46_v35 = vmul.f32 %v96_v1, %v23_v19 }
   0x8   :  { %78 = vst [vmem:[%s223_s3 + $0x10] sm:$0xff] %v62_v21  ;;  %79 = vst [vmem:[%s223_s3 + $0x18] sm:$0xff] %v63_v22  ;;  %v47_v36 = vmul.f32 %v96_v1, %v24_v24  ;;  %v48_v37 = vmul.f32 %v96_v1, %v25_v25  ;;  %v68_v38 = vadd.f32 %v97_v2, %v45_v30 }
   0x9   :  { %80 = vst [vmem:[%s223_s3 + $0x20] sm:$0xff] %v64_v27  ;;  %81 = vst [vmem:[%s223_s3 + $0x28] sm:$0xff] %v65_v28  ;;  %v49_v39 = vmul.f32 %v96_v1, %v26_v26  ;;  %v50_v40 = vmul.f32 %v96_v1, %v27_v31  ;;  %v51_v41 = vmul.f32 %v96_v1, %v28_v32 }
   0xa   :  { %82 = vst [vmem:[%s223_s3 + $0x30] sm:$0xff] %v66_v29  ;;  %83 = vst [vmem:[%s223_s3 + $0x38] sm:$0xff] %v67_v34  ;;  %v69_v42 = vadd.f32 %v97_v2, %v46_v35  ;;  %v70_v43 = vadd.f32 %v97_v2, %v47_v36  ;;  %v71_v44 = vadd.f32 %v97_v2, %v48_v37 }
   0xb   :  { %v52_v45 = vmul.f32 %v96_v1, %v29_v33  ;;  %84 = vst [vmem:[%s223_s3 + $0x40] sm:$0xff] %v68_v38  ;;  %v72_v46 = vadd.f32 %v97_v2, %v49_v39  ;;  %v73_v47 = vadd.f32 %v97_v2, %v50_v40  ;;  %v74_v48 = vadd.f32 %v97_v2, %v51_v41 }
   0xc   :  { %85 = vst [vmem:[%s223_s3 + $0x48] sm:$0xff] %v69_v42  ;;  %86 = vst [vmem:[%s223_s3 + $0x50] sm:$0xff] %v70_v43 }
   0xd   :  { %87 = vst [vmem:[%s223_s3 + $0x58] sm:$0xff] %v71_v44  ;;  %v75_v49 = vadd.f32 %v97_v2, %v52_v45  ;;  %88 = vst [vmem:[%s223_s3 + $0x60] sm:$0xff] %v72_v46 }
   0xe   :  { %89 = vst [vmem:[%s223_s3 + $0x68] sm:$0xff] %v73_v47  ;;  %90 = vst [vmem:[%s223_s3 + $0x70] sm:$0xff] %v74_v48 }
   0xf   :  { %91 = vst [vmem:[%s223_s3 + $0x78] sm:$0xff] %v75_v49 }

// kernel: encdec_forward.11
= control target key start
LH: loop header
LB: loop body
LE: loop exit
PB: predicated region body
PF: predicated region fallthrough
CT: control target
= control target key end

     0   :  { %10 = vsyncpa [#allocation3], 0  ;;  %s800_s0 = inlined_call_operand.vmem [shape: bf16[128,128], index: 0, kind: input, shape index: {}]   ;;  %s801_s1 = inlined_call_operand.hbm [shape: bf16[128,128], index: 1, kind: input, shape index: {}]   ;;  %s802_s2 = inlined_call_operand.hbm [shape: f32[1,128], index: 2, kind: input, shape index: {}]   ;;  %s803_s3 = inlined_call_operand.vmem [shape: f32[128,128], index: 3, kind: output, shape index: {0}]   ;;  %s804_s4 = inlined_call_operand.vmem [shape: f32[1,2,128], index: 4, kind: output, shape index: {1}]  }
   0x1   :  { %11 = vsyncpa [#allocation5], 0  ;;  %s654_s15 = smov [#allocation2]  }
   0x2   :  { %s19_s16 = sshll.u32 %s654_s15, 4  ;;  %s20_s16 = int_to_ptr.vmem [resolvable:$true] %s19_s16 }
   0x3   :  { %s618_s17 = scalar_lea.vmem %s20_s16, 1024  ;;  %p623_p1 = scmp.lt.s32.totalorder %s20_s16, %s20_s16 }
   0x4   :  { %p619_p0 = scmp.ne.s32.totalorder %s20_s16, %s618_s17  ;;  %p624_p2 = scmp.lt.s32.totalorder %s618_s17, %s618_s17 }
   0x6   :  { %p625_p3 = por %p624_p2, %p623_p1 }
   0x8   :  { %p626_p4 = pnand %p625_p3, %p619_p0 }
   0xa   :  { %629 = shalt.err (!%p626_p4)
}
   0xb   :  { %s655_s18 = smov 64   ;;  %s656_s19 = smov 4  }
   0xc   :  { %25 = dma.hbm_to_vmem [thread:$0]  %s801_s1, 1024, %s20_s16, [#allocation3], %s655_s18, %s655_s18, %s656_s19  }
   0xd   :  { %s657_s22 = smov [#allocation4]  }
   0xe   :  { %s32_s23 = sshll.u32 %s657_s22, 4  ;;  %s33_s23 = int_to_ptr.vmem [resolvable:$true] %s32_s23 }
   0xf   :  { %s638_s24 = scalar_lea.vmem %s33_s23, 16  ;;  %s642_s25 = scalar_lea.vmem %s33_s23, 32 }
  0x10   :  { %p639_p5 = scmp.ne.s32.totalorder %s33_s23, %s638_s24  ;;  %p643_p6 = scmp.lt.s32.totalorder %s33_s23, %s33_s23 }
  0x11   :  { %p644_p7 = scmp.lt.s32.totalorder %s642_s25, %s638_s24 }
  0x13   :  { %p645_p8 = por %p644_p7, %p643_p6 }
  0x15   :  { %p646_p9 = pnand %p645_p8, %p639_p5 }
  0x17   :  { %649 = shalt.err (!%p646_p9)
}
  0x18   :  { %35 = dma.hbm_to_vmem [thread:$0]  %s802_s2, 16, %s33_s23, [#allocation5]  }
  0x19   :  { %650 = dma.done.wait [#allocation3], 1024  }
  0x1a   :  { %651 = vsyncadd [#allocation3], 4294966272 }
  0x1b   :  { %652 = dma.done.wait [#allocation5], 16  }
  0x1c   :  { %653 = vsyncadd [#allocation5], 4294967280  ;;  %v594_v0 = vld [vmem:[#allocation2 + $0x38] sm:$0xff]   ;;  %v595_v1 = vld [vmem:[#allocation2 + $0x30] sm:$0xff]  }
  0x1d   :  { %542 = vmatprep.subr.bf16.mxu0 %v594_v0  ;;  %574 = vmatprep.subr.bf16.mxu1 %v594_v0  ;;  %v596_v2 = vld [vmem:[#allocation2 + $0x28] sm:$0xff]   ;;  %v597_v3 = vld [vmem:[#allocation2 + $0x20] sm:$0xff]   ;;  %v598_v6 = vld [vmem:[#allocation2 + $0x18] sm:$0xff]  }
  0x1e   :  { %543 = vmatpush3.bf16.msra.mxu0 %v594_v0  ;;  %582 = vmatpush3.bf16.msra.mxu1 %v594_v0  ;;  %v602_v4 = vld [vmem:[%s800_s0] sm:$0xff]   ;;  %v599_v7 = vld [vmem:[#allocation2 + $0x10] sm:$0xff]   ;;  %v600_v8 = vld [vmem:[#allocation2 + $0x8] sm:$0xff]  }
  0x1f   :  { %544 = vmatprep.subr.bf16.mxu0 %v595_v1  ;;  %575 = vmatprep.subr.bf16.mxu1 %v595_v1  ;;  %v605_v5 = vld [vmem:[%s800_s0 + $0x20] sm:$0xff]   ;;  %v603_v10 = vld [vmem:[%s800_s0 + $0x8] sm:$0xff]   ;;  %v604_v12 = vld [vmem:[%s800_s0 + $0x10] sm:$0xff]  }
  0x20   :  { %558 = vmatprep.mubr.bf16.mxu0 %v602_v4  ;;  %566 = vmatprep.mubr.bf16.mxu1 %v605_v5  ;;  %v601_v9 = vld [vmem:[#allocation2] sm:$0xff]   ;;  %v607_v11 = vld [vmem:[%s800_s0 + $0x28] sm:$0xff]   ;;  %v608_v13 = vld [vmem:[%s800_s0 + $0x30] sm:$0xff]  }
  0x21   :  { %v606_v14 = vld [vmem:[%s800_s0 + $0x18] sm:$0xff]   ;;  %v713_v16 = vld [vmem:[#allocation4] ss:$0 sm:$0xff] }
  0x22   :  { %545 = vmatpush3.bf16.msra.mxu0 %v595_v1  ;;  %583 = vmatpush3.bf16.msra.mxu1 %v595_v1  ;;  %v609_v15 = vld [vmem:[%s800_s0 + $0x38] sm:$0xff]  }
  0x23   :  { %546 = vmatprep.subr.bf16.mxu0 %v596_v2  ;;  %576 = vmatprep.subr.bf16.mxu1 %v596_v2 }
  0x26   :  { %547 = vmatpush3.bf16.msra.mxu0 %v596_v2  ;;  %584 = vmatpush3.bf16.msra.mxu1 %v596_v2 }
  0x27   :  { %548 = vmatprep.subr.bf16.mxu0 %v597_v3  ;;  %577 = vmatprep.subr.bf16.mxu1 %v597_v3 }
  0x2a   :  { %549 = vmatpush3.bf16.msra.mxu0 %v597_v3  ;;  %585 = vmatpush3.bf16.msra.mxu1 %v597_v3 }
  0x2b   :  { %550 = vmatprep.subr.bf16.mxu0 %v598_v6  ;;  %578 = vmatprep.subr.bf16.mxu1 %v598_v6 }
  0x2e   :  { %551 = vmatpush3.bf16.msra.mxu0 %v598_v6  ;;  %586 = vmatpush3.bf16.msra.mxu1 %v598_v6 }
  0x2f   :  { %552 = vmatprep.subr.bf16.mxu0 %v599_v7  ;;  %579 = vmatprep.subr.bf16.mxu1 %v599_v7 }
  0x32   :  { %553 = vmatpush3.bf16.msra.mxu0 %v599_v7  ;;  %587 = vmatpush3.bf16.msra.mxu1 %v599_v7 }
  0x33   :  { %554 = vmatprep.subr.bf16.mxu0 %v600_v8  ;;  %580 = vmatprep.subr.bf16.mxu1 %v600_v8 }
  0x36   :  { %555 = vmatpush3.bf16.msra.mxu0 %v600_v8  ;;  %588 = vmatpush3.bf16.msra.mxu1 %v600_v8 }
  0x37   :  { %556 = vmatprep.subr.bf16.mxu0 %v601_v9  ;;  %581 = vmatprep.subr.bf16.mxu1 %v601_v9 }
  0x3a   :  { %557 = vmatpush3.bf16.msra.mxu0 %v601_v9  ;;  %589 = vmatpush3.bf16.msra.mxu1 %v601_v9 }
  0x3d   :  { %559 = vmatmul.mubr.bf16.vlgmr.msra.gmra.mxu0 %v603_v10  ;;  %567 = vmatmul.mubr.bf16.vlgmr.msra.gmra.mxu1 %v607_v11 }
  0x3e   :  { %562 = vmatprep.mubr.bf16.mxu0 %v604_v12  ;;  %570 = vmatprep.mubr.bf16.mxu1 %v608_v13 }
  0x45   :  { %563 = vmatmul.mubr.bf16.gmra.mxu0 %v606_v14  ;;  %571 = vmatmul.mubr.bf16.gmra.mxu1 %v609_v15 }
  0xfd   :  { %v560_v17 = vpop.f32.mrf.mxu0  ;;  %v568_v18 = vpop.f32.mrf.mxu1 }
  0xfe   :  { %v221_v19 = vadd.f32 %v560_v17, %v713_v16  ;;  %v253_v20 = vadd.f32 %v568_v18, %v713_v16 }
  0xff   :  { %v212_v21 = vpop.f32.mrf.mxu0  ;;  %v244_v22 = vpop.f32.mrf.mxu1 }
 0x100   :  { %vm277_vm0 = vcmp.ge.f32.partialorder %v221_v19, 0.0  ;;  %v293_v23 = vmul.f32 0.01, %v221_v19  ;;  %v213_v24 = vadd.f32 %v713_v16, %v212_v21  ;;  %vm285_vm1 = vcmp.ge.f32.partialorder %v253_v20, 0.0 }
 0x101   :  { %v561_v25 = vpop.f32.mrf.mxu0  ;;  %v301_v26 = vmul.f32 0.01, %v253_v20  ;;  %v245_v27 = vadd.f32 %v713_v16, %v244_v22  ;;  %v569_v28 = vpop.f32.mrf.mxu1 }
 0x102   :  { %v309_v29 = vsel %vm277_vm0, %v221_v19, %v293_v23  ;;  %vm275_vm2 = vcmp.ge.f32.partialorder %v213_v24, 0.0  ;;  %v291_v30 = vmul.f32 0.01, %v213_v24  ;;  %v224_v31 = vadd.f32 %v561_v25, %v713_v16 }
 0x103   :  { %325 = vst [vmem:[%s803_s3 + $0x10] sm:$0xff] %v309_v29  ;;  %v215_v32 = vpop.f32.mrf.mxu0  ;;  %v723_v33 = vsel %vm285_vm1, %v253_v20, %v301_v26  ;;  %vm283_vm3 = vcmp.ge.f32.partialorder %v245_v27, 0.0  ;;  %v299_v34 = vmul.f32 0.01, %v245_v27  ;;  %v247_v35 = vpop.f32.mrf.mxu1  ;;  %v256_v41 = vadd.f32 %v569_v28, %v713_v16 }
 0x104   :  { %v307_v36 = vsel %vm275_vm2, %v213_v24, %v291_v30  ;;  %vm278_vm4 = vcmp.ge.f32.partialorder %v224_v31, 0.0  ;;  %v294_v37 = vmul.f32 0.01, %v224_v31  ;;  %v216_v38 = vadd.f32 %v713_v16, %v215_v32  ;;  %333 = vst [vmem:[%s803_s3 + $0x50] sm:$0xff] %v723_v33 }
 0x105   :  { %323 = vst [vmem:[%s803_s3] sm:$0xff] %v307_v36  ;;  %v564_v39 = vpop.f32.mrf.mxu0  ;;  %v733_v40 = vsel %vm283_vm3, %v245_v27, %v299_v34  ;;  %v572_v42 = vpop.f32.mrf.mxu1  ;;  %v459_v46 = vmul.f32 %v307_v36, %v307_v36  ;;  %vm286_vm6 = vcmp.ge.f32.partialorder %v256_v41, 0.0  ;;  %v302_v48 = vmul.f32 0.01, %v256_v41 }
 0x106   :  { %v310_v43 = vsel %vm278_vm4, %v224_v31, %v294_v37  ;;  %vm276_vm5 = vcmp.ge.f32.partialorder %v216_v38, 0.0  ;;  %v292_v44 = vmul.f32 0.01, %v216_v38  ;;  %v237_v45 = vadd.f32 %v564_v39, %v713_v16  ;;  %331 = vst [vmem:[%s803_s3 + $0x40] sm:$0xff] %v733_v40 }
 0x107   :  { %326 = vst [vmem:[%s803_s3 + $0x18] sm:$0xff] %v310_v43  ;;  %v228_v47 = vpop.f32.mrf.mxu0  ;;  %v748_v55 = vsel %vm286_vm6, %v256_v41, %v302_v48  ;;  %v248_v56 = vadd.f32 %v713_v16, %v247_v35  ;;  %v260_v57 = vpop.f32.mrf.mxu1  ;;  %v461_v61 = vmul.f32 %v309_v29, %v309_v29  ;;  %v462_v4 = vmul.f32 %v310_v43, %v310_v43 }
 0x108   :  { %v308_v49 = vsel %vm276_vm5, %v216_v38, %v292_v44  ;;  %vm281_vm7 = vcmp.ge.f32.partialorder %v237_v45, 0.0  ;;  %v297_v50 = vmul.f32 0.01, %v237_v45  ;;  %v229_v51 = vadd.f32 %v713_v16, %v228_v47  ;;  %334 = vst [vmem:[%s803_s3 + $0x58] sm:$0xff] %v748_v55 }
 0x109   :  { %324 = vst [vmem:[%s803_s3 + $0x8] sm:$0xff] %v308_v49  ;;  %v438_v52 = vadd.f32 %v308_v49, %v307_v36  ;;  %v460_v53 = vmul.f32 %v308_v49, %v308_v49  ;;  %v565_v54 = vpop.f32.mrf.mxu0  ;;  %vm284_vm10 = vcmp.ge.f32.partialorder %v248_v56, 0.0  ;;  %v573_v7 = vpop.f32.mrf.mxu1  ;;  %v300_v10 = vmul.f32 0.01, %v248_v56 }
 0x10a   :  { %v313_v58 = vsel %vm281_vm7, %v237_v45, %v297_v50  ;;  %vm279_vm8 = vcmp.ge.f32.partialorder %v229_v51, 0.0  ;;  %v295_v59 = vmul.f32 0.01, %v229_v51  ;;  %v240_v60 = vadd.f32 %v565_v54, %v713_v16 }
 0x10b   :  { %v439_v62 = vadd.f32 %v438_v52, %v309_v29  ;;  %v475_v63 = vadd.f32 %v460_v53, %v459_v46  ;;  %329 = vst [vmem:[%s803_s3 + $0x30] sm:$0xff] %v313_v58  ;;  %v231_v0 = vpop.f32.mrf.mxu0  ;;  %v269_v14 = vadd.f32 %v572_v42, %v713_v16  ;;  %v316_v17 = vsel %vm284_vm10, %v248_v56, %v300_v10  ;;  %v263_v24 = vpop.f32.mrf.mxu1 }
 0x10c   :  { %v311_v1 = vsel %vm279_vm8, %v229_v51, %v295_v59  ;;  %vm282_vm9 = vcmp.ge.f32.partialorder %v240_v60, 0.0  ;;  %v298_v2 = vmul.f32 0.01, %v240_v60  ;;  %v232_v3 = vadd.f32 %v713_v16, %v231_v0  ;;  %332 = vst [vmem:[%s803_s3 + $0x48] sm:$0xff] %v316_v17 }
 0x10d   :  { %v476_v5 = vadd.f32 %v475_v63, %v461_v61  ;;  %327 = vst [vmem:[%s803_s3 + $0x20] sm:$0xff] %v311_v1  ;;  %v440_v6 = vadd.f32 %v439_v62, %v310_v43  ;;  %v463_v12 = vmul.f32 %v311_v1, %v311_v1  ;;  %v261_v18 = vadd.f32 %v713_v16, %v260_v57 }
 0x10e   :  { %v314_v8 = vsel %vm282_vm9, %v240_v60, %v298_v2  ;;  %vm280_vm11 = vcmp.ge.f32.partialorder %v232_v3, 0.0  ;;  %v296_v9 = vmul.f32 0.01, %v232_v3  ;;  %v272_v19 = vadd.f32 %v573_v7, %v713_v16 }
 0x10f   :  { %v441_v11 = vadd.f32 %v440_v6, %v311_v1  ;;  %v477_v13 = vadd.f32 %v476_v5, %v462_v4  ;;  %330 = vst [vmem:[%s803_s3 + $0x38] sm:$0xff] %v314_v8  ;;  %v465_v20 = vmul.f32 %v313_v58, %v313_v58  ;;  %vm289_vm12 = vcmp.ge.f32.partialorder %v269_v14, 0.0 }
 0x110   :  { %v312_v15 = vsel %vm280_vm11, %v232_v3, %v296_v9  ;;  %v305_v25 = vmul.f32 0.01, %v269_v14  ;;  %vm287_vm13 = vcmp.ge.f32.partialorder %v261_v18, 0.0  ;;  %v303_v26 = vmul.f32 0.01, %v261_v18 }
 0x111   :  { %v478_v21 = vadd.f32 %v477_v13, %v463_v12  ;;  %328 = vst [vmem:[%s803_s3 + $0x28] sm:$0xff] %v312_v15  ;;  %v442_v22 = vadd.f32 %v441_v11, %v312_v15  ;;  %v464_v23 = vmul.f32 %v312_v15, %v312_v15  ;;  %vm290_vm14 = vcmp.ge.f32.partialorder %v272_v19, 0.0 }
 0x112   :  { %v306_v29 = vmul.f32 0.01, %v272_v19  ;;  %v321_v30 = vsel %vm289_vm12, %v269_v14, %v305_v25  ;;  %v319_v31 = vsel %vm287_vm13, %v261_v18, %v303_v26  ;;  %v264_v32 = vadd.f32 %v713_v16, %v263_v24 }
 0x113   :  { %v443_v27 = vadd.f32 %v442_v22, %v313_v58  ;;  %v479_v28 = vadd.f32 %v478_v21, %v464_v23  ;;  %v466_v34 = vmul.f32 %v314_v8, %v314_v8  ;;  %337 = vst [vmem:[%s803_s3 + $0x70] sm:$0xff] %v321_v30  ;;  %335 = vst [vmem:[%s803_s3 + $0x60] sm:$0xff] %v319_v31  ;;  %vm496_vm0 = vcmask 1040384  }
 0x114   :  { %v322_v37 = vsel %vm290_vm14, %v272_v19, %v306_v29  ;;  %vm288_vm15 = vcmp.ge.f32.partialorder %v264_v32, 0.0  ;;  %v304_v38 = vmul.f32 0.01, %v264_v32  ;;  %v467_v39 = vmul.f32 %v733_v40, %v733_v40 }
 0x115   :  { %v480_v35 = vadd.f32 %v479_v28, %v465_v20  ;;  %v444_v36 = vadd.f32 %v443_v27, %v314_v8  ;;  %338 = vst [vmem:[%s803_s3 + $0x78] sm:$0xff] %v322_v37  ;;  %v468_v44 = vmul.f32 %v316_v17, %v316_v17  ;;  %v469_v46 = vmul.f32 %v723_v33, %v723_v33 }
 0x116   :  { %v320_v42 = vsel %vm288_vm15, %v264_v32, %v304_v38  ;;  %v471_v52 = vmul.f32 %v319_v31, %v319_v31  ;;  %v473_v58 = vmul.f32 %v321_v30, %v321_v30  ;;  %v474_v61 = vmul.f32 %v322_v37, %v322_v37 }
 0x117   :  { %v445_v41 = vadd.f32 %v444_v36, %v733_v40  ;;  %v481_v16 = vadd.f32 %v480_v35, %v466_v34  ;;  %336 = vst [vmem:[%s803_s3 + $0x68] sm:$0xff] %v320_v42  ;;  %v470_v40 = vmul.f32 %v748_v55, %v748_v55  ;;  %v472_v57 = vmul.f32 %v320_v42, %v320_v42 }
 0x119   :  { %v446_v43 = vadd.f32 %v445_v41, %v316_v17  ;;  %v482_v45 = vadd.f32 %v481_v16, %v467_v39 }
 0x11b   :  { %v447_v47 = vadd.f32 %v446_v43, %v723_v33  ;;  %v483_v48 = vadd.f32 %v482_v45, %v468_v44 }
 0x11d   :  { %v484_v49 = vadd.f32 %v483_v48, %v469_v46  ;;  %v448_v50 = vadd.f32 %v447_v47, %v748_v55 }
 0x11f   :  { %v449_v51 = vadd.f32 %v448_v50, %v319_v31  ;;  %v485_v53 = vadd.f32 %v484_v49, %v470_v40 }
 0x121   :  { %v486_v54 = vadd.f32 %v485_v53, %v471_v52  ;;  %v450_v56 = vadd.f32 %v449_v51, %v320_v42 }
 0x123   :  { %v451_v59 = vadd.f32 %v450_v56, %v321_v30  ;;  %v487_v60 = vadd.f32 %v486_v54, %v472_v57 }
 0x125   :  { %v452_v62 = vadd.f32 %v451_v59, %v322_v37  ;;  %v488_v63 = vadd.f32 %v487_v60, %v473_v58 }
 0x127   :  { %v453_v33 = vrot.slane %v452_v62, 4  ;;  %v489_v0 = vadd.f32 %v488_v63, %v474_v61 }
 0x129   :  { %v454_v1 = vadd.f32 %v453_v33, %v452_v62  ;;  %v490_v2 = vrot.slane %v489_v0, 4 }
 0x12b   :  { %v455_v3 = vrot.slane %v454_v1, 2  ;;  %v491_v4 = vadd.f32 %v490_v2, %v489_v0 }
 0x12d   :  { %v456_v5 = vadd.f32 %v455_v3, %v454_v1  ;;  %v492_v55 = vrot.slane %v491_v4, 2 }
 0x12f   :  { %v457_v6 = vrot.slane %v456_v5, 1  ;;  %v493_v7 = vadd.f32 %v492_v55, %v491_v4 }
 0x131   :  { %v494_v8 = vrot.slane %v493_v7, 1  ;;  %v458_v9 = vadd.f32 %v457_v6, %v456_v5 }
 0x133   :  { %v495_v10 = vadd.f32 %v494_v8, %v493_v7 }
 0x135   :  { %v497_v11 = vsel %vm496_vm0, %v458_v9, %v495_v10 }
 0x136   :  { %498 = vst [vmem:[%s804_s4] sm:$0x3] %v497_v11 }
 0x137   :  { %507 = vsyncpa [#allocation3], 1 }
 0x138   :  { %508 = vsyncpa [#allocation5], 1 }

// kernel: encdec_forward.14
= control target key start
LH: loop header
LB: loop body
LE: loop exit
PB: predicated region body
PF: predicated region fallthrough
CT: control target
= control target key end

     0   :  { %s100_s0 = inlined_call_operand.vmem [shape: f32[32,128], index: 0, kind: input, shape index: {}]   ;;  %s101_s1 = inlined_call_operand.vmem [shape: f32[1,128], index: 1, kind: input, shape index: {}]   ;;  %s102_s2 = inlined_call_operand.vmem [shape: f32[1,128], index: 2, kind: input, shape index: {}]   ;;  %s103_s3 = inlined_call_operand.vmem [shape: f32[32,128], index: 3, kind: output, shape index: {}]  }
   0x1   :  { %v14_v0 = vld [vmem:[%s100_s0] sm:$0xff]  ;;  %v15_v4 = vld [vmem:[%s100_s0 + $0x8] sm:$0xff]  ;;  %v16_v5 = vld [vmem:[%s100_s0 + $0x10] sm:$0xff] }
   0x2   :  { %v48_v1 = vld [vmem:[%s101_s1] ss:$0 sm:$0xff]  ;;  %v17_v6 = vld [vmem:[%s100_s0 + $0x18] sm:$0xff] }
   0x3   :  { %v49_v2 = vld [vmem:[%s102_s2] ss:$0 sm:$0xff]  ;;  %v25_v3 = vmul.f32 %v48_v1, %v14_v0  ;;  %v26_v7 = vmul.f32 %v48_v1, %v15_v4  ;;  %v27_v8 = vmul.f32 %v48_v1, %v16_v5  ;;  %v28_v9 = vmul.f32 %v48_v1, %v17_v6 }
   0x5   :  { %v36_v10 = vadd.f32 %v49_v2, %v25_v3  ;;  %v37_v11 = vadd.f32 %v49_v2, %v26_v7  ;;  %v38_v12 = vadd.f32 %v49_v2, %v27_v8  ;;  %v39_v13 = vadd.f32 %v49_v2, %v28_v9 }
   0x7   :  { %40 = vst [vmem:[%s103_s3] sm:$0xff] %v36_v10  ;;  %41 = vst [vmem:[%s103_s3 + $0x8] sm:$0xff] %v37_v11 }
   0x8   :  { %42 = vst [vmem:[%s103_s3 + $0x10] sm:$0xff] %v38_v12  ;;  %43 = vst [vmem:[%s103_s3 + $0x18] sm:$0xff] %v39_v13 }

// kernel: encdec_forward.13
= control target key start
LH: loop header
LB: loop body
LE: loop exit
PB: predicated region body
PF: predicated region fallthrough
CT: control target
= control target key end

     0   :  { %vm290_vm4 = vcmask 1040384   ;;  %s491_s1 = inlined_call_operand.vmem [shape: bf16[256,128], index: 1, kind: input, shape index: {}]   ;;  %s492_s0 = inlined_call_operand.vmem [shape: bf16[32,256], index: 0, kind: input, shape index: {}]   ;;  %s493_s2 = inlined_call_operand.vmem [shape: f32[1,128], index: 2, kind: input, shape index: {}]   ;;  %s494_s3 = inlined_call_operand.vmem [shape: f32[32,128], index: 3, kind: output, shape index: {0}]   ;;  %s495_s4 = inlined_call_operand.vmem [shape: f32[1,2,128], index: 4, kind: output, shape index: {1}]  }
   0x1   :  { %v366_v0 = vld [vmem:[%s491_s1 + $0x78] sm:$0xff]   ;;  %v368_v2 = vld [vmem:[%s491_s1 + $0x70] sm:$0xff]   ;;  %v370_v4 = vld [vmem:[%s491_s1 + $0x68] sm:$0xff]  }
   0x2   :  { %v367_v1 = vld [vmem:[%s491_s1 + $0x38] sm:$0xff]   ;;  %322 = vmatprep.subr.bf16.mxu0 %v366_v0  ;;  %350 = vmatprep.subr.bf16.mxu1 %v366_v0  ;;  %v369_v3 = vld [vmem:[%s491_s1 + $0x30] sm:$0xff]   ;;  %v371_v5 = vld [vmem:[%s491_s1 + $0x28] sm:$0xff]  }
   0x3   :  { %323 = vmatpush3.bf16.msra.mxu0 %v367_v1  ;;  %358 = vmatpush3.bf16.msra.mxu1 %v367_v1  ;;  %v372_v6 = vld [vmem:[%s491_s1 + $0x60] sm:$0xff]   ;;  %v374_v8 = vld [vmem:[%s491_s1 + $0x58] sm:$0xff]   ;;  %v376_v10 = vld [vmem:[%s491_s1 + $0x50] sm:$0xff]  }
   0x4   :  { %324 = vmatprep.subr.bf16.mxu0 %v368_v2  ;;  %351 = vmatprep.subr.bf16.mxu1 %v368_v2  ;;  %v373_v7 = vld [vmem:[%s491_s1 + $0x20] sm:$0xff]   ;;  %v375_v9 = vld [vmem:[%s491_s1 + $0x18] sm:$0xff]   ;;  %v377_v13 = vld [vmem:[%s491_s1 + $0x10] sm:$0xff]  }
   0x5   :  { %v384_v11 = vld [vmem:[%s492_s0 + $0x4] ss:$8 sps:$4 sm:$0xff]   ;;  %v387_v12 = vld [vmem:[%s492_s0 + $0x14] ss:$8 sps:$4 sm:$0xff]   ;;  %v382_v18 = vld [vmem:[%s492_s0] ss:$8 sps:$4 sm:$0xff]  }
   0x6   :  { %v378_v14 = vld [vmem:[%s491_s1 + $0x48] sm:$0xff]   ;;  %208 = vmatprep.mubr.bf16.mxu0 %v384_v11  ;;  %216 = vmatprep.mubr.bf16.mxu1 %v387_v12  ;;  %v380_v16 = vld [vmem:[%s491_s1 + $0x40] sm:$0xff]   ;;  %v385_v19 = vld [vmem:[%s492_s0 + $0x10] ss:$8 sps:$4 sm:$0xff]  }
   0x7   :  { %325 = vmatpush3.bf16.msra.mxu0 %v369_v3  ;;  %359 = vmatpush3.bf16.msra.mxu1 %v369_v3  ;;  %v379_v15 = vld [vmem:[%s491_s1 + $0x8] sm:$0xff]   ;;  %v381_v17 = vld [vmem:[%s491_s1] sm:$0xff]  }
   0x8   :  { %326 = vmatprep.subr.bf16.mxu0 %v370_v4  ;;  %352 = vmatprep.subr.bf16.mxu1 %v370_v4  ;;  %v301_v22 = vld [vmem:[%s493_s2] ss:$0 sm:$0xff] }
   0xb   :  { %327 = vmatpush3.bf16.msra.mxu0 %v371_v5  ;;  %360 = vmatpush3.bf16.msra.mxu1 %v371_v5 }
   0xc   :  { %328 = vmatprep.subr.bf16.mxu0 %v372_v6  ;;  %353 = vmatprep.subr.bf16.mxu1 %v372_v6 }
   0xf   :  { %329 = vmatpush3.bf16.msra.mxu0 %v373_v7  ;;  %361 = vmatpush3.bf16.msra.mxu1 %v373_v7 }
  0x10   :  { %330 = vmatprep.subr.bf16.mxu0 %v374_v8  ;;  %354 = vmatprep.subr.bf16.mxu1 %v374_v8 }
  0x13   :  { %331 = vmatpush3.bf16.msra.mxu0 %v375_v9  ;;  %362 = vmatpush3.bf16.msra.mxu1 %v375_v9 }
  0x14   :  { %332 = vmatprep.subr.bf16.mxu0 %v376_v10  ;;  %355 = vmatprep.subr.bf16.mxu1 %v376_v10 }
  0x17   :  { %333 = vmatpush3.bf16.msra.mxu0 %v377_v13  ;;  %363 = vmatpush3.bf16.msra.mxu1 %v377_v13 }
  0x18   :  { %334 = vmatprep.subr.bf16.mxu0 %v378_v14  ;;  %356 = vmatprep.subr.bf16.mxu1 %v378_v14 }
  0x1b   :  { %335 = vmatpush3.bf16.msra.mxu0 %v379_v15  ;;  %364 = vmatpush3.bf16.msra.mxu1 %v379_v15 }
  0x1c   :  { %336 = vmatprep.subr.bf16.mxu0 %v380_v16  ;;  %357 = vmatprep.subr.bf16.mxu1 %v380_v16 }
  0x1f   :  { %337 = vmatpush3.bf16.msra.mxu0 %v381_v17  ;;  %365 = vmatpush3.bf16.msra.mxu1 %v381_v17 }
  0x22   :  { %209 = vmatmul.mubr.bf16.vlgmr.msra.gmra.mxu0 %v382_v18  ;;  %217 = vmatmul.mubr.bf16.vlgmr.msra.gmra.mxu1 %v385_v19 }
  0xe2   :  { %v338_v20 = vpop.f32.mrf.mxu0  ;;  %v344_v21 = vpop.f32.mrf.mxu1 }
  0xe4   :  { %v339_v23 = vpop.f32.mrf.mxu0  ;;  %v345_v24 = vpop.f32.mrf.mxu1 }
  0xe5   :  { %v340_v25 = vadd.f32 %v339_v23, %v338_v20  ;;  %v346_v26 = vadd.f32 %v345_v24, %v344_v21 }
  0xe6   :  { %v341_v27 = vpop.f32.mrf.mxu0  ;;  %v347_v28 = vpop.f32.mrf.mxu1 }
  0xe7   :  { %v211_v29 = vadd.f32 %v340_v25, %v301_v22  ;;  %v219_v30 = vadd.f32 %v346_v26, %v301_v22 }
  0xe8   :  { %v342_v31 = vpop.f32.mrf.mxu0  ;;  %v348_v32 = vpop.f32.mrf.mxu1 }
  0xe9   :  { %vm225_vm0 = vcmp.ge.f32.partialorder %v211_v29, 0.0  ;;  %v229_v33 = vmul.f32 0.01, %v211_v29  ;;  %vm227_vm1 = vcmp.ge.f32.partialorder %v219_v30, 0.0  ;;  %v231_v34 = vmul.f32 0.01, %v219_v30 }
  0xea   :  { %v343_v35 = vadd.f32 %v342_v31, %v341_v27  ;;  %v349_v36 = vadd.f32 %v348_v32, %v347_v28 }
  0xeb   :  { %v233_v37 = vsel %vm225_vm0, %v211_v29, %v229_v33  ;;  %v235_v38 = vsel %vm227_vm1, %v219_v30, %v231_v34 }
  0xec   :  { %237 = vst [vmem:[%s494_s3] sm:$0xff] %v233_v37  ;;  %239 = vst [vmem:[%s494_s3 + $0x10] sm:$0xff] %v235_v38  ;;  %v214_v39 = vadd.f32 %v343_v35, %v301_v22  ;;  %v222_v40 = vadd.f32 %v349_v36, %v301_v22  ;;  %v277_v45 = vmul.f32 %v233_v37, %v233_v37 }
  0xed   :  { %v279_v48 = vmul.f32 %v235_v38, %v235_v38 }
  0xee   :  { %vm226_vm2 = vcmp.ge.f32.partialorder %v214_v39, 0.0  ;;  %v230_v41 = vmul.f32 0.01, %v214_v39  ;;  %vm228_vm3 = vcmp.ge.f32.partialorder %v222_v40, 0.0  ;;  %v232_v42 = vmul.f32 0.01, %v222_v40 }
  0xf0   :  { %v234_v43 = vsel %vm226_vm2, %v214_v39, %v230_v41  ;;  %v236_v44 = vsel %vm228_vm3, %v222_v40, %v232_v42 }
  0xf1   :  { %238 = vst [vmem:[%s494_s3 + $0x8] sm:$0xff] %v234_v43  ;;  %v268_v46 = vadd.f32 %v234_v43, %v233_v37  ;;  %v278_v47 = vmul.f32 %v234_v43, %v234_v43  ;;  %240 = vst [vmem:[%s494_s3 + $0x18] sm:$0xff] %v236_v44  ;;  %v280_v52 = vmul.f32 %v236_v44, %v236_v44 }
  0xf3   :  { %v281_v49 = vadd.f32 %v278_v47, %v277_v45  ;;  %v269_v50 = vadd.f32 %v268_v46, %v235_v38 }
  0xf5   :  { %v270_v51 = vadd.f32 %v269_v50, %v236_v44  ;;  %v282_v53 = vadd.f32 %v281_v49, %v279_v48 }
  0xf7   :  { %v271_v54 = vrot.slane %v270_v51, 4  ;;  %v283_v55 = vadd.f32 %v282_v53, %v280_v52 }
  0xf9   :  { %v272_v56 = vadd.f32 %v271_v54, %v270_v51  ;;  %v284_v57 = vrot.slane %v283_v55, 4 }
  0xfb   :  { %v273_v58 = vrot.slane %v272_v56, 2  ;;  %v285_v59 = vadd.f32 %v284_v57, %v283_v55 }
  0xfd   :  { %v274_v60 = vadd.f32 %v273_v58, %v272_v56  ;;  %v286_v61 = vrot.slane %v285_v59, 2 }
  0xff   :  { %v275_v62 = vrot.slane %v274_v60, 1  ;;  %v287_v63 = vadd.f32 %v286_v61, %v285_v59 }
 0x101   :  { %v288_v0 = vrot.slane %v287_v63, 1  ;;  %v276_v1 = vadd.f32 %v275_v62, %v274_v60 }
 0x103   :  { %v289_v2 = vadd.f32 %v288_v0, %v287_v63 }
 0x105   :  { %v291_v3 = vsel %vm290_vm4, %v276_v1, %v289_v2 }
 0x106   :  { %292 = vst [vmem:[%s495_s4] sm:$0x3] %v291_v3 }

// kernel: encdec_forward.16
= control target key start
LH: loop header
LB: loop body
LE: loop exit
PB: predicated region body
PF: predicated region fallthrough
CT: control target
= control target key end

     0   :  { %s86_s0 = inlined_call_operand.vmem [shape: f32[16,128], index: 0, kind: input, shape index: {}]   ;;  %s87_s1 = inlined_call_operand.vmem [shape: f32[1,128], index: 1, kind: input, shape index: {}]   ;;  %s88_s2 = inlined_call_operand.vmem [shape: f32[1,128], index: 2, kind: input, shape index: {}]   ;;  %s89_s3 = inlined_call_operand.vmem [shape: f32[16,128], index: 3, kind: output, shape index: {}]  }
   0x1   :  { %v14_v0 = vld [vmem:[%s86_s0] sm:$0xff]  ;;  %v15_v4 = vld [vmem:[%s86_s0 + $0x8] sm:$0xff] }
   0x2   :  { %v46_v1 = vld [vmem:[%s87_s1] ss:$0 sm:$0xff] }
   0x3   :  { %v47_v2 = vld [vmem:[%s88_s2] ss:$0 sm:$0xff]  ;;  %v23_v3 = vmul.f32 %v46_v1, %v14_v0  ;;  %v24_v5 = vmul.f32 %v46_v1, %v15_v4 }
   0x5   :  { %v32_v6 = vadd.f32 %v47_v2, %v23_v3  ;;  %v33_v7 = vadd.f32 %v47_v2, %v24_v5 }
   0x7   :  { %vm34_vm0 = vcmp.ge.f32.partialorder %v32_v6, 0.0  ;;  %v36_v8 = vmul.f32 0.01, %v32_v6  ;;  %vm35_vm1 = vcmp.ge.f32.partialorder %v33_v7, 0.0  ;;  %v37_v9 = vmul.f32 0.01, %v33_v7 }
   0x9   :  { %v38_v10 = vsel %vm34_vm0, %v32_v6, %v36_v8  ;;  %v39_v11 = vsel %vm35_vm1, %v33_v7, %v37_v9 }
   0xa   :  { %40 = vst [vmem:[%s89_s3] sm:$0xff] %v38_v10  ;;  %41 = vst [vmem:[%s89_s3 + $0x8] sm:$0xff] %v39_v11 }

// kernel: encdec_forward.15
= control target key start
LH: loop header
LB: loop body
LE: loop exit
PB: predicated region body
PF: predicated region fallthrough
CT: control target
= control target key end

     0   :  { %v477_v1 = vmov 0.0   ;;  %vm478_vm0 = vmmov 0   ;;  %vm357_vm3 = vcmask 1040384   ;;  %s597_s1 = inlined_call_operand.vmem [shape: bf16[384,128], index: 1, kind: input, shape index: {}]   ;;  %s598_s0 = inlined_call_operand.vmem [shape: bf16[16,384], index: 0, kind: input, shape index: {}]   ;;  %s599_s2 = inlined_call_operand.vmem [shape: f32[1,128], index: 2, kind: input, shape index: {}]   ;;  %s600_s3 = inlined_call_operand.vmem [shape: f32[16,128], index: 3, kind: output, shape index: {0}]   ;;  %s601_s4 = inlined_call_operand.vmem [shape: f32[1,2,128], index: 4, kind: output, shape index: {1}]  }
   0x1   :  { %v449_v0 = vld [vmem:[%s597_s1 + $0x78] sm:$0xff]   ;;  %427 = vmatprep.subr.bf16.mxu1 %v477_v1  ;;  %443 = vmatprep.mubr.msk.bf16.mxu1 %vm478_vm0, %v477_v1  ;;  %v452_v4 = vld [vmem:[%s597_s1 + $0x70] sm:$0xff]   ;;  %v455_v7 = vld [vmem:[%s597_s1 + $0x68] sm:$0xff]  }
   0x2   :  { %v450_v2 = vld [vmem:[%s597_s1 + $0x38] sm:$0xff]   ;;  %396 = vmatprep.subr.bf16.mxu0 %v449_v0  ;;  %v453_v5 = vld [vmem:[%s597_s1 + $0x30] sm:$0xff]   ;;  %v456_v8 = vld [vmem:[%s597_s1 + $0x28] sm:$0xff]  }
   0x3   :  { %v451_v3 = vld [vmem:[%s597_s1 + $0xb8] sm:$0xff]   ;;  %397 = vmatpush3.bf16.msra.mxu0 %v450_v2  ;;  %v454_v6 = vld [vmem:[%s597_s1 + $0xb0] sm:$0xff]   ;;  %v457_v9 = vld [vmem:[%s597_s1 + $0xa8] sm:$0xff]  }
   0x4   :  { %428 = vmatpush3.bf16.msra.mxu1 %v451_v3  ;;  %398 = vmatprep.subr.bf16.mxu0 %v452_v4  ;;  %v458_v10 = vld [vmem:[%s597_s1 + $0x60] sm:$0xff]   ;;  %v461_v13 = vld [vmem:[%s597_s1 + $0x58] sm:$0xff]   ;;  %v464_v16 = vld [vmem:[%s597_s1 + $0x50] sm:$0xff]  }
   0x5   :  { %429 = vmatprep.subr.bf16.mxu1 %v477_v1  ;;  %v459_v11 = vld [vmem:[%s597_s1 + $0x20] sm:$0xff]   ;;  %v462_v14 = vld [vmem:[%s597_s1 + $0x18] sm:$0xff]   ;;  %v465_v17 = vld [vmem:[%s597_s1 + $0x10] sm:$0xff]  }
   0x6   :  { %v460_v12 = vld [vmem:[%s597_s1 + $0xa0] sm:$0xff]   ;;  %v463_v15 = vld [vmem:[%s597_s1 + $0x98] sm:$0xff]   ;;  %v466_v18 = vld [vmem:[%s597_s1 + $0x90] sm:$0xff]  }
   0x7   :  { %399 = vmatpush3.bf16.msra.mxu0 %v453_v5  ;;  %v467_v19 = vld [vmem:[%s597_s1 + $0x48] sm:$0xff]   ;;  %v470_v22 = vld [vmem:[%s597_s1 + $0x40] sm:$0xff]  }
   0x8   :  { %430 = vmatpush3.bf16.msra.mxu1 %v454_v6  ;;  %400 = vmatprep.subr.bf16.mxu0 %v455_v7  ;;  %v468_v20 = vld [vmem:[%s597_s1 + $0x8] sm:$0xff]   ;;  %v475_v23 = vld [vmem:[%s598_s0 + $0x4] ss:$12 sps:$4 sm:$0xff]   ;;  %v368_v30 = vld [vmem:[%s599_s2] ss:$0 sm:$0xff] }
   0x9   :  { %431 = vmatprep.subr.bf16.mxu1 %v477_v1  ;;  %v469_v21 = vld [vmem:[%s597_s1 + $0x88] sm:$0xff]   ;;  %v471_v24 = vld [vmem:[%s597_s1] sm:$0xff]   ;;  %268 = vmatprep.mubr.bf16.mxu0 %v475_v23 }
   0xa   :  { %v472_v25 = vld [vmem:[%s597_s1 + $0x80] sm:$0xff]   ;;  %v476_v27 = vld [vmem:[%s598_s0 + $0x8] ss:$12 sps:$4 sm:$0xff]  }
   0xb   :  { %401 = vmatpush3.bf16.msra.mxu0 %v456_v8  ;;  %v473_v26 = vld [vmem:[%s598_s0] ss:$12 sps:$4 sm:$0xff]  }
   0xc   :  { %432 = vmatpush3.bf16.msra.mxu1 %v457_v9  ;;  %402 = vmatprep.subr.bf16.mxu0 %v458_v10 }
   0xd   :  { %433 = vmatprep.subr.bf16.mxu1 %v477_v1 }
   0xf   :  { %403 = vmatpush3.bf16.msra.mxu0 %v459_v11 }
  0x10   :  { %434 = vmatpush3.bf16.msra.mxu1 %v460_v12  ;;  %404 = vmatprep.subr.bf16.mxu0 %v461_v13 }
  0x11   :  { %435 = vmatprep.subr.bf16.mxu1 %v477_v1 }
  0x13   :  { %405 = vmatpush3.bf16.msra.mxu0 %v462_v14 }
  0x14   :  { %436 = vmatpush3.bf16.msra.mxu1 %v463_v15  ;;  %406 = vmatprep.subr.bf16.mxu0 %v464_v16 }
  0x15   :  { %437 = vmatprep.subr.bf16.mxu1 %v477_v1 }
  0x17   :  { %407 = vmatpush3.bf16.msra.mxu0 %v465_v17 }
  0x18   :  { %438 = vmatpush3.bf16.msra.mxu1 %v466_v18  ;;  %408 = vmatprep.subr.bf16.mxu0 %v467_v19 }
  0x19   :  { %439 = vmatprep.subr.bf16.mxu1 %v477_v1 }
  0x1b   :  { %409 = vmatpush3.bf16.msra.mxu0 %v468_v20 }
  0x1c   :  { %440 = vmatpush3.bf16.msra.mxu1 %v469_v21  ;;  %410 = vmatprep.subr.bf16.mxu0 %v470_v22 }
  0x1d   :  { %441 = vmatprep.subr.bf16.mxu1 %v477_v1 }
  0x1f   :  { %411 = vmatpush3.bf16.msra.mxu0 %v471_v24 }
  0x20   :  { %442 = vmatpush3.bf16.msra.mxu1 %v472_v25 }
  0x22   :  { %269 = vmatmul.mubr.bf16.vlgmr.msra.gmra.mxu0 %v473_v26 }
  0x23   :  { %444 = vmatmul.mubr.bf16.vlgmr.msra.gmra.mxu1 %v476_v27 }
  0xe2   :  { %v412_v28 = vpop.f32.mrf.mxu0 }
  0xe3   :  { %v311_v29 = vpop.f32.mrf.mxu1 }
  0xe4   :  { %v413_v31 = vpop.f32.mrf.mxu0 }
  0xe5   :  { %v414_v32 = vadd.f32 %v413_v31, %v412_v28  ;;  %v445_v33 = vpop.f32.mrf.mxu1 }
  0xe6   :  { %v415_v34 = vpop.f32.mrf.mxu0 }
  0xe7   :  { %v271_v35 = vadd.f32 %v414_v32, %v368_v30  ;;  %v314_v36 = vpop.f32.mrf.mxu1 }
  0xe8   :  { %v416_v37 = vpop.f32.mrf.mxu0 }
  0xe9   :  { %v312_v38 = vadd.f32 %v311_v29, %v271_v35  ;;  %v417_v39 = vadd.f32 %v416_v37, %v415_v34  ;;  %v446_v40 = vpop.f32.mrf.mxu1 }
  0xeb   :  { %vm318_vm1 = vcmp.ge.f32.partialorder %v312_v38, 0.0  ;;  %v320_v41 = vmul.f32 0.01, %v312_v38  ;;  %v274_v42 = vadd.f32 %v417_v39, %v368_v30 }
  0xed   :  { %v322_v43 = vsel %vm318_vm1, %v312_v38, %v320_v41  ;;  %v315_v44 = vadd.f32 %v314_v36, %v274_v42 }
  0xee   :  { %324 = vst [vmem:[%s600_s3] sm:$0xff] %v322_v43  ;;  %v348_v48 = vmul.f32 %v322_v43, %v322_v43 }
  0xef   :  { %vm319_vm2 = vcmp.ge.f32.partialorder %v315_v44, 0.0  ;;  %v321_v45 = vmul.f32 0.01, %v315_v44 }
  0xf1   :  { %v323_v46 = vsel %vm319_vm2, %v315_v44, %v321_v45 }
  0xf2   :  { %325 = vst [vmem:[%s600_s3 + $0x8] sm:$0xff] %v323_v46  ;;  %v340_v47 = vmul.f32 0.0, %v323_v46 }
  0xf4   :  { %v341_v49 = vadd.f32 %v340_v47, %v322_v43  ;;  %v349_v50 = vmul.f32 %v340_v47, %v323_v46 }
  0xf6   :  { %v342_v51 = vrot.slane %v341_v49, 4  ;;  %v350_v52 = vadd.f32 %v349_v50, %v348_v48 }
  0xf8   :  { %v343_v53 = vadd.f32 %v342_v51, %v341_v49  ;;  %v351_v54 = vrot.slane %v350_v52, 4 }
  0xfa   :  { %v344_v55 = vrot.slane %v343_v53, 2  ;;  %v352_v56 = vadd.f32 %v351_v54, %v350_v52 }
  0xfc   :  { %v345_v57 = vadd.f32 %v344_v55, %v343_v53  ;;  %v353_v58 = vrot.slane %v352_v56, 2 }
  0xfe   :  { %v346_v59 = vrot.slane %v345_v57, 1  ;;  %v354_v60 = vadd.f32 %v353_v58, %v352_v56 }
 0x100   :  { %v355_v61 = vrot.slane %v354_v60, 1  ;;  %v347_v62 = vadd.f32 %v346_v59, %v345_v57 }
 0x102   :  { %v356_v63 = vadd.f32 %v355_v61, %v354_v60 }
 0x104   :  { %v358_v0 = vsel %vm357_vm3, %v347_v62, %v356_v63 }
 0x105   :  { %359 = vst [vmem:[%s601_s4] sm:$0x3] %v358_v0 }

// kernel: encdec_forward.17
= control target key start
LH: loop header
LB: loop body
LE: loop exit
PB: predicated region body
PF: predicated region fallthrough
CT: control target
= control target key end

     0   :  { %vm620_vm4 = vcmask 1040384   ;;  %s1015_s1 = inlined_call_operand.vmem [shape: bf16[640,128], index: 1, kind: input, shape index: {}]   ;;  %s1016_s0 = inlined_call_operand.vmem [shape: bf16[32,640], index: 0, kind: input, shape index: {}]   ;;  %s1017_s2 = inlined_call_operand.vmem [shape: f32[1,128], index: 2, kind: input, shape index: {}]   ;;  %s1018_s3 = inlined_call_operand.vmem [shape: f32[32,128], index: 3, kind: output, shape index: {0}]   ;;  %s1019_s4 = inlined_call_operand.vmem [shape: f32[1,2,128], index: 4, kind: output, shape index: {1}]  }
   0x1   :  { %v768_v0 = vld [vmem:[%s1015_s1 + $0x78] sm:$0xff]   ;;  %v772_v4 = vld [vmem:[%s1015_s1 + $0x70] sm:$0xff]   ;;  %v776_v8 = vld [vmem:[%s1015_s1 + $0x68] sm:$0xff]  }
   0x2   :  { %v769_v1 = vld [vmem:[%s1015_s1 + $0x38] sm:$0xff]   ;;  %682 = vmatprep.subr.bf16.mxu0 %v768_v0  ;;  %v773_v5 = vld [vmem:[%s1015_s1 + $0x30] sm:$0xff]   ;;  %v777_v9 = vld [vmem:[%s1015_s1 + $0x28] sm:$0xff]  }
   0x3   :  { %v770_v2 = vld [vmem:[%s1015_s1 + $0xf8] sm:$0xff]   ;;  %683 = vmatpush3.bf16.msra.mxu0 %v769_v1  ;;  %v774_v6 = vld [vmem:[%s1015_s1 + $0xf0] sm:$0xff]   ;;  %v778_v10 = vld [vmem:[%s1015_s1 + $0xe8] sm:$0xff]  }
   0x4   :  { %v771_v3 = vld [vmem:[%s1015_s1 + $0xb8] sm:$0xff]   ;;  %710 = vmatprep.subr.bf16.mxu1 %v770_v2  ;;  %684 = vmatprep.subr.bf16.mxu0 %v772_v4  ;;  %v775_v7 = vld [vmem:[%s1015_s1 + $0xb0] sm:$0xff]   ;;  %v779_v11 = vld [vmem:[%s1015_s1 + $0xa8] sm:$0xff]  }
   0x5   :  { %711 = vmatpush3.bf16.msra.mxu1 %v771_v3  ;;  %v780_v12 = vld [vmem:[%s1015_s1 + $0x60] sm:$0xff]   ;;  %v784_v16 = vld [vmem:[%s1015_s1 + $0x58] sm:$0xff]   ;;  %v788_v20 = vld [vmem:[%s1015_s1 + $0x50] sm:$0xff]  }
   0x6   :  { %712 = vmatprep.subr.bf16.mxu1 %v774_v6  ;;  %v781_v13 = vld [vmem:[%s1015_s1 + $0x20] sm:$0xff]   ;;  %v785_v17 = vld [vmem:[%s1015_s1 + $0x18] sm:$0xff]   ;;  %v789_v21 = vld [vmem:[%s1015_s1 + $0x10] sm:$0xff]  }
   0x7   :  { %685 = vmatpush3.bf16.msra.mxu0 %v773_v5  ;;  %v782_v14 = vld [vmem:[%s1015_s1 + $0xe0] sm:$0xff]   ;;  %v786_v18 = vld [vmem:[%s1015_s1 + $0xd8] sm:$0xff]   ;;  %v790_v22 = vld [vmem:[%s1015_s1 + $0xd0] sm:$0xff]  }
   0x8   :  { %686 = vmatprep.subr.bf16.mxu0 %v776_v8  ;;  %v783_v15 = vld [vmem:[%s1015_s1 + $0xa0] sm:$0xff]   ;;  %v787_v19 = vld [vmem:[%s1015_s1 + $0x98] sm:$0xff]   ;;  %v791_v23 = vld [vmem:[%s1015_s1 + $0x90] sm:$0xff]  }
   0x9   :  { %713 = vmatpush3.bf16.msra.mxu1 %v775_v7  ;;  %v792_v24 = vld [vmem:[%s1015_s1 + $0x48] sm:$0xff]   ;;  %v796_v28 = vld [vmem:[%s1015_s1 + $0x40] sm:$0xff]   ;;  %v803_v34 = vld [vmem:[%s1015_s1 + $0x138] sm:$0xff]  }
   0xa   :  { %714 = vmatprep.subr.bf16.mxu1 %v778_v10  ;;  %v793_v25 = vld [vmem:[%s1015_s1 + $0x8] sm:$0xff]   ;;  %v797_v29 = vld [vmem:[%s1015_s1] sm:$0xff]   ;;  %v807_v37 = vld [vmem:[%s1015_s1 + $0x130] sm:$0xff]  }
   0xb   :  { %687 = vmatpush3.bf16.msra.mxu0 %v777_v9  ;;  %v794_v26 = vld [vmem:[%s1015_s1 + $0xc8] sm:$0xff]   ;;  %v798_v30 = vld [vmem:[%s1015_s1 + $0xc0] sm:$0xff]   ;;  %v810_v44 = vld [vmem:[%s1015_s1 + $0x118] sm:$0xff]  }
   0xc   :  { %688 = vmatprep.subr.bf16.mxu0 %v780_v12  ;;  %v795_v27 = vld [vmem:[%s1015_s1 + $0x88] sm:$0xff]   ;;  %v799_v31 = vld [vmem:[%s1016_s0] ss:$20 sps:$4 sm:$0xff]   ;;  %v801_v32 = vld [vmem:[%s1016_s0 + $0x4] ss:$20 sps:$4 sm:$0xff]  }
   0xd   :  { %715 = vmatpush3.bf16.msra.mxu1 %v779_v11  ;;  %v802_v33 = vld [vmem:[%s1015_s1 + $0x80] sm:$0xff]   ;;  %440 = vmatprep.mubr.bf16.mxu0 %v801_v32  ;;  %v804_v35 = vld [vmem:[%s1016_s0 + $0x8] ss:$20 sps:$4 sm:$0xff]   ;;  %v817_v46 = vld [vmem:[%s1015_s1 + $0x110] sm:$0xff]  }
   0xe   :  { %716 = vmatprep.subr.bf16.mxu1 %v782_v14  ;;  %v806_v36 = vld [vmem:[%s1016_s0 + $0xc] ss:$20 sps:$4 sm:$0xff]   ;;  %v813_v41 = vld [vmem:[%s1016_s0 + $0x28] ss:$20 sps:$4 sm:$0xff]   ;;  %v816_v43 = vld [vmem:[%s1016_s0 + $0x30] ss:$20 sps:$4 sm:$0xff]  }
   0xf   :  { %689 = vmatpush3.bf16.msra.mxu0 %v781_v13  ;;  %489 = vmatprep.mubr.bf16.mxu1 %v806_v36  ;;  %v808_v38 = vld [vmem:[%s1015_s1 + $0x128] sm:$0xff]   ;;  %v809_v39 = vld [vmem:[%s1015_s1 + $0x120] sm:$0xff]  }
  0x10   :  { %690 = vmatprep.subr.bf16.mxu0 %v784_v16  ;;  %v811_v40 = vld [vmem:[%s1016_s0 + $0x2c] ss:$20 sps:$4 sm:$0xff]   ;;  %v814_v42 = vld [vmem:[%s1016_s0 + $0x34] ss:$20 sps:$4 sm:$0xff]   ;;  %v820_v45 = vld [vmem:[%s1016_s0 + $0x10] ss:$20 sps:$4 sm:$0xff]  }
  0x11   :  { %717 = vmatpush3.bf16.msra.mxu1 %v783_v15  ;;  %v818_v47 = vld [vmem:[%s1015_s1 + $0x108] sm:$0xff]   ;;  %v819_v48 = vld [vmem:[%s1015_s1 + $0x100] sm:$0xff]  }
  0x12   :  { %718 = vmatprep.subr.bf16.mxu1 %v786_v18  ;;  %v821_v49 = vld [vmem:[%s1016_s0 + $0x38] ss:$20 sps:$4 sm:$0xff]   ;;  %v631_v3 = vld [vmem:[%s1017_s2] ss:$0 sm:$0xff] }
  0x13   :  { %691 = vmatpush3.bf16.msra.mxu0 %v785_v17 }
  0x14   :  { %692 = vmatprep.subr.bf16.mxu0 %v788_v20 }
  0x15   :  { %719 = vmatpush3.bf16.msra.mxu1 %v787_v19 }
  0x16   :  { %720 = vmatprep.subr.bf16.mxu1 %v790_v22 }
  0x17   :  { %693 = vmatpush3.bf16.msra.mxu0 %v789_v21 }
  0x18   :  { %694 = vmatprep.subr.bf16.mxu0 %v792_v24 }
  0x19   :  { %721 = vmatpush3.bf16.msra.mxu1 %v791_v23 }
  0x1a   :  { %722 = vmatprep.subr.bf16.mxu1 %v794_v26 }
  0x1b   :  { %695 = vmatpush3.bf16.msra.mxu0 %v793_v25 }
  0x1c   :  { %696 = vmatprep.subr.bf16.mxu0 %v796_v28 }
  0x1d   :  { %723 = vmatpush3.bf16.msra.mxu1 %v795_v27 }
  0x1e   :  { %724 = vmatprep.subr.bf16.mxu1 %v798_v30 }
  0x1f   :  { %697 = vmatpush3.bf16.msra.mxu0 %v797_v29 }
  0x20   :  { %748 = vmatprep.subr.bf16.mxu0 %v803_v34 }
  0x21   :  { %725 = vmatpush3.bf16.msra.mxu1 %v802_v33 }
  0x22   :  { %441 = vmatmul.mubr.bf16.vlgmr.msra.gmra.mxu0 %v799_v31 }
  0x23   :  { %749 = vmatpush3.bf16.msra.mxu0 %v803_v34  ;;  %448 = vmatprep.mubr.bf16.mxu0 %v811_v40 }
  0x24   :  { %490 = vmatmul.mubr.bf16.vlgmr.msra.gmra.mxu1 %v804_v35  ;;  %750 = vmatprep.subr.bf16.mxu0 %v807_v37 }
  0x25   :  { %497 = vmatprep.mubr.bf16.mxu1 %v814_v42 }
  0x27   :  { %751 = vmatpush3.bf16.msra.mxu0 %v807_v37 }
  0x28   :  { %752 = vmatprep.subr.bf16.mxu0 %v808_v38 }
  0x2a   :  { %449 = vmatmul.mubr.bf16.gmra.mxu0 %v813_v41 }
  0x2b   :  { %753 = vmatpush3.bf16.msra.mxu0 %v808_v38  ;;  %764 = vmatprep.mubr.bf16.mxu0 %v820_v45 }
  0x2c   :  { %754 = vmatprep.subr.bf16.mxu0 %v809_v39  ;;  %498 = vmatmul.mubr.bf16.gmra.mxu1 %v816_v43 }
  0x2f   :  { %755 = vmatpush3.bf16.msra.mxu0 %v809_v39 }
  0x30   :  { %756 = vmatprep.subr.bf16.mxu0 %v810_v44 }
  0x33   :  { %757 = vmatpush3.bf16.msra.mxu0 %v810_v44 }
  0x34   :  { %758 = vmatprep.subr.bf16.mxu0 %v817_v46 }
  0x37   :  { %759 = vmatpush3.bf16.msra.mxu0 %v817_v46 }
  0x38   :  { %760 = vmatprep.subr.bf16.mxu0 %v818_v47 }
  0x3b   :  { %761 = vmatpush3.bf16.msra.mxu0 %v818_v47 }
  0x3c   :  { %762 = vmatprep.subr.bf16.mxu0 %v819_v48 }
  0x3f   :  { %763 = vmatpush3.bf16.msra.mxu0 %v819_v48 }
  0x42   :  { %765 = vmatmul.mubr.bf16.vlgmr.msra.gmra.mxu0 %v821_v49 }
  0xe2   :  { %v698_v50 = vpop.f32.mrf.mxu0 }
  0xe4   :  { %v699_v51 = vpop.f32.mrf.mxu0  ;;  %v726_v52 = vpop.f32.mrf.mxu1 }
  0xe5   :  { %v700_v2 = vadd.f32 %v699_v51, %v698_v50 }
  0xe6   :  { %v701_v53 = vpop.f32.mrf.mxu0  ;;  %v727_v54 = vpop.f32.mrf.mxu1 }
  0xe7   :  { %v443_v9 = vadd.f32 %v700_v2, %v631_v3  ;;  %v728_v10 = vadd.f32 %v727_v54, %v726_v52 }
  0xe8   :  { %v702_v55 = vpop.f32.mrf.mxu0  ;;  %v729_v56 = vpop.f32.mrf.mxu1 }
  0xe9   :  { %v703_v7 = vadd.f32 %v702_v55, %v701_v53  ;;  %v492_v18 = vadd.f32 %v728_v10, %v443_v9 }
  0xea   :  { %v704_v57 = vpop.f32.mrf.mxu0  ;;  %v730_v58 = vpop.f32.mrf.mxu1 }
  0xeb   :  { %v446_v14 = vadd.f32 %v703_v7, %v631_v3  ;;  %v731_v15 = vadd.f32 %v730_v58, %v729_v56 }
  0xec   :  { %v705_v59 = vpop.f32.mrf.mxu0  ;;  %v732_v60 = vpop.f32.mrf.mxu1 }
  0xed   :  { %v706_v63 = vadd.f32 %v705_v59, %v704_v57  ;;  %v495_v24 = vadd.f32 %v731_v15, %v446_v14 }
  0xee   :  { %v707_v61 = vpop.f32.mrf.mxu0  ;;  %v733_v62 = vpop.f32.mrf.mxu1 }
  0xef   :  { %v451_v4 = vadd.f32 %v706_v63, %v631_v3  ;;  %v734_v5 = vadd.f32 %v733_v62, %v732_v60 }
  0xf0   :  { %v708_v0 = vpop.f32.mrf.mxu0  ;;  %v735_v1 = vpop.f32.mrf.mxu1 }
  0xf1   :  { %v709_v6 = vadd.f32 %v708_v0, %v707_v61  ;;  %v500_v13 = vadd.f32 %v734_v5, %v451_v4 }
  0xf2   :  { %v736_v8 = vpop.f32.mrf.mxu1 }
  0xf3   :  { %v454_v11 = vadd.f32 %v709_v6, %v631_v3  ;;  %v737_v12 = vadd.f32 %v736_v8, %v735_v1 }
  0xf5   :  { %v503_v22 = vadd.f32 %v737_v12, %v454_v11 }
 0x102   :  { %v766_v16 = vpop.f32.mrf.mxu0 }
 0x103   :  { %v549_v17 = vadd.f32 %v766_v16, %v500_v13 }
 0x104   :  { %v540_v19 = vpop.f32.mrf.mxu0 }
 0x105   :  { %vm557_vm0 = vcmp.ge.f32.partialorder %v549_v17, 0.0  ;;  %v561_v20 = vmul.f32 0.01, %v549_v17  ;;  %v541_v21 = vadd.f32 %v540_v19, %v492_v18 }
 0x106   :  { %v767_v23 = vpop.f32.mrf.mxu0 }
 0x107   :  { %v565_v25 = vsel %vm557_vm0, %v549_v17, %v561_v20  ;;  %vm555_vm1 = vcmp.ge.f32.partialorder %v541_v21, 0.0  ;;  %v559_v26 = vmul.f32 0.01, %v541_v21  ;;  %v552_v27 = vadd.f32 %v767_v23, %v503_v22 }
 0x108   :  { %569 = vst [vmem:[%s1018_s3 + $0x10] sm:$0xff] %v565_v25  ;;  %v543_v28 = vpop.f32.mrf.mxu0  ;;  %v609_v38 = vmul.f32 %v565_v25, %v565_v25 }
 0x109   :  { %v563_v29 = vsel %vm555_vm1, %v541_v21, %v559_v26  ;;  %vm558_vm2 = vcmp.ge.f32.partialorder %v552_v27, 0.0  ;;  %v562_v30 = vmul.f32 0.01, %v552_v27  ;;  %v544_v31 = vadd.f32 %v543_v28, %v495_v24 }
 0x10a   :  { %567 = vst [vmem:[%s1018_s3] sm:$0xff] %v563_v29  ;;  %v607_v35 = vmul.f32 %v563_v29, %v563_v29 }
 0x10b   :  { %v566_v32 = vsel %vm558_vm2, %v552_v27, %v562_v30  ;;  %vm556_vm3 = vcmp.ge.f32.partialorder %v544_v31, 0.0  ;;  %v560_v33 = vmul.f32 0.01, %v544_v31 }
 0x10c   :  { %570 = vst [vmem:[%s1018_s3 + $0x18] sm:$0xff] %v566_v32  ;;  %v610_v41 = vmul.f32 %v566_v32, %v566_v32 }
 0x10d   :  { %v564_v34 = vsel %vm556_vm3, %v544_v31, %v560_v33 }
 0x10e   :  { %568 = vst [vmem:[%s1018_s3 + $0x8] sm:$0xff] %v564_v34  ;;  %v598_v36 = vadd.f32 %v564_v34, %v563_v29  ;;  %v608_v37 = vmul.f32 %v564_v34, %v564_v34 }
 0x110   :  { %v599_v39 = vadd.f32 %v598_v36, %v565_v25  ;;  %v611_v40 = vadd.f32 %v608_v37, %v607_v35 }
 0x112   :  { %v600_v42 = vadd.f32 %v599_v39, %v566_v32  ;;  %v612_v43 = vadd.f32 %v611_v40, %v609_v38 }
 0x114   :  { %v601_v44 = vrot.slane %v600_v42, 4  ;;  %v613_v45 = vadd.f32 %v612_v43, %v610_v41 }
 0x116   :  { %v602_v46 = vadd.f32 %v601_v44, %v600_v42  ;;  %v614_v47 = vrot.slane %v613_v45, 4 }
 0x118   :  { %v603_v48 = vrot.slane %v602_v46, 2  ;;  %v615_v49 = vadd.f32 %v614_v47, %v613_v45 }
 0x11a   :  { %v604_v50 = vadd.f32 %v603_v48, %v602_v46  ;;  %v616_v51 = vrot.slane %v615_v49, 2 }
 0x11c   :  { %v605_v52 = vrot.slane %v604_v50, 1  ;;  %v617_v53 = vadd.f32 %v616_v51, %v615_v49 }
 0x11e   :  { %v618_v54 = vrot.slane %v617_v53, 1  ;;  %v606_v55 = vadd.f32 %v605_v52, %v604_v50 }
 0x120   :  { %v619_v56 = vadd.f32 %v618_v54, %v617_v53 }
 0x122   :  { %v621_v57 = vsel %vm620_vm4, %v606_v55, %v619_v56 }
 0x123   :  { %622 = vst [vmem:[%s1019_s4] sm:$0x3] %v621_v57 }

// kernel: encdec_forward.19
= control target key start
LH: loop header
LB: loop body
LE: loop exit
PB: predicated region body
PF: predicated region fallthrough
CT: control target
= control target key end

     0   :  { %s1311_s1 = inlined_call_operand.vmem [shape: bf16[384,128], index: 1, kind: input, shape index: {}]   ;;  %s1312_s0 = inlined_call_operand.vmem [shape: bf16[128,384], index: 0, kind: input, shape index: {}]   ;;  %s1313_s2 = inlined_call_operand.vmem [shape: f32[1,128], index: 2, kind: input, shape index: {}]   ;;  %s1314_s3 = inlined_call_operand.vmem [shape: f32[128,128], index: 3, kind: output, shape index: {0}]   ;;  %s1315_s4 = inlined_call_operand.vmem [shape: f32[1,2,128], index: 4, kind: output, shape index: {1}]  }
   0x1   :  { %v963_v0 = vld [vmem:[%s1311_s1 + $0x78] sm:$0xff]   ;;  %v965_v2 = vld [vmem:[%s1311_s1 + $0x70] sm:$0xff]   ;;  %v968_v5 = vld [vmem:[%s1311_s1 + $0x68] sm:$0xff]  }
   0x2   :  { %v964_v1 = vld [vmem:[%s1311_s1 + $0x38] sm:$0xff]   ;;  %851 = vmatprep.subr.bf16.mxu0 %v963_v0  ;;  %v967_v4 = vld [vmem:[%s1311_s1 + $0x30] sm:$0xff]   ;;  %v970_v7 = vld [vmem:[%s1311_s1 + $0x28] sm:$0xff]  }
   0x3   :  { %852 = vmatpush3.bf16.msra.mxu0 %v964_v1  ;;  %v966_v3 = vld [vmem:[%s1311_s1 + $0xb8] sm:$0xff]   ;;  %v969_v6 = vld [vmem:[%s1311_s1 + $0xb0] sm:$0xff]   ;;  %v971_v8 = vld [vmem:[%s1311_s1 + $0x60] sm:$0xff]  }
   0x4   :  { %853 = vmatprep.subr.bf16.mxu0 %v965_v2  ;;  %931 = vmatprep.subr.bf16.mxu1 %v966_v3  ;;  %v972_v9 = vld [vmem:[%s1311_s1 + $0xa8] sm:$0xff]   ;;  %v973_v10 = vld [vmem:[%s1311_s1 + $0x20] sm:$0xff]   ;;  %v974_v11 = vld [vmem:[%s1311_s1 + $0x58] sm:$0xff]  }
   0x5   :  { %932 = vmatpush3.bf16.msra.mxu1 %v966_v3  ;;  %v975_v12 = vld [vmem:[%s1311_s1 + $0xa0] sm:$0xff]   ;;  %v976_v13 = vld [vmem:[%s1311_s1 + $0x18] sm:$0xff]   ;;  %v977_v15 = vld [vmem:[%s1311_s1 + $0x50] sm:$0xff]  }
   0x6   :  { %933 = vmatprep.subr.bf16.mxu1 %v969_v6  ;;  %v978_v14 = vld [vmem:[%s1311_s1 + $0x98] sm:$0xff]   ;;  %v979_v16 = vld [vmem:[%s1311_s1 + $0x10] sm:$0xff]   ;;  %v980_v18 = vld [vmem:[%s1311_s1 + $0x48] sm:$0xff]  }
   0x7   :  { %854 = vmatpush3.bf16.msra.mxu0 %v967_v4  ;;  %v981_v17 = vld [vmem:[%s1311_s1 + $0x90] sm:$0xff]   ;;  %v982_v19 = vld [vmem:[%s1311_s1 + $0x8] sm:$0xff]   ;;  %v983_v20 = vld [vmem:[%s1311_s1 + $0x40] sm:$0xff]  }
   0x8   :  { %855 = vmatprep.subr.bf16.mxu0 %v968_v5  ;;  %v984_v21 = vld [vmem:[%s1311_s1 + $0x88] sm:$0xff]   ;;  %v988_v22 = vld [vmem:[%s1312_s0 + $0x4] ss:$12 sps:$4 sm:$0xff]   ;;  %v995_v31 = vld [vmem:[%s1312_s0 + $0x34] ss:$12 sps:$4 sm:$0xff]  }
   0x9   :  { %934 = vmatpush3.bf16.msra.mxu1 %v969_v6  ;;  %v985_v23 = vld [vmem:[%s1311_s1] sm:$0xff]   ;;  %408 = vmatprep.mubr.bf16.mxu0 %v988_v22  ;;  %v990_v24 = vld [vmem:[%s1312_s0 + $0x8] ss:$12 sps:$4 sm:$0xff]   ;;  %v999_v32 = vld [vmem:[%s1312_s0 + $0x50] ss:$12 sps:$4 sm:$0xff]  }
   0xa   :  { %935 = vmatprep.subr.bf16.mxu1 %v972_v9  ;;  %v989_v25 = vld [vmem:[%s1311_s1 + $0x80] sm:$0xff]   ;;  %947 = vmatprep.mubr.bf16.mxu1 %v990_v24  ;;  %v992_v27 = vld [vmem:[%s1312_s0 + $0x1c] ss:$12 sps:$4 sm:$0xff]   ;;  %v1000_v35 = vld [vmem:[%s1312_s0 + $0x4c] ss:$12 sps:$4 sm:$0xff]  }
   0xb   :  { %856 = vmatpush3.bf16.msra.mxu0 %v970_v7  ;;  %v986_v26 = vld [vmem:[%s1312_s0] ss:$12 sps:$4 sm:$0xff]   ;;  %v998_v29 = vld [vmem:[%s1312_s0 + $0x38] ss:$12 sps:$4 sm:$0xff]   ;;  %v1006_v33 = vld [vmem:[%s1312_s0 + $0x68] ss:$12 sps:$4 sm:$0xff]  }
   0xc   :  { %857 = vmatprep.subr.bf16.mxu0 %v971_v8  ;;  %v991_v28 = vld [vmem:[%s1312_s0 + $0x20] ss:$12 sps:$4 sm:$0xff]   ;;  %v994_v30 = vld [vmem:[%s1312_s0 + $0x18] ss:$12 sps:$4 sm:$0xff]   ;;  %v997_v34 = vld [vmem:[%s1312_s0 + $0x30] ss:$12 sps:$4 sm:$0xff]  }
   0xd   :  { %936 = vmatpush3.bf16.msra.mxu1 %v972_v9  ;;  %v1007_v36 = vld [vmem:[%s1312_s0 + $0x80] ss:$12 sps:$4 sm:$0xff]   ;;  %v1014_v37 = vld [vmem:[%s1312_s0 + $0x98] ss:$12 sps:$4 sm:$0xff]   ;;  %v1002_v38 = vld [vmem:[%s1312_s0 + $0x48] ss:$12 sps:$4 sm:$0xff]  }
   0xe   :  { %937 = vmatprep.subr.bf16.mxu1 %v975_v12  ;;  %v1003_v39 = vld [vmem:[%s1312_s0 + $0x64] ss:$12 sps:$4 sm:$0xff]   ;;  %v1005_v41 = vld [vmem:[%s1312_s0 + $0x60] ss:$12 sps:$4 sm:$0xff]   ;;  %v1008_v42 = vld [vmem:[%s1312_s0 + $0x7c] ss:$12 sps:$4 sm:$0xff]  }
   0xf   :  { %858 = vmatpush3.bf16.msra.mxu0 %v973_v10  ;;  %v1015_v40 = vld [vmem:[%s1312_s0 + $0xb0] ss:$12 sps:$4 sm:$0xff]   ;;  %v1010_v43 = vld [vmem:[%s1312_s0 + $0x78] ss:$12 sps:$4 sm:$0xff]   ;;  %v1011_v44 = vld [vmem:[%s1312_s0 + $0x94] ss:$12 sps:$4 sm:$0xff]  }
  0x10   :  { %859 = vmatprep.subr.bf16.mxu0 %v974_v11  ;;  %v1013_v45 = vld [vmem:[%s1312_s0 + $0x90] ss:$12 sps:$4 sm:$0xff]   ;;  %v1016_v46 = vld [vmem:[%s1312_s0 + $0xac] ss:$12 sps:$4 sm:$0xff]   ;;  %v1018_v47 = vld [vmem:[%s1312_s0 + $0xa8] ss:$12 sps:$4 sm:$0xff]  }
  0x11   :  { %938 = vmatpush3.bf16.msra.mxu1 %v975_v12  ;;  %v1191_v50 = vld [vmem:[%s1313_s2] ss:$0 sm:$0xff] }
  0x12   :  { %939 = vmatprep.subr.bf16.mxu1 %v978_v14 }
  0x13   :  { %860 = vmatpush3.bf16.msra.mxu0 %v976_v13 }
  0x14   :  { %861 = vmatprep.subr.bf16.mxu0 %v977_v15 }
  0x15   :  { %940 = vmatpush3.bf16.msra.mxu1 %v978_v14 }
  0x16   :  { %941 = vmatprep.subr.bf16.mxu1 %v981_v17 }
  0x17   :  { %862 = vmatpush3.bf16.msra.mxu0 %v979_v16 }
  0x18   :  { %863 = vmatprep.subr.bf16.mxu0 %v980_v18 }
  0x19   :  { %942 = vmatpush3.bf16.msra.mxu1 %v981_v17 }
  0x1a   :  { %943 = vmatprep.subr.bf16.mxu1 %v984_v21 }
  0x1b   :  { %864 = vmatpush3.bf16.msra.mxu0 %v982_v19 }
  0x1c   :  { %865 = vmatprep.subr.bf16.mxu0 %v983_v20 }
  0x1d   :  { %944 = vmatpush3.bf16.msra.mxu1 %v984_v21 }
  0x1e   :  { %945 = vmatprep.subr.bf16.mxu1 %v989_v25 }
  0x1f   :  { %866 = vmatpush3.bf16.msra.mxu0 %v985_v23 }
  0x21   :  { %946 = vmatpush3.bf16.msra.mxu1 %v989_v25 }
  0x22   :  { %409 = vmatmul.mubr.bf16.vlgmr.msra.gmra.mxu0 %v986_v26 }
  0x23   :  { %416 = vmatprep.mubr.bf16.mxu0 %v992_v27 }
  0x24   :  { %948 = vmatmul.mubr.bf16.vlgmr.msra.gmra.mxu1 %v991_v28 }
  0x25   :  { %951 = vmatprep.mubr.bf16.mxu1 %v998_v29 }
  0x2a   :  { %417 = vmatmul.mubr.bf16.gmra.mxu0 %v994_v30 }
  0x2b   :  { %424 = vmatprep.mubr.bf16.mxu0 %v995_v31 }
  0x2c   :  { %952 = vmatmul.mubr.bf16.gmra.mxu1 %v999_v32 }
  0x2d   :  { %955 = vmatprep.mubr.bf16.mxu1 %v1006_v33 }
  0x32   :  { %425 = vmatmul.mubr.bf16.gmra.mxu0 %v997_v34 }
  0x33   :  { %432 = vmatprep.mubr.bf16.mxu0 %v1000_v35 }
  0x34   :  { %956 = vmatmul.mubr.bf16.gmra.mxu1 %v1007_v36 }
  0x35   :  { %959 = vmatprep.mubr.bf16.mxu1 %v1014_v37 }
  0x3a   :  { %433 = vmatmul.mubr.bf16.gmra.mxu0 %v1002_v38 }
  0x3b   :  { %440 = vmatprep.mubr.bf16.mxu0 %v1003_v39 }
  0x3c   :  { %960 = vmatmul.mubr.bf16.gmra.mxu1 %v1015_v40 }
  0x42   :  { %441 = vmatmul.mubr.bf16.gmra.mxu0 %v1005_v41 }
  0x43   :  { %448 = vmatprep.mubr.bf16.mxu0 %v1008_v42 }
  0x4a   :  { %449 = vmatmul.mubr.bf16.gmra.mxu0 %v1010_v43 }
  0x4b   :  { %456 = vmatprep.mubr.bf16.mxu0 %v1011_v44 }
  0x52   :  { %457 = vmatmul.mubr.bf16.gmra.mxu0 %v1013_v45 }
  0x53   :  { %464 = vmatprep.mubr.bf16.mxu0 %v1016_v46 }
  0x5a   :  { %465 = vmatmul.mubr.bf16.gmra.mxu0 %v1018_v47 }
  0xe2   :  { %v867_v48 = vpop.f32.mrf.mxu0 }
  0xe4   :  { %v868_v49 = vpop.f32.mrf.mxu0  ;;  %v949_v52 = vpop.f32.mrf.mxu1 }
  0xe5   :  { %v869_v51 = vadd.f32 %v868_v49, %v867_v48 }
  0xe6   :  { %v870_v53 = vpop.f32.mrf.mxu0  ;;  %v507_v55 = vpop.f32.mrf.mxu1 }
  0xe7   :  { %v411_v54 = vadd.f32 %v869_v51, %v1191_v50 }
  0xe8   :  { %v871_v56 = vpop.f32.mrf.mxu0  ;;  %v950_v59 = vpop.f32.mrf.mxu1 }
  0xe9   :  { %v872_v57 = vadd.f32 %v871_v56, %v870_v53  ;;  %v508_v58 = vadd.f32 %v507_v55, %v411_v54 }
  0xea   :  { %v873_v60 = vpop.f32.mrf.mxu0  ;;  %v510_v63 = vpop.f32.mrf.mxu1 }
  0xeb   :  { %vm570_vm0 = vcmp.ge.f32.partialorder %v508_v58, 0.0  ;;  %v586_v61 = vmul.f32 0.01, %v508_v58  ;;  %v414_v62 = vadd.f32 %v872_v57, %v1191_v50 }
  0xec   :  { %v874_v0 = vpop.f32.mrf.mxu0  ;;  %v953_v5 = vpop.f32.mrf.mxu1 }
  0xed   :  { %v1195_v1 = vsel %vm570_vm0, %v508_v58, %v586_v61  ;;  %v875_v2 = vadd.f32 %v874_v0, %v873_v60  ;;  %v511_v3 = vadd.f32 %v510_v63, %v414_v62  ;;  %vm791_vm0 = vcmask 1040384  }
  0xee   :  { %618 = vst [vmem:[%s1314_s3] sm:$0xff] %v1195_v1  ;;  %v876_v4 = vpop.f32.mrf.mxu0  ;;  %v523_v13 = vpop.f32.mrf.mxu1 }
  0xef   :  { %v419_v6 = vadd.f32 %v875_v2, %v1191_v50  ;;  %vm571_vm1 = vcmp.ge.f32.partialorder %v511_v3, 0.0  ;;  %v587_v7 = vmul.f32 0.01, %v511_v3 }
  0xf0   :  { %v877_v8 = vpop.f32.mrf.mxu0  ;;  %v954_v21 = vpop.f32.mrf.mxu1 }
  0xf1   :  { %v516_v9 = vadd.f32 %v949_v52, %v419_v6  ;;  %v1202_v10 = vsel %vm571_vm1, %v511_v3, %v587_v7  ;;  %v878_v11 = vadd.f32 %v877_v8, %v876_v4  ;;  %v754_v7 = vmul.f32 %v1195_v1, %v1195_v1 }
  0xf2   :  { %619 = vst [vmem:[%s1314_s3 + $0x8] sm:$0xff] %v1202_v10  ;;  %v879_v12 = vpop.f32.mrf.mxu0  ;;  %v526_v29 = vpop.f32.mrf.mxu1  ;;  %v755_v2 = vmul.f32 %v1202_v10, %v1202_v10 }
  0xf3   :  { %vm572_vm2 = vcmp.ge.f32.partialorder %v516_v9, 0.0  ;;  %v588_v14 = vmul.f32 0.01, %v516_v9  ;;  %v422_v15 = vadd.f32 %v878_v11, %v1191_v50 }
  0xf4   :  { %v880_v16 = vpop.f32.mrf.mxu0  ;;  %v957_v37 = vpop.f32.mrf.mxu1 }
  0xf5   :  { %v1209_v17 = vsel %vm572_vm2, %v516_v9, %v588_v14  ;;  %v519_v18 = vadd.f32 %v950_v59, %v422_v15  ;;  %v881_v19 = vadd.f32 %v880_v16, %v879_v12  ;;  %v733_v9 = vadd.f32 %v1202_v10, %v1195_v1 }
  0xf6   :  { %620 = vst [vmem:[%s1314_s3 + $0x10] sm:$0xff] %v1209_v17  ;;  %v882_v20 = vpop.f32.mrf.mxu0  ;;  %v539_v45 = vpop.f32.mrf.mxu1  ;;  %v756_v8 = vmul.f32 %v1209_v17, %v1209_v17  ;;  %v770_v15 = vadd.f32 %v755_v2, %v754_v7 }
  0xf7   :  { %vm573_vm3 = vcmp.ge.f32.partialorder %v519_v18, 0.0  ;;  %v589_v22 = vmul.f32 0.01, %v519_v18  ;;  %v427_v23 = vadd.f32 %v881_v19, %v1191_v50  ;;  %v734_v14 = vadd.f32 %v733_v9, %v1209_v17 }
  0xf8   :  { %v883_v24 = vpop.f32.mrf.mxu0  ;;  %v958_v54 = vpop.f32.mrf.mxu1 }
  0xf9   :  { %v1216_v25 = vsel %vm573_vm3, %v519_v18, %v589_v22  ;;  %v884_v26 = vadd.f32 %v883_v24, %v882_v20  ;;  %v524_v27 = vadd.f32 %v523_v13, %v427_v23 }
  0xfa   :  { %621 = vst [vmem:[%s1314_s3 + $0x18] sm:$0xff] %v1216_v25  ;;  %v885_v28 = vpop.f32.mrf.mxu0  ;;  %v542_v62 = vpop.f32.mrf.mxu1  ;;  %v757_v16 = vmul.f32 %v1216_v25, %v1216_v25  ;;  %v735_v22 = vadd.f32 %v734_v14, %v1216_v25 }
  0xfb   :  { %vm574_vm4 = vcmp.ge.f32.partialorder %v524_v27, 0.0  ;;  %v590_v30 = vmul.f32 0.01, %v524_v27  ;;  %v430_v31 = vadd.f32 %v884_v26, %v1191_v50 }
  0xfc   :  { %v886_v32 = vpop.f32.mrf.mxu0  ;;  %v1266_v19 = vpop.f32.mrf.mxu1 }
  0xfd   :  { %v1223_v33 = vsel %vm574_vm4, %v524_v27, %v590_v30  ;;  %v887_v34 = vadd.f32 %v886_v32, %v885_v28  ;;  %v527_v35 = vadd.f32 %v526_v29, %v430_v31 }
  0xfe   :  { %622 = vst [vmem:[%s1314_s3 + $0x20] sm:$0xff] %v1223_v33  ;;  %v888_v36 = vpop.f32.mrf.mxu0  ;;  %v758_v23 = vmul.f32 %v1223_v33, %v1223_v33  ;;  %v736_v27 = vadd.f32 %v735_v22, %v1223_v33  ;;  %v555_v25 = vpop.f32.mrf.mxu1 }
  0xff   :  { %v435_v38 = vadd.f32 %v887_v34, %v1191_v50  ;;  %vm575_vm5 = vcmp.ge.f32.partialorder %v527_v35, 0.0  ;;  %v591_v39 = vmul.f32 0.01, %v527_v35 }
 0x100   :  { %v889_v40 = vpop.f32.mrf.mxu0 }
 0x101   :  { %v532_v41 = vadd.f32 %v953_v5, %v435_v38  ;;  %v1230_v42 = vsel %vm575_vm5, %v527_v35, %v591_v39  ;;  %v890_v43 = vadd.f32 %v889_v40, %v888_v36 }
 0x102   :  { %623 = vst [vmem:[%s1314_s3 + $0x28] sm:$0xff] %v1230_v42  ;;  %v891_v44 = vpop.f32.mrf.mxu0  ;;  %v759_v29 = vmul.f32 %v1230_v42, %v1230_v42 }
 0x103   :  { %vm576_vm6 = vcmp.ge.f32.partialorder %v532_v41, 0.0  ;;  %v592_v46 = vmul.f32 0.01, %v532_v41  ;;  %v438_v47 = vadd.f32 %v890_v43, %v1191_v50 }
 0x104   :  { %v892_v48 = vpop.f32.mrf.mxu0 }
 0x105   :  { %v1237_v49 = vsel %vm576_vm6, %v532_v41, %v592_v46  ;;  %v535_v51 = vadd.f32 %v954_v21, %v438_v47  ;;  %v893_v52 = vadd.f32 %v892_v48, %v891_v44  ;;  %v771_v21 = vadd.f32 %v770_v15, %v756_v8 }
 0x106   :  { %624 = vst [vmem:[%s1314_s3 + $0x30] sm:$0xff] %v1237_v49  ;;  %v894_v53 = vpop.f32.mrf.mxu0  ;;  %v760_v36 = vmul.f32 %v1237_v49, %v1237_v49 }
 0x107   :  { %vm577_vm7 = vcmp.ge.f32.partialorder %v535_v51, 0.0  ;;  %v593_v55 = vmul.f32 0.01, %v535_v51  ;;  %v443_v56 = vadd.f32 %v893_v52, %v1191_v50  ;;  %v772_v28 = vadd.f32 %v771_v21, %v757_v16 }
 0x108   :  { %v895_v57 = vpop.f32.mrf.mxu0 }
 0x109   :  { %v1244_v58 = vsel %vm577_vm7, %v535_v51, %v593_v55  ;;  %v896_v59 = vadd.f32 %v895_v57, %v894_v53  ;;  %v540_v60 = vadd.f32 %v539_v45, %v443_v56  ;;  %v773_v35 = vadd.f32 %v772_v28, %v758_v23  ;;  %v962_v45 = vpop.f32.mrf.mxu1 }
 0x10a   :  { %625 = vst [vmem:[%s1314_s3 + $0x38] sm:$0xff] %v1244_v58  ;;  %v897_v61 = vpop.f32.mrf.mxu0  ;;  %v761_v43 = vmul.f32 %v1244_v58, %v1244_v58 }
 0x10b   :  { %vm578_vm8 = vcmp.ge.f32.partialorder %v540_v60, 0.0  ;;  %v594_v63 = vmul.f32 0.01, %v540_v60  ;;  %v446_v0 = vadd.f32 %v896_v59, %v1191_v50  ;;  %v774_v41 = vadd.f32 %v773_v35, %v759_v29  ;;  %v558_v59 = vpop.f32.mrf.mxu1 }
 0x10c   :  { %v898_v3 = vpop.f32.mrf.mxu0 }
 0x10d   :  { %v610_v4 = vsel %vm578_vm8, %v540_v60, %v594_v63  ;;  %v899_v5 = vadd.f32 %v898_v3, %v897_v61  ;;  %v543_v6 = vadd.f32 %v542_v62, %v446_v0  ;;  %v775_v48 = vadd.f32 %v774_v41, %v760_v36 }
 0x10e   :  { %626 = vst [vmem:[%s1314_s3 + $0x40] sm:$0xff] %v610_v4  ;;  %v900_v11 = vpop.f32.mrf.mxu0  ;;  %v762_v52 = vmul.f32 %v610_v4, %v610_v4 }
 0x10f   :  { %v451_v12 = vadd.f32 %v899_v5, %v1191_v50  ;;  %vm579_vm9 = vcmp.ge.f32.partialorder %v543_v6, 0.0  ;;  %v595_v13 = vmul.f32 0.01, %v543_v6  ;;  %v776_v56 = vadd.f32 %v775_v48, %v761_v43 }
 0x110   :  { %v901_v18 = vpop.f32.mrf.mxu0 }
 0x111   :  { %v548_v20 = vadd.f32 %v957_v37, %v451_v12  ;;  %v611_v1 = vsel %vm579_vm9, %v543_v6, %v595_v13  ;;  %v902_v10 = vadd.f32 %v901_v18, %v900_v11  ;;  %v737_v37 = vadd.f32 %v736_v27, %v1230_v42 }
 0x112   :  { %627 = vst [vmem:[%s1314_s3 + $0x48] sm:$0xff] %v611_v1  ;;  %v903_v17 = vpop.f32.mrf.mxu0  ;;  %v763_v57 = vmul.f32 %v611_v1, %v611_v1  ;;  %v777_v0 = vadd.f32 %v776_v56, %v762_v52 }
 0x113   :  { %vm580_vm10 = vcmp.ge.f32.partialorder %v548_v20, 0.0  ;;  %v596_v24 = vmul.f32 0.01, %v548_v20  ;;  %v454_v26 = vadd.f32 %v902_v10, %v1191_v50  ;;  %v738_v40 = vadd.f32 %v737_v37, %v1237_v49 }
 0x114   :  { %v904_v30 = vpop.f32.mrf.mxu0  ;;  %v778_v7 = vadd.f32 %v777_v0, %v763_v57 }
 0x115   :  { %v612_v31 = vsel %vm580_vm10, %v548_v20, %v596_v24  ;;  %v551_v32 = vadd.f32 %v958_v54, %v454_v26  ;;  %v905_v34 = vadd.f32 %v904_v30, %v903_v17  ;;  %v739_v51 = vadd.f32 %v738_v40, %v1244_v58 }
 0x116   :  { %628 = vst [vmem:[%s1314_s3 + $0x50] sm:$0xff] %v612_v31  ;;  %v906_v33 = vpop.f32.mrf.mxu0  ;;  %v764_v58 = vmul.f32 %v612_v31, %v612_v31 }
 0x117   :  { %vm581_vm11 = vcmp.ge.f32.partialorder %v551_v32, 0.0  ;;  %v597_v38 = vmul.f32 0.01, %v551_v32  ;;  %v459_v39 = vadd.f32 %v905_v34, %v1191_v50  ;;  %v740_v55 = vadd.f32 %v739_v51, %v610_v4 }
 0x118   :  { %v907_v44 = vpop.f32.mrf.mxu0  ;;  %v779_v14 = vadd.f32 %v778_v7, %v764_v58 }
 0x119   :  { %v613_v46 = vsel %vm581_vm11, %v551_v32, %v597_v38  ;;  %v556_v47 = vadd.f32 %v555_v25, %v459_v39  ;;  %v908_v42 = vadd.f32 %v907_v44, %v906_v33  ;;  %v741_v2 = vadd.f32 %v740_v55, %v611_v1 }
 0x11a   :  { %629 = vst [vmem:[%s1314_s3 + $0x58] sm:$0xff] %v613_v46  ;;  %v909_v53 = vpop.f32.mrf.mxu0  ;;  %v765_v8 = vmul.f32 %v613_v46, %v613_v46 }
 0x11b   :  { %vm582_vm12 = vcmp.ge.f32.partialorder %v556_v47, 0.0  ;;  %v598_v49 = vmul.f32 0.01, %v556_v47  ;;  %v462_v54 = vadd.f32 %v908_v42, %v1191_v50  ;;  %v742_v4 = vadd.f32 %v741_v2, %v612_v31 }
 0x11c   :  { %v910_v60 = vpop.f32.mrf.mxu0  ;;  %v780_v10 = vadd.f32 %v779_v14, %v765_v8 }
 0x11d   :  { %v614_v61 = vsel %vm582_vm12, %v556_v47, %v598_v49  ;;  %v559_v62 = vadd.f32 %v558_v59, %v462_v54  ;;  %v911_v63 = vadd.f32 %v910_v60, %v909_v53  ;;  %v743_v15 = vadd.f32 %v742_v4, %v613_v46 }
 0x11e   :  { %630 = vst [vmem:[%s1314_s3 + $0x60] sm:$0xff] %v614_v61  ;;  %v912_v3 = vpop.f32.mrf.mxu0  ;;  %v766_v16 = vmul.f32 %v614_v61, %v614_v61 }
 0x11f   :  { %vm583_vm13 = vcmp.ge.f32.partialorder %v559_v62, 0.0  ;;  %v599_v5 = vmul.f32 0.01, %v559_v62  ;;  %v467_v6 = vadd.f32 %v911_v63, %v1191_v50  ;;  %v744_v1 = vadd.f32 %v743_v15, %v614_v61 }
 0x120   :  { %v913_v9 = vpop.f32.mrf.mxu0  ;;  %v781_v17 = vadd.f32 %v780_v10, %v766_v16 }
 0x121   :  { %v615_v11 = vsel %vm583_vm13, %v559_v62, %v599_v5  ;;  %v564_v12 = vadd.f32 %v1266_v19, %v467_v6  ;;  %v914_v13 = vadd.f32 %v913_v9, %v912_v3 }
 0x122   :  { %631 = vst [vmem:[%s1314_s3 + $0x68] sm:$0xff] %v615_v11  ;;  %v767_v21 = vmul.f32 %v615_v11, %v615_v11  ;;  %v745_v24 = vadd.f32 %v744_v1, %v615_v11 }
 0x123   :  { %vm584_vm14 = vcmp.ge.f32.partialorder %v564_v12, 0.0  ;;  %v600_v18 = vmul.f32 0.01, %v564_v12  ;;  %v470_v20 = vadd.f32 %v914_v13, %v1191_v50 }
 0x124   :  { %v782_v27 = vadd.f32 %v781_v17, %v767_v21 }
 0x125   :  { %v616_v22 = vsel %vm584_vm14, %v564_v12, %v600_v18  ;;  %v567_v23 = vadd.f32 %v962_v45, %v470_v20 }
 0x126   :  { %632 = vst [vmem:[%s1314_s3 + $0x70] sm:$0xff] %v616_v22  ;;  %v768_v19 = vmul.f32 %v616_v22, %v616_v22  ;;  %v746_v28 = vadd.f32 %v745_v24, %v616_v22 }
 0x127   :  { %vm585_vm15 = vcmp.ge.f32.partialorder %v567_v23, 0.0  ;;  %v601_v26 = vmul.f32 0.01, %v567_v23 }
 0x128   :  { %v783_v30 = vadd.f32 %v782_v27, %v768_v19 }
 0x129   :  { %v617_v29 = vsel %vm585_vm15, %v567_v23, %v601_v26 }
 0x12a   :  { %633 = vst [vmem:[%s1314_s3 + $0x78] sm:$0xff] %v617_v29  ;;  %v747_v50 = vadd.f32 %v746_v28, %v617_v29  ;;  %v769_v25 = vmul.f32 %v617_v29, %v617_v29 }
 0x12c   :  { %v748_v31 = vrot.slane %v747_v50, 4  ;;  %v784_v32 = vadd.f32 %v783_v30, %v769_v25 }
 0x12e   :  { %v749_v34 = vadd.f32 %v748_v31, %v747_v50  ;;  %v785_v35 = vrot.slane %v784_v32, 4 }
 0x130   :  { %v750_v36 = vrot.slane %v749_v34, 2  ;;  %v786_v37 = vadd.f32 %v785_v35, %v784_v32 }
 0x132   :  { %v751_v33 = vadd.f32 %v750_v36, %v749_v34  ;;  %v787_v38 = vrot.slane %v786_v37, 2 }
 0x134   :  { %v752_v39 = vrot.slane %v751_v33, 1  ;;  %v788_v40 = vadd.f32 %v787_v38, %v786_v37 }
 0x136   :  { %v789_v41 = vrot.slane %v788_v40, 1  ;;  %v753_v43 = vadd.f32 %v752_v39, %v751_v33 }
 0x138   :  { %v790_v44 = vadd.f32 %v789_v41, %v788_v40 }
 0x13a   :  { %v792_v45 = vsel %vm791_vm0, %v753_v43, %v790_v44 }
 0x13b   :  { %793 = vst [vmem:[%s1315_s4] sm:$0x3] %v792_v45 }

// kernel: encdec_forward.21
= control target key start
LH: loop header
LB: loop body
LE: loop exit
PB: predicated region body
PF: predicated region fallthrough
CT: control target
= control target key end

     0   :  { %v1944_v1 = vmov 0   ;;  %s2850_s0 = inlined_call_operand.vmem [shape: bf16[512,256], index: 0, kind: input, shape index: {}]   ;;  %s2851_s1 = inlined_call_operand.vmem [shape: bf16[256,128], index: 1, kind: input, shape index: {}]   ;;  %s2852_s2 = inlined_call_operand.vmem [shape: f32[1,128], index: 2, kind: input, shape index: {}]   ;;  %s2853_s3 = inlined_call_operand.vmem [shape: f32[512,128], index: 3, kind: output, shape index: {0}]   ;;  %s2854_s4 = inlined_call_operand.hbm [shape: f32[1,2,128], index: 4, kind: output, shape index: {1}]  }
   0x1   :  { %v1807_v0 = vld [vmem:[%s2851_s1 + $0x38] sm:$0xff]   ;;  %537 = vmatprep.subr.bf16.mxu0 %v1944_v1  ;;  %1773 = vmatprep.subr.bf16.mxu1 %v1944_v1  ;;  %v1808_v2 = vld [vmem:[%s2851_s1 + $0x30] sm:$0xff]   ;;  %v1809_v3 = vld [vmem:[%s2851_s1 + $0x28] sm:$0xff]  }
   0x2   :  { %538 = vmatpush1.bf16.msra.mxu0 %v1807_v0  ;;  %1789 = vmatpush1.bf16.msra.mxu1 %v1807_v0  ;;  %v1810_v4 = vld [vmem:[%s2851_s1 + $0x20] sm:$0xff]   ;;  %v1811_v5 = vld [vmem:[%s2851_s1 + $0x18] sm:$0xff]   ;;  %v1812_v7 = vld [vmem:[%s2851_s1 + $0x10] sm:$0xff]  }
   0x3   :  { %539 = vmatprep.subr.bf16.mxu0 %v1944_v1  ;;  %1774 = vmatprep.subr.bf16.mxu1 %v1944_v1  ;;  %v1825_v6 = vld [vmem:[%s2850_s0 + $0x4] ss:$8 sps:$4 sm:$0xff]   ;;  %v1815_v11 = vld [vmem:[%s2851_s1 + $0x78] sm:$0xff]   ;;  %v1816_v12 = vld [vmem:[%s2851_s1 + $0x70] sm:$0xff]  }
   0x4   :  { %569 = vmatprep.mubr.bf16.mxu0 %v1825_v6  ;;  %v1813_v8 = vld [vmem:[%s2851_s1 + $0x8] sm:$0xff]   ;;  %v1814_v9 = vld [vmem:[%s2851_s1] sm:$0xff]   ;;  %v1819_v15 = vld [vmem:[%s2851_s1 + $0x58] sm:$0xff]  }
   0x5   :  { %v1849_v10 = vld [vmem:[%s2850_s0 + $0x104] ss:$8 sps:$4 sm:$0xff]   ;;  %v1820_v16 = vld [vmem:[%s2851_s1 + $0x50] sm:$0xff]  }
   0x6   :  { %540 = vmatpush1.bf16.msra.mxu0 %v1808_v2  ;;  %1790 = vmatpush1.bf16.msra.mxu1 %v1808_v2  ;;  %v1817_v13 = vld [vmem:[%s2851_s1 + $0x68] sm:$0xff]   ;;  %v1818_v14 = vld [vmem:[%s2851_s1 + $0x60] sm:$0xff]  }
   0x7   :  { %541 = vmatprep.subr.bf16.mxu0 %v1944_v1  ;;  %1775 = vmatprep.subr.bf16.mxu1 %v1944_v1 }
   0x8   :  { %697 = vmatprep.mubr.bf16.mxu1 %v1849_v10 }
   0xa   :  { %542 = vmatpush1.bf16.msra.mxu0 %v1809_v3  ;;  %1791 = vmatpush1.bf16.msra.mxu1 %v1809_v3 }
   0xb   :  { %543 = vmatprep.subr.bf16.mxu0 %v1944_v1  ;;  %1776 = vmatprep.subr.bf16.mxu1 %v1944_v1 }
   0xe   :  { %544 = vmatpush1.bf16.msra.mxu0 %v1810_v4  ;;  %1792 = vmatpush1.bf16.msra.mxu1 %v1810_v4 }
   0xf   :  { %545 = vmatprep.subr.bf16.mxu0 %v1944_v1  ;;  %1777 = vmatprep.subr.bf16.mxu1 %v1944_v1 }
  0x12   :  { %546 = vmatpush1.bf16.msra.mxu0 %v1811_v5  ;;  %1793 = vmatpush1.bf16.msra.mxu1 %v1811_v5 }
  0x13   :  { %547 = vmatprep.subr.bf16.mxu0 %v1944_v1  ;;  %1778 = vmatprep.subr.bf16.mxu1 %v1944_v1 }
  0x16   :  { %548 = vmatpush1.bf16.msra.mxu0 %v1812_v7  ;;  %1794 = vmatpush1.bf16.msra.mxu1 %v1812_v7 }
  0x17   :  { %549 = vmatprep.subr.bf16.mxu0 %v1944_v1  ;;  %1779 = vmatprep.subr.bf16.mxu1 %v1944_v1 }
  0x1a   :  { %550 = vmatpush1.bf16.msra.mxu0 %v1813_v8  ;;  %1795 = vmatpush1.bf16.msra.mxu1 %v1813_v8 }
  0x1b   :  { %551 = vmatprep.subr.bf16.mxu0 %v1944_v1  ;;  %1780 = vmatprep.subr.bf16.mxu1 %v1944_v1 }
  0x1e   :  { %552 = vmatpush1.bf16.msra.mxu0 %v1814_v9  ;;  %1796 = vmatpush1.bf16.msra.mxu1 %v1814_v9 }
  0x1f   :  { %553 = vmatprep.subr.bf16.mxu0 %v1944_v1  ;;  %1781 = vmatprep.subr.bf16.mxu1 %v1944_v1 }
  0x22   :  { %554 = vmatpush2.bf16.msra.mxu0 %v1815_v11  ;;  %1797 = vmatpush2.bf16.msra.mxu1 %v1815_v11 }
  0x23   :  { %555 = vmatprep.subr.bf16.mxu0 %v1944_v1  ;;  %1782 = vmatprep.subr.bf16.mxu1 %v1944_v1 }
  0x26   :  { %556 = vmatpush2.bf16.msra.mxu0 %v1816_v12  ;;  %1798 = vmatpush2.bf16.msra.mxu1 %v1816_v12 }
  0x27   :  { %557 = vmatprep.subr.bf16.mxu0 %v1944_v1  ;;  %1783 = vmatprep.subr.bf16.mxu1 %v1944_v1 }
  0x2a   :  { %558 = vmatpush2.bf16.msra.mxu0 %v1817_v13  ;;  %1799 = vmatpush2.bf16.msra.mxu1 %v1817_v13 }
  0x2b   :  { %559 = vmatprep.subr.bf16.mxu0 %v1944_v1  ;;  %1784 = vmatprep.subr.bf16.mxu1 %v1944_v1 }
  0x2e   :  { %560 = vmatpush2.bf16.msra.mxu0 %v1818_v14  ;;  %1800 = vmatpush2.bf16.msra.mxu1 %v1818_v14 }
  0x2f   :  { %561 = vmatprep.subr.bf16.mxu0 %v1944_v1  ;;  %1785 = vmatprep.subr.bf16.mxu1 %v1944_v1 }
  0x32   :  { %562 = vmatpush2.bf16.msra.mxu0 %v1819_v15  ;;  %1801 = vmatpush2.bf16.msra.mxu1 %v1819_v15 }
  0x33   :  { %563 = vmatprep.subr.bf16.mxu0 %v1944_v1  ;;  %1786 = vmatprep.subr.bf16.mxu1 %v1944_v1 }
  0x34   :  { %10 = vsyncpa [#allocation3], 0  ;;  %v1821_v17 = vld [vmem:[%s2851_s1 + $0x48] sm:$0xff]   ;;  %v1822_v18 = vld [vmem:[%s2851_s1 + $0x40] sm:$0xff]  }
  0x35   :  { %v1823_v19 = vld [vmem:[%s2850_s0] ss:$8 sps:$4 sm:$0xff]   ;;  %v1826_v21 = vld [vmem:[%s2850_s0 + $0x14] ss:$8 sps:$4 sm:$0xff]   ;;  %v1828_v23 = vld [vmem:[%s2850_s0 + $0x10] ss:$8 sps:$4 sm:$0xff]  }
  0x36   :  { %564 = vmatpush2.bf16.msra.mxu0 %v1820_v16  ;;  %1802 = vmatpush2.bf16.msra.mxu1 %v1820_v16  ;;  %v1847_v20 = vld [vmem:[%s2850_s0 + $0x100] ss:$8 sps:$4 sm:$0xff]   ;;  %v1853_v22 = vld [vmem:[%s2850_s0 + $0x114] ss:$8 sps:$4 sm:$0xff]   ;;  %v1855_v24 = vld [vmem:[%s2850_s0 + $0x110] ss:$8 sps:$4 sm:$0xff]  }
  0x37   :  { %565 = vmatprep.subr.bf16.mxu0 %v1944_v1  ;;  %1787 = vmatprep.subr.bf16.mxu1 %v1944_v1  ;;  %v1829_v25 = vld [vmem:[%s2850_s0 + $0x24] ss:$8 sps:$4 sm:$0xff]   ;;  %v1831_v27 = vld [vmem:[%s2850_s0 + $0x20] ss:$8 sps:$4 sm:$0xff]   ;;  %v1832_v29 = vld [vmem:[%s2850_s0 + $0x34] ss:$8 sps:$4 sm:$0xff]  }
  0x38   :  { %v1859_v26 = vld [vmem:[%s2850_s0 + $0x124] ss:$8 sps:$4 sm:$0xff]   ;;  %v1861_v28 = vld [vmem:[%s2850_s0 + $0x120] ss:$8 sps:$4 sm:$0xff]   ;;  %v1865_v30 = vld [vmem:[%s2850_s0 + $0x134] ss:$8 sps:$4 sm:$0xff]  }
  0x39   :  { %v1834_v31 = vld [vmem:[%s2850_s0 + $0x30] ss:$8 sps:$4 sm:$0xff]   ;;  %v1835_v33 = vld [vmem:[%s2850_s0 + $0x44] ss:$8 sps:$4 sm:$0xff]   ;;  %v1837_v35 = vld [vmem:[%s2850_s0 + $0x40] ss:$8 sps:$4 sm:$0xff]  }
  0x3a   :  { %566 = vmatpush2.bf16.msra.mxu0 %v1821_v17  ;;  %1803 = vmatpush2.bf16.msra.mxu1 %v1821_v17  ;;  %v1867_v32 = vld [vmem:[%s2850_s0 + $0x130] ss:$8 sps:$4 sm:$0xff]   ;;  %v1871_v34 = vld [vmem:[%s2850_s0 + $0x144] ss:$8 sps:$4 sm:$0xff]   ;;  %v1873_v36 = vld [vmem:[%s2850_s0 + $0x140] ss:$8 sps:$4 sm:$0xff]  }
  0x3b   :  { %567 = vmatprep.subr.bf16.mxu0 %v1944_v1  ;;  %1788 = vmatprep.subr.bf16.mxu1 %v1944_v1  ;;  %v1838_v37 = vld [vmem:[%s2850_s0 + $0x54] ss:$8 sps:$4 sm:$0xff]   ;;  %v1840_v39 = vld [vmem:[%s2850_s0 + $0x50] ss:$8 sps:$4 sm:$0xff]   ;;  %v1841_v41 = vld [vmem:[%s2850_s0 + $0x64] ss:$8 sps:$4 sm:$0xff]  }
  0x3c   :  { %v1877_v38 = vld [vmem:[%s2850_s0 + $0x154] ss:$8 sps:$4 sm:$0xff]   ;;  %v1879_v40 = vld [vmem:[%s2850_s0 + $0x150] ss:$8 sps:$4 sm:$0xff]   ;;  %v1883_v42 = vld [vmem:[%s2850_s0 + $0x164] ss:$8 sps:$4 sm:$0xff]  }
  0x3d   :  { %v1843_v43 = vld [vmem:[%s2850_s0 + $0x60] ss:$8 sps:$4 sm:$0xff]   ;;  %v1844_v45 = vld [vmem:[%s2850_s0 + $0x74] ss:$8 sps:$4 sm:$0xff]   ;;  %v1846_v47 = vld [vmem:[%s2850_s0 + $0x70] ss:$8 sps:$4 sm:$0xff]  }
  0x3e   :  { %568 = vmatpush2.bf16.msra.mxu0 %v1822_v18  ;;  %1804 = vmatpush2.bf16.msra.mxu1 %v1822_v18  ;;  %v1885_v44 = vld [vmem:[%s2850_s0 + $0x160] ss:$8 sps:$4 sm:$0xff]   ;;  %v1889_v46 = vld [vmem:[%s2850_s0 + $0x174] ss:$8 sps:$4 sm:$0xff]   ;;  %v1891_v48 = vld [vmem:[%s2850_s0 + $0x170] ss:$8 sps:$4 sm:$0xff]  }
  0x3f   :  { %v1850_v49 = vld [vmem:[%s2850_s0 + $0x84] ss:$8 sps:$4 sm:$0xff]   ;;  %v1852_v51 = vld [vmem:[%s2850_s0 + $0x80] ss:$8 sps:$4 sm:$0xff]   ;;  %v1856_v53 = vld [vmem:[%s2850_s0 + $0x94] ss:$8 sps:$4 sm:$0xff]  }
  0x40   :  { %v1895_v50 = vld [vmem:[%s2850_s0 + $0x184] ss:$8 sps:$4 sm:$0xff]   ;;  %v1897_v52 = vld [vmem:[%s2850_s0 + $0x180] ss:$8 sps:$4 sm:$0xff]   ;;  %v1898_v54 = vld [vmem:[%s2850_s0 + $0x194] ss:$8 sps:$4 sm:$0xff]  }
  0x41   :  { %570 = vmatmul.mubr.bf16.vlgmr.msra.gmra.mxu0 %v1823_v19  ;;  %698 = vmatmul.mubr.bf16.vlgmr.msra.gmra.mxu1 %v1847_v20  ;;  %v1858_v55 = vld [vmem:[%s2850_s0 + $0x90] ss:$8 sps:$4 sm:$0xff]   ;;  %v1862_v57 = vld [vmem:[%s2850_s0 + $0xa4] ss:$8 sps:$4 sm:$0xff]   ;;  %v1864_v59 = vld [vmem:[%s2850_s0 + $0xa0] ss:$8 sps:$4 sm:$0xff]  }
  0x42   :  { %577 = vmatprep.mubr.bf16.mxu0 %v1826_v21  ;;  %705 = vmatprep.mubr.bf16.mxu1 %v1853_v22  ;;  %v1900_v56 = vld [vmem:[%s2850_s0 + $0x190] ss:$8 sps:$4 sm:$0xff]   ;;  %v1901_v58 = vld [vmem:[%s2850_s0 + $0x1a4] ss:$8 sps:$4 sm:$0xff]   ;;  %v1903_v60 = vld [vmem:[%s2850_s0 + $0x1a0] ss:$8 sps:$4 sm:$0xff]  }
  0x43   :  { %v1868_v61 = vld [vmem:[%s2850_s0 + $0xb4] ss:$8 sps:$4 sm:$0xff]   ;;  %v1870_v63 = vld [vmem:[%s2850_s0 + $0xb0] ss:$8 sps:$4 sm:$0xff]   ;;  %v1874_v1 = vld [vmem:[%s2850_s0 + $0xc4] ss:$8 sps:$4 sm:$0xff]  }
  0x44   :  { %v1904_v62 = vld [vmem:[%s2850_s0 + $0x1b4] ss:$8 sps:$4 sm:$0xff]   ;;  %v1906_v0 = vld [vmem:[%s2850_s0 + $0x1b0] ss:$8 sps:$4 sm:$0xff]   ;;  %v1907_v2 = vld [vmem:[%s2850_s0 + $0x1c4] ss:$8 sps:$4 sm:$0xff]  }
  0x45   :  { %v1876_v3 = vld [vmem:[%s2850_s0 + $0xc0] ss:$8 sps:$4 sm:$0xff]   ;;  %v1880_v5 = vld [vmem:[%s2850_s0 + $0xd4] ss:$8 sps:$4 sm:$0xff]   ;;  %v1882_v7 = vld [vmem:[%s2850_s0 + $0xd0] ss:$8 sps:$4 sm:$0xff]  }
  0x46   :  { %v1909_v4 = vld [vmem:[%s2850_s0 + $0x1c0] ss:$8 sps:$4 sm:$0xff]   ;;  %v1910_v6 = vld [vmem:[%s2850_s0 + $0x1d4] ss:$8 sps:$4 sm:$0xff]   ;;  %v1912_v8 = vld [vmem:[%s2850_s0 + $0x1d0] ss:$8 sps:$4 sm:$0xff]  }
  0x47   :  { %v1886_v9 = vld [vmem:[%s2850_s0 + $0xe4] ss:$8 sps:$4 sm:$0xff]   ;;  %v1888_v11 = vld [vmem:[%s2850_s0 + $0xe0] ss:$8 sps:$4 sm:$0xff]   ;;  %v1892_v13 = vld [vmem:[%s2850_s0 + $0xf4] ss:$8 sps:$4 sm:$0xff]  }
  0x48   :  { %v1913_v10 = vld [vmem:[%s2850_s0 + $0x1e4] ss:$8 sps:$4 sm:$0xff]   ;;  %v1915_v12 = vld [vmem:[%s2850_s0 + $0x1e0] ss:$8 sps:$4 sm:$0xff]   ;;  %v1916_v14 = vld [vmem:[%s2850_s0 + $0x1f4] ss:$8 sps:$4 sm:$0xff]  }
  0x49   :  { %578 = vmatmul.mubr.bf16.gmra.mxu0 %v1828_v23  ;;  %706 = vmatmul.mubr.bf16.gmra.mxu1 %v1855_v24  ;;  %v1894_v15 = vld [vmem:[%s2850_s0 + $0xf0] ss:$8 sps:$4 sm:$0xff]   ;;  %v2246_v17 = vld [vmem:[%s2852_s2] ss:$0 sm:$0xff] }
  0x4a   :  { %585 = vmatprep.mubr.bf16.mxu0 %v1829_v25  ;;  %713 = vmatprep.mubr.bf16.mxu1 %v1859_v26  ;;  %v1918_v16 = vld [vmem:[%s2850_s0 + $0x1f0] ss:$8 sps:$4 sm:$0xff]  }
  0x51   :  { %586 = vmatmul.mubr.bf16.gmra.mxu0 %v1831_v27  ;;  %714 = vmatmul.mubr.bf16.gmra.mxu1 %v1861_v28 }
  0x52   :  { %593 = vmatprep.mubr.bf16.mxu0 %v1832_v29  ;;  %721 = vmatprep.mubr.bf16.mxu1 %v1865_v30 }
  0x59   :  { %594 = vmatmul.mubr.bf16.gmra.mxu0 %v1834_v31  ;;  %722 = vmatmul.mubr.bf16.gmra.mxu1 %v1867_v32 }
  0x5a   :  { %601 = vmatprep.mubr.bf16.mxu0 %v1835_v33  ;;  %729 = vmatprep.mubr.bf16.mxu1 %v1871_v34 }
  0x61   :  { %602 = vmatmul.mubr.bf16.gmra.mxu0 %v1837_v35  ;;  %730 = vmatmul.mubr.bf16.gmra.mxu1 %v1873_v36 }
  0x62   :  { %609 = vmatprep.mubr.bf16.mxu0 %v1838_v37  ;;  %737 = vmatprep.mubr.bf16.mxu1 %v1877_v38 }
  0x69   :  { %610 = vmatmul.mubr.bf16.gmra.mxu0 %v1840_v39  ;;  %738 = vmatmul.mubr.bf16.gmra.mxu1 %v1879_v40 }
  0x6a   :  { %617 = vmatprep.mubr.bf16.mxu0 %v1841_v41  ;;  %745 = vmatprep.mubr.bf16.mxu1 %v1883_v42 }
  0x71   :  { %618 = vmatmul.mubr.bf16.gmra.mxu0 %v1843_v43  ;;  %746 = vmatmul.mubr.bf16.gmra.mxu1 %v1885_v44 }
  0x72   :  { %625 = vmatprep.mubr.bf16.mxu0 %v1844_v45  ;;  %753 = vmatprep.mubr.bf16.mxu1 %v1889_v46 }
  0x79   :  { %626 = vmatmul.mubr.bf16.gmra.mxu0 %v1846_v47  ;;  %754 = vmatmul.mubr.bf16.gmra.mxu1 %v1891_v48 }
  0x7a   :  { %633 = vmatprep.mubr.bf16.mxu0 %v1850_v49  ;;  %761 = vmatprep.mubr.bf16.mxu1 %v1895_v50 }
  0x81   :  { %634 = vmatmul.mubr.bf16.gmra.mxu0 %v1852_v51  ;;  %762 = vmatmul.mubr.bf16.gmra.mxu1 %v1897_v52 }
  0x82   :  { %641 = vmatprep.mubr.bf16.mxu0 %v1856_v53  ;;  %769 = vmatprep.mubr.bf16.mxu1 %v1898_v54 }
  0x89   :  { %642 = vmatmul.mubr.bf16.gmra.mxu0 %v1858_v55  ;;  %770 = vmatmul.mubr.bf16.gmra.mxu1 %v1900_v56 }
  0x8a   :  { %649 = vmatprep.mubr.bf16.mxu0 %v1862_v57  ;;  %777 = vmatprep.mubr.bf16.mxu1 %v1901_v58 }
  0x91   :  { %650 = vmatmul.mubr.bf16.gmra.mxu0 %v1864_v59  ;;  %778 = vmatmul.mubr.bf16.gmra.mxu1 %v1903_v60 }
  0x92   :  { %657 = vmatprep.mubr.bf16.mxu0 %v1868_v61  ;;  %785 = vmatprep.mubr.bf16.mxu1 %v1904_v62 }
  0x99   :  { %658 = vmatmul.mubr.bf16.gmra.mxu0 %v1870_v63  ;;  %786 = vmatmul.mubr.bf16.gmra.mxu1 %v1906_v0 }
  0x9a   :  { %665 = vmatprep.mubr.bf16.mxu0 %v1874_v1  ;;  %793 = vmatprep.mubr.bf16.mxu1 %v1907_v2 }
  0xa1   :  { %666 = vmatmul.mubr.bf16.gmra.mxu0 %v1876_v3  ;;  %794 = vmatmul.mubr.bf16.gmra.mxu1 %v1909_v4 }
  0xa2   :  { %673 = vmatprep.mubr.bf16.mxu0 %v1880_v5  ;;  %801 = vmatprep.mubr.bf16.mxu1 %v1910_v6 }
  0xa9   :  { %674 = vmatmul.mubr.bf16.gmra.mxu0 %v1882_v7  ;;  %802 = vmatmul.mubr.bf16.gmra.mxu1 %v1912_v8 }
  0xaa   :  { %681 = vmatprep.mubr.bf16.mxu0 %v1886_v9  ;;  %809 = vmatprep.mubr.bf16.mxu1 %v1913_v10 }
  0xb1   :  { %682 = vmatmul.mubr.bf16.gmra.mxu0 %v1888_v11  ;;  %810 = vmatmul.mubr.bf16.gmra.mxu1 %v1915_v12 }
  0xb2   :  { %689 = vmatprep.mubr.bf16.mxu0 %v1892_v13  ;;  %817 = vmatprep.mubr.bf16.mxu1 %v1916_v14 }
  0xb9   :  { %690 = vmatmul.mubr.bf16.gmra.mxu0 %v1894_v15  ;;  %818 = vmatmul.mubr.bf16.gmra.mxu1 %v1918_v16 }
 0x101   :  { %v571_v18 = vpop.f32.mrf.mxu0  ;;  %v699_v19 = vpop.f32.mrf.mxu1 }
 0x102   :  { %v572_v20 = vadd.f32 %v2246_v17, %v571_v18  ;;  %v700_v21 = vadd.f32 %v2246_v17, %v699_v19 }
 0x103   :  { %v573_v22 = vpop.f32.mrf.mxu0  ;;  %v701_v23 = vpop.f32.mrf.mxu1 }
 0x104   :  { %vm826_vm0 = vcmp.ge.f32.partialorder %v572_v20, 0.0  ;;  %v890_v24 = vmul.f32 0.01, %v572_v20  ;;  %vm858_vm1 = vcmp.ge.f32.partialorder %v700_v21, 0.0  ;;  %v922_v25 = vmul.f32 0.01, %v700_v21 }
 0x105   :  { %v574_v26 = vpop.f32.mrf.mxu0  ;;  %v702_v27 = vpop.f32.mrf.mxu1 }
 0x106   :  { %v2250_v28 = vsel %vm826_vm0, %v572_v20, %v890_v24  ;;  %v575_v29 = vadd.f32 %v2246_v17, %v574_v26  ;;  %v986_v30 = vsel %vm858_vm1, %v700_v21, %v922_v25  ;;  %v703_v31 = vadd.f32 %v2246_v17, %v702_v27 }
 0x107   :  { %1018 = vst [vmem:[%s2853_s3] sm:$0xff] %v2250_v28  ;;  %v576_v32 = vpop.f32.mrf.mxu0  ;;  %1050 = vst [vmem:[%s2853_s3 + $0x100] sm:$0xff] %v986_v30  ;;  %v704_v33 = vpop.f32.mrf.mxu1 }
 0x108   :  { %vm827_vm2 = vcmp.ge.f32.partialorder %v575_v29, 0.0  ;;  %v891_v34 = vmul.f32 0.01, %v575_v29  ;;  %vm859_vm3 = vcmp.ge.f32.partialorder %v703_v31, 0.0  ;;  %v923_v35 = vmul.f32 0.01, %v703_v31 }
 0x109   :  { %v579_v36 = vpop.f32.mrf.mxu0  ;;  %v707_v37 = vpop.f32.mrf.mxu1 }
 0x10a   :  { %v2261_v38 = vsel %vm827_vm2, %v575_v29, %v891_v34  ;;  %v580_v39 = vadd.f32 %v2246_v17, %v579_v36  ;;  %v987_v40 = vsel %vm859_vm3, %v703_v31, %v923_v35  ;;  %v708_v41 = vadd.f32 %v2246_v17, %v707_v37 }
 0x10b   :  { %1019 = vst [vmem:[%s2853_s3 + $0x8] sm:$0xff] %v2261_v38  ;;  %v581_v42 = vpop.f32.mrf.mxu0  ;;  %1051 = vst [vmem:[%s2853_s3 + $0x108] sm:$0xff] %v987_v40  ;;  %v709_v43 = vpop.f32.mrf.mxu1 }
 0x10c   :  { %vm828_vm4 = vcmp.ge.f32.partialorder %v580_v39, 0.0  ;;  %v892_v44 = vmul.f32 0.01, %v580_v39  ;;  %vm860_vm5 = vcmp.ge.f32.partialorder %v708_v41, 0.0  ;;  %v924_v45 = vmul.f32 0.01, %v708_v41 }
 0x10d   :  { %v582_v46 = vpop.f32.mrf.mxu0  ;;  %v710_v47 = vpop.f32.mrf.mxu1 }
 0x10e   :  { %v2272_v48 = vsel %vm828_vm4, %v580_v39, %v892_v44  ;;  %v583_v49 = vadd.f32 %v2246_v17, %v582_v46  ;;  %v2275_v50 = vsel %vm860_vm5, %v708_v41, %v924_v45  ;;  %v711_v51 = vadd.f32 %v2246_v17, %v710_v47 }
 0x10f   :  { %1020 = vst [vmem:[%s2853_s3 + $0x10] sm:$0xff] %v2272_v48  ;;  %v584_v52 = vpop.f32.mrf.mxu0  ;;  %1052 = vst [vmem:[%s2853_s3 + $0x110] sm:$0xff] %v2275_v50  ;;  %v712_v53 = vpop.f32.mrf.mxu1 }
 0x110   :  { %vm829_vm6 = vcmp.ge.f32.partialorder %v583_v49, 0.0  ;;  %v893_v54 = vmul.f32 0.01, %v583_v49  ;;  %vm861_vm7 = vcmp.ge.f32.partialorder %v711_v51, 0.0  ;;  %v925_v55 = vmul.f32 0.01, %v711_v51 }
 0x111   :  { %v587_v56 = vpop.f32.mrf.mxu0  ;;  %v715_v57 = vpop.f32.mrf.mxu1 }
 0x112   :  { %v2286_v58 = vsel %vm829_vm6, %v583_v49, %v893_v54  ;;  %v588_v59 = vadd.f32 %v2246_v17, %v587_v56  ;;  %v2289_v60 = vsel %vm861_vm7, %v711_v51, %v925_v55  ;;  %v716_v61 = vadd.f32 %v2246_v17, %v715_v57 }
 0x113   :  { %1021 = vst [vmem:[%s2853_s3 + $0x18] sm:$0xff] %v2286_v58  ;;  %v589_v62 = vpop.f32.mrf.mxu0  ;;  %1053 = vst [vmem:[%s2853_s3 + $0x118] sm:$0xff] %v2289_v60  ;;  %v717_v63 = vpop.f32.mrf.mxu1 }
 0x114   :  { %vm830_vm8 = vcmp.ge.f32.partialorder %v588_v59, 0.0  ;;  %v894_v0 = vmul.f32 0.01, %v588_v59  ;;  %vm862_vm9 = vcmp.ge.f32.partialorder %v716_v61, 0.0  ;;  %v926_v1 = vmul.f32 0.01, %v716_v61 }
 0x115   :  { %v590_v2 = vpop.f32.mrf.mxu0  ;;  %v718_v3 = vpop.f32.mrf.mxu1 }
 0x116   :  { %v2300_v4 = vsel %vm830_vm8, %v588_v59, %v894_v0  ;;  %v591_v5 = vadd.f32 %v2246_v17, %v590_v2  ;;  %v2303_v6 = vsel %vm862_vm9, %v716_v61, %v926_v1  ;;  %v719_v7 = vadd.f32 %v2246_v17, %v718_v3 }
 0x117   :  { %1022 = vst [vmem:[%s2853_s3 + $0x20] sm:$0xff] %v2300_v4  ;;  %v592_v8 = vpop.f32.mrf.mxu0  ;;  %1054 = vst [vmem:[%s2853_s3 + $0x120] sm:$0xff] %v2303_v6  ;;  %v720_v9 = vpop.f32.mrf.mxu1 }
 0x118   :  { %vm831_vm10 = vcmp.ge.f32.partialorder %v591_v5, 0.0  ;;  %v895_v10 = vmul.f32 0.01, %v591_v5  ;;  %vm863_vm11 = vcmp.ge.f32.partialorder %v719_v7, 0.0  ;;  %v927_v11 = vmul.f32 0.01, %v719_v7 }
 0x119   :  { %v595_v12 = vpop.f32.mrf.mxu0  ;;  %v723_v13 = vpop.f32.mrf.mxu1 }
 0x11a   :  { %v2314_v14 = vsel %vm831_vm10, %v591_v5, %v895_v10  ;;  %v596_v15 = vadd.f32 %v2246_v17, %v595_v12  ;;  %v2317_v16 = vsel %vm863_vm11, %v719_v7, %v927_v11  ;;  %v724_v18 = vadd.f32 %v2246_v17, %v723_v13 }
 0x11b   :  { %1023 = vst [vmem:[%s2853_s3 + $0x28] sm:$0xff] %v2314_v14  ;;  %v597_v19 = vpop.f32.mrf.mxu0  ;;  %1055 = vst [vmem:[%s2853_s3 + $0x128] sm:$0xff] %v2317_v16  ;;  %v725_v20 = vpop.f32.mrf.mxu1 }
 0x11c   :  { %vm832_vm12 = vcmp.ge.f32.partialorder %v596_v15, 0.0  ;;  %v896_v21 = vmul.f32 0.01, %v596_v15  ;;  %vm864_vm13 = vcmp.ge.f32.partialorder %v724_v18, 0.0  ;;  %v928_v22 = vmul.f32 0.01, %v724_v18 }
 0x11d   :  { %v598_v23 = vpop.f32.mrf.mxu0  ;;  %v726_v24 = vpop.f32.mrf.mxu1 }
 0x11e   :  { %v2328_v25 = vsel %vm832_vm12, %v596_v15, %v896_v21  ;;  %v599_v26 = vadd.f32 %v2246_v17, %v598_v23  ;;  %v2331_v27 = vsel %vm864_vm13, %v724_v18, %v928_v22  ;;  %v727_v29 = vadd.f32 %v2246_v17, %v726_v24 }
 0x11f   :  { %1024 = vst [vmem:[%s2853_s3 + $0x30] sm:$0xff] %v2328_v25  ;;  %v600_v30 = vpop.f32.mrf.mxu0  ;;  %1056 = vst [vmem:[%s2853_s3 + $0x130] sm:$0xff] %v2331_v27  ;;  %v728_v31 = vpop.f32.mrf.mxu1 }
 0x120   :  { %vm833_vm14 = vcmp.ge.f32.partialorder %v599_v26, 0.0  ;;  %v897_v32 = vmul.f32 0.01, %v599_v26  ;;  %vm865_vm15 = vcmp.ge.f32.partialorder %v727_v29, 0.0  ;;  %v929_v33 = vmul.f32 0.01, %v727_v29 }
 0x121   :  { %v603_v34 = vpop.f32.mrf.mxu0  ;;  %v731_v35 = vpop.f32.mrf.mxu1 }
 0x122   :  { %v2342_v36 = vsel %vm833_vm14, %v599_v26, %v897_v32  ;;  %v604_v37 = vadd.f32 %v2246_v17, %v603_v34  ;;  %v2345_v39 = vsel %vm865_vm15, %v727_v29, %v929_v33  ;;  %v732_v40 = vadd.f32 %v2246_v17, %v731_v35 }
 0x123   :  { %1025 = vst [vmem:[%s2853_s3 + $0x38] sm:$0xff] %v2342_v36  ;;  %v605_v41 = vpop.f32.mrf.mxu0  ;;  %1057 = vst [vmem:[%s2853_s3 + $0x138] sm:$0xff] %v2345_v39  ;;  %v733_v42 = vpop.f32.mrf.mxu1 }
 0x124   :  { %vm834_vm0 = vcmp.ge.f32.partialorder %v604_v37, 0.0  ;;  %v898_v43 = vmul.f32 0.01, %v604_v37  ;;  %vm866_vm1 = vcmp.ge.f32.partialorder %v732_v40, 0.0  ;;  %v930_v44 = vmul.f32 0.01, %v732_v40 }
 0x125   :  { %v606_v45 = vpop.f32.mrf.mxu0  ;;  %v734_v46 = vpop.f32.mrf.mxu1 }
 0x126   :  { %v2356_v47 = vsel %vm834_vm0, %v604_v37, %v898_v43  ;;  %v607_v49 = vadd.f32 %v2246_v17, %v606_v45  ;;  %v2359_v51 = vsel %vm866_vm1, %v732_v40, %v930_v44  ;;  %v735_v52 = vadd.f32 %v2246_v17, %v734_v46 }
 0x127   :  { %1026 = vst [vmem:[%s2853_s3 + $0x40] sm:$0xff] %v2356_v47  ;;  %v608_v53 = vpop.f32.mrf.mxu0  ;;  %1058 = vst [vmem:[%s2853_s3 + $0x140] sm:$0xff] %v2359_v51  ;;  %v736_v54 = vpop.f32.mrf.mxu1 }
 0x128   :  { %vm835_vm2 = vcmp.ge.f32.partialorder %v607_v49, 0.0  ;;  %v899_v55 = vmul.f32 0.01, %v607_v49  ;;  %vm867_vm3 = vcmp.ge.f32.partialorder %v735_v52, 0.0  ;;  %v931_v56 = vmul.f32 0.01, %v735_v52 }
 0x129   :  { %v611_v57 = vpop.f32.mrf.mxu0  ;;  %v739_v59 = vpop.f32.mrf.mxu1 }
 0x12a   :  { %v2370_v61 = vsel %vm835_vm2, %v607_v49, %v899_v55  ;;  %v612_v62 = vadd.f32 %v2246_v17, %v611_v57  ;;  %v2373_v63 = vsel %vm867_vm3, %v735_v52, %v931_v56  ;;  %v740_v0 = vadd.f32 %v2246_v17, %v739_v59 }
 0x12b   :  { %1027 = vst [vmem:[%s2853_s3 + $0x48] sm:$0xff] %v2370_v61  ;;  %v613_v1 = vpop.f32.mrf.mxu0  ;;  %1059 = vst [vmem:[%s2853_s3 + $0x148] sm:$0xff] %v2373_v63  ;;  %v741_v2 = vpop.f32.mrf.mxu1 }
 0x12c   :  { %vm836_vm4 = vcmp.ge.f32.partialorder %v612_v62, 0.0  ;;  %v900_v3 = vmul.f32 0.01, %v612_v62  ;;  %vm868_vm5 = vcmp.ge.f32.partialorder %v740_v0, 0.0  ;;  %v932_v5 = vmul.f32 0.01, %v740_v0 }
 0x12d   :  { %v614_v7 = vpop.f32.mrf.mxu0  ;;  %v742_v8 = vpop.f32.mrf.mxu1 }
 0x12e   :  { %v2384_v9 = vsel %vm836_vm4, %v612_v62, %v900_v3  ;;  %v615_v10 = vadd.f32 %v2246_v17, %v614_v7  ;;  %v2387_v11 = vsel %vm868_vm5, %v740_v0, %v932_v5  ;;  %v743_v12 = vadd.f32 %v2246_v17, %v742_v8 }
 0x12f   :  { %1028 = vst [vmem:[%s2853_s3 + $0x50] sm:$0xff] %v2384_v9  ;;  %v616_v13 = vpop.f32.mrf.mxu0  ;;  %1060 = vst [vmem:[%s2853_s3 + $0x150] sm:$0xff] %v2387_v11  ;;  %v744_v15 = vpop.f32.mrf.mxu1 }
 0x130   :  { %vm837_vm6 = vcmp.ge.f32.partialorder %v615_v10, 0.0  ;;  %v901_v18 = vmul.f32 0.01, %v615_v10  ;;  %vm869_vm7 = vcmp.ge.f32.partialorder %v743_v12, 0.0  ;;  %v933_v19 = vmul.f32 0.01, %v743_v12 }
 0x131   :  { %v619_v20 = vpop.f32.mrf.mxu0  ;;  %v747_v21 = vpop.f32.mrf.mxu1 }
 0x132   :  { %v2398_v22 = vsel %vm837_vm6, %v615_v10, %v901_v18  ;;  %v620_v23 = vadd.f32 %v2246_v17, %v619_v20  ;;  %v2401_v24 = vsel %vm869_vm7, %v743_v12, %v933_v19  ;;  %v748_v26 = vadd.f32 %v2246_v17, %v747_v21 }
 0x133   :  { %1029 = vst [vmem:[%s2853_s3 + $0x58] sm:$0xff] %v2398_v22  ;;  %v621_v29 = vpop.f32.mrf.mxu0  ;;  %1061 = vst [vmem:[%s2853_s3 + $0x158] sm:$0xff] %v2401_v24  ;;  %v749_v30 = vpop.f32.mrf.mxu1 }
 0x134   :  { %vm838_vm8 = vcmp.ge.f32.partialorder %v620_v23, 0.0  ;;  %v902_v31 = vmul.f32 0.01, %v620_v23  ;;  %vm870_vm9 = vcmp.ge.f32.partialorder %v748_v26, 0.0  ;;  %v934_v32 = vmul.f32 0.01, %v748_v26 }
 0x135   :  { %v622_v33 = vpop.f32.mrf.mxu0  ;;  %v750_v34 = vpop.f32.mrf.mxu1 }
 0x136   :  { %v2412_v35 = vsel %vm838_vm8, %v620_v23, %v902_v31  ;;  %v623_v37 = vadd.f32 %v2246_v17, %v622_v33  ;;  %v2415_v40 = vsel %vm870_vm9, %v748_v26, %v934_v32  ;;  %v751_v41 = vadd.f32 %v2246_v17, %v750_v34 }
 0x137   :  { %1030 = vst [vmem:[%s2853_s3 + $0x60] sm:$0xff] %v2412_v35  ;;  %v624_v42 = vpop.f32.mrf.mxu0  ;;  %1062 = vst [vmem:[%s2853_s3 + $0x160] sm:$0xff] %v2415_v40  ;;  %v752_v43 = vpop.f32.mrf.mxu1  ;;  %v1539_v32 = vmul.f32 %v2261_v38, %v2261_v38 }
 0x138   :  { %vm839_vm10 = vcmp.ge.f32.partialorder %v623_v37, 0.0  ;;  %v903_v44 = vmul.f32 0.01, %v623_v37  ;;  %vm871_vm11 = vcmp.ge.f32.partialorder %v751_v41, 0.0  ;;  %v935_v45 = vmul.f32 0.01, %v751_v41 }
 0x139   :  { %v627_v46 = vpop.f32.mrf.mxu0  ;;  %v755_v49 = vpop.f32.mrf.mxu1 }
 0x13a   :  { %v2426_v52 = vsel %vm839_vm10, %v623_v37, %v903_v44  ;;  %v628_v53 = vadd.f32 %v2246_v17, %v627_v46  ;;  %v2429_v54 = vsel %vm871_vm11, %v751_v41, %v935_v45  ;;  %v756_v55 = vadd.f32 %v2246_v17, %v755_v49 }
 0x13b   :  { %1031 = vst [vmem:[%s2853_s3 + $0x68] sm:$0xff] %v2426_v52  ;;  %v629_v56 = vpop.f32.mrf.mxu0  ;;  %1063 = vst [vmem:[%s2853_s3 + $0x168] sm:$0xff] %v2429_v54  ;;  %v757_v57 = vpop.f32.mrf.mxu1  ;;  %v1538_v44 = vmul.f32 %v2250_v28, %v2250_v28  ;;  %v1469_v45 = vadd.f32 %v2261_v38, %v2250_v28  ;;  %v1540_v46 = vmul.f32 %v2272_v48, %v2272_v48 }
 0x13c   :  { %vm840_vm12 = vcmp.ge.f32.partialorder %v628_v53, 0.0  ;;  %v904_v59 = vmul.f32 0.01, %v628_v53  ;;  %vm872_vm13 = vcmp.ge.f32.partialorder %v756_v55, 0.0  ;;  %v936_v62 = vmul.f32 0.01, %v756_v55 }
 0x13d   :  { %v630_v0 = vpop.f32.mrf.mxu0  ;;  %v758_v1 = vpop.f32.mrf.mxu1  ;;  %v1602_v28 = vadd.f32 %v1539_v32, %v1538_v44  ;;  %v1470_v38 = vadd.f32 %v1469_v45, %v2272_v48  ;;  %v1541_v57 = vmul.f32 %v2286_v58, %v2286_v58 }
 0x13e   :  { %v2440_v2 = vsel %vm840_vm12, %v628_v53, %v904_v59  ;;  %v631_v3 = vadd.f32 %v2246_v17, %v630_v0  ;;  %v2443_v5 = vsel %vm872_vm13, %v756_v55, %v936_v62  ;;  %v759_v7 = vadd.f32 %v2246_v17, %v758_v1 }
 0x13f   :  { %1032 = vst [vmem:[%s2853_s3 + $0x70] sm:$0xff] %v2440_v2  ;;  %v632_v8 = vpop.f32.mrf.mxu0  ;;  %1064 = vst [vmem:[%s2853_s3 + $0x170] sm:$0xff] %v2443_v5  ;;  %v760_v10 = vpop.f32.mrf.mxu1 }
 0x140   :  { %vm841_vm14 = vcmp.ge.f32.partialorder %v631_v3, 0.0  ;;  %v905_v12 = vmul.f32 0.01, %v631_v3  ;;  %vm873_vm15 = vcmp.ge.f32.partialorder %v759_v7, 0.0  ;;  %v937_v13 = vmul.f32 0.01, %v759_v7 }
 0x141   :  { %v635_v15 = vpop.f32.mrf.mxu0  ;;  %v763_v18 = vpop.f32.mrf.mxu1  ;;  %v1603_v8 = vadd.f32 %v1602_v28, %v1540_v46  ;;  %v1471_v10 = vadd.f32 %v1470_v38, %v2286_v58 }
 0x142   :  { %v2454_v19 = vsel %vm841_vm14, %v631_v3, %v905_v12  ;;  %v636_v20 = vadd.f32 %v2246_v17, %v635_v15  ;;  %v2457_v21 = vsel %vm873_vm15, %v759_v7, %v937_v13  ;;  %v764_v23 = vadd.f32 %v2246_v17, %v763_v18 }
 0x143   :  { %1033 = vst [vmem:[%s2853_s3 + $0x78] sm:$0xff] %v2454_v19  ;;  %v637_v26 = vpop.f32.mrf.mxu0  ;;  %1065 = vst [vmem:[%s2853_s3 + $0x178] sm:$0xff] %v2457_v21  ;;  %v765_v29 = vpop.f32.mrf.mxu1  ;;  %v1542_v12 = vmul.f32 %v2300_v4, %v2300_v4  ;;  %v1604_v58 = vadd.f32 %v1603_v8, %v1541_v57 }
 0x144   :  { %vm842_vm0 = vcmp.ge.f32.partialorder %v636_v20, 0.0  ;;  %v906_v30 = vmul.f32 0.01, %v636_v20  ;;  %vm874_vm1 = vcmp.ge.f32.partialorder %v764_v23, 0.0  ;;  %v938_v31 = vmul.f32 0.01, %v764_v23 }
 0x145   :  { %v638_v33 = vpop.f32.mrf.mxu0  ;;  %v766_v34 = vpop.f32.mrf.mxu1 }
 0x146   :  { %v2470_v37 = vsel %vm842_vm0, %v636_v20, %v906_v30  ;;  %v639_v41 = vadd.f32 %v2246_v17, %v638_v33  ;;  %v2473_v42 = vsel %vm874_vm1, %v764_v23, %v938_v31  ;;  %v767_v43 = vadd.f32 %v2246_v17, %v766_v34 }
 0x147   :  { %1034 = vst [vmem:[%s2853_s3 + $0x80] sm:$0xff] %v2470_v37  ;;  %v640_v49 = vpop.f32.mrf.mxu0  ;;  %1066 = vst [vmem:[%s2853_s3 + $0x180] sm:$0xff] %v2473_v42  ;;  %v768_v53 = vpop.f32.mrf.mxu1  ;;  %v1472_v20 = vadd.f32 %v1471_v10, %v2300_v4  ;;  %v1543_v23 = vmul.f32 %v2314_v14, %v2314_v14  ;;  %v1605_v34 = vadd.f32 %v1604_v58, %v1542_v12 }
 0x148   :  { %vm843_vm2 = vcmp.ge.f32.partialorder %v639_v41, 0.0  ;;  %v907_v55 = vmul.f32 0.01, %v639_v41  ;;  %vm875_vm3 = vcmp.ge.f32.partialorder %v767_v43, 0.0  ;;  %v939_v56 = vmul.f32 0.01, %v767_v43 }
 0x149   :  { %v643_v59 = vpop.f32.mrf.mxu0  ;;  %v771_v62 = vpop.f32.mrf.mxu1  ;;  %v1545_v53 = vmul.f32 %v2342_v36, %v2342_v36 }
 0x14a   :  { %v2493_v0 = vsel %vm843_vm2, %v639_v41, %v907_v55  ;;  %v644_v1 = vadd.f32 %v2246_v17, %v643_v59  ;;  %v2496_v3 = vsel %vm875_vm3, %v767_v43, %v939_v56  ;;  %v772_v7 = vadd.f32 %v2246_v17, %v771_v62 }
 0x14b   :  { %1035 = vst [vmem:[%s2853_s3 + $0x88] sm:$0xff] %v2493_v0  ;;  %v645_v48 = vpop.f32.mrf.mxu0  ;;  %1067 = vst [vmem:[%s2853_s3 + $0x188] sm:$0xff] %v2496_v3  ;;  %v773_v13 = vpop.f32.mrf.mxu1  ;;  %v1473_v41 = vadd.f32 %v1472_v20, %v2314_v14  ;;  %v1544_v43 = vmul.f32 %v2328_v25, %v2328_v25  ;;  %v1606_v14 = vadd.f32 %v1605_v34, %v1543_v23 }
 0x14c   :  { %vm844_vm4 = vcmp.ge.f32.partialorder %v644_v1, 0.0  ;;  %v908_v15 = vmul.f32 0.01, %v644_v1  ;;  %vm876_vm5 = vcmp.ge.f32.partialorder %v772_v7, 0.0  ;;  %v940_v18 = vmul.f32 0.01, %v772_v7 }
 0x14d   :  { %v646_v26 = vpop.f32.mrf.mxu0  ;;  %v774_v29 = vpop.f32.mrf.mxu1  ;;  %v1474_v49 = vadd.f32 %v1473_v41, %v2328_v25  ;;  %v1607_v62 = vadd.f32 %v1606_v14, %v1544_v43  ;;  %v1547_v13 = vmul.f32 %v2370_v61, %v2370_v61 }
 0x14e   :  { %v2513_v30 = vsel %vm844_vm4, %v644_v1, %v908_v15  ;;  %v647_v31 = vadd.f32 %v2246_v17, %v646_v26  ;;  %v2516_v32 = vsel %vm876_vm5, %v772_v7, %v940_v18  ;;  %v775_v33 = vadd.f32 %v2246_v17, %v774_v29 }
 0x14f   :  { %1036 = vst [vmem:[%s2853_s3 + $0x90] sm:$0xff] %v2513_v30  ;;  %v648_v4 = vpop.f32.mrf.mxu0  ;;  %1068 = vst [vmem:[%s2853_s3 + $0x190] sm:$0xff] %v2516_v32  ;;  %v776_v44 = vpop.f32.mrf.mxu1  ;;  %v1475_v1 = vadd.f32 %v1474_v49, %v2342_v36  ;;  %v1546_v7 = vmul.f32 %v2356_v47, %v2356_v47  ;;  %v1608_v36 = vadd.f32 %v1607_v62, %v1545_v53 }
 0x150   :  { %vm845_vm6 = vcmp.ge.f32.partialorder %v647_v31, 0.0  ;;  %v909_v45 = vmul.f32 0.01, %v647_v31  ;;  %vm877_vm7 = vcmp.ge.f32.partialorder %v775_v33, 0.0  ;;  %v941_v46 = vmul.f32 0.01, %v775_v33 }
 0x151   :  { %v651_v55 = vpop.f32.mrf.mxu0  ;;  %v779_v56 = vpop.f32.mrf.mxu1  ;;  %v1476_v48 = vadd.f32 %v1475_v1, %v2356_v47  ;;  %v1609_v29 = vadd.f32 %v1608_v36, %v1546_v7  ;;  %v1549_v44 = vmul.f32 %v2398_v22, %v2398_v22 }
 0x152   :  { %v2533_v28 = vsel %vm845_vm6, %v647_v31, %v909_v45  ;;  %v652_v38 = vadd.f32 %v2246_v17, %v651_v55  ;;  %v2536_v57 = vsel %vm877_vm7, %v775_v33, %v941_v46  ;;  %v780_v59 = vadd.f32 %v2246_v17, %v779_v56 }
 0x153   :  { %1037 = vst [vmem:[%s2853_s3 + $0x98] sm:$0xff] %v2533_v28  ;;  %v653_v25 = vpop.f32.mrf.mxu0  ;;  %1069 = vst [vmem:[%s2853_s3 + $0x198] sm:$0xff] %v2536_v57  ;;  %v781_v8 = vpop.f32.mrf.mxu1  ;;  %v1477_v31 = vadd.f32 %v1476_v48, %v2370_v61  ;;  %v1548_v33 = vmul.f32 %v2384_v9, %v2384_v9  ;;  %v1610_v61 = vadd.f32 %v1609_v29, %v1547_v13 }
 0x154   :  { %vm846_vm8 = vcmp.ge.f32.partialorder %v652_v38, 0.0  ;;  %v910_v10 = vmul.f32 0.01, %v652_v38  ;;  %vm878_vm9 = vcmp.ge.f32.partialorder %v780_v59, 0.0  ;;  %v942_v12 = vmul.f32 0.01, %v780_v59 }
 0x155   :  { %v654_v15 = vpop.f32.mrf.mxu0  ;;  %v782_v18 = vpop.f32.mrf.mxu1  ;;  %v1478_v4 = vadd.f32 %v1477_v31, %v2384_v9  ;;  %v1611_v56 = vadd.f32 %v1610_v61, %v1548_v33  ;;  %v1551_v8 = vmul.f32 %v2426_v52, %v2426_v52 }
 0x156   :  { %v2553_v58 = vsel %vm846_vm8, %v652_v38, %v910_v10  ;;  %v655_v20 = vadd.f32 %v2246_v17, %v654_v15  ;;  %v2556_v23 = vsel %vm878_vm9, %v780_v59, %v942_v12  ;;  %v783_v26 = vadd.f32 %v2246_v17, %v782_v18 }
 0x157   :  { %1038 = vst [vmem:[%s2853_s3 + $0xa0] sm:$0xff] %v2553_v58  ;;  %v656_v47 = vpop.f32.mrf.mxu0  ;;  %1070 = vst [vmem:[%s2853_s3 + $0x1a0] sm:$0xff] %v2556_v23  ;;  %v784_v34 = vpop.f32.mrf.mxu1  ;;  %v1479_v38 = vadd.f32 %v1478_v4, %v2398_v22  ;;  %v1550_v59 = vmul.f32 %v2412_v35, %v2412_v35  ;;  %v1612_v22 = vadd.f32 %v1611_v56, %v1549_v44 }
 0x158   :  { %vm847_vm10 = vcmp.ge.f32.partialorder %v655_v20, 0.0  ;;  %v911_v41 = vmul.f32 0.01, %v655_v20  ;;  %vm879_vm11 = vcmp.ge.f32.partialorder %v783_v26, 0.0  ;;  %v943_v43 = vmul.f32 0.01, %v783_v26 }
 0x159   :  { %v659_v45 = vpop.f32.mrf.mxu0  ;;  %v787_v46 = vpop.f32.mrf.mxu1  ;;  %v1480_v25 = vadd.f32 %v1479_v38, %v2412_v35  ;;  %v1613_v18 = vadd.f32 %v1612_v22, %v1550_v59  ;;  %v1553_v34 = vmul.f32 %v2454_v19, %v2454_v19 }
 0x15a   :  { %v2573_v14 = vsel %vm847_vm10, %v655_v20, %v911_v41  ;;  %v660_v49 = vadd.f32 %v2246_v17, %v659_v45  ;;  %v2576_v53 = vsel %vm879_vm11, %v783_v26, %v943_v43  ;;  %v788_v55 = vadd.f32 %v2246_v17, %v787_v46 }
 0x15b   :  { %1039 = vst [vmem:[%s2853_s3 + $0xa8] sm:$0xff] %v2573_v14  ;;  %v661_v9 = vpop.f32.mrf.mxu0  ;;  %1071 = vst [vmem:[%s2853_s3 + $0x1a8] sm:$0xff] %v2576_v53  ;;  %v789_v62 = vpop.f32.mrf.mxu1  ;;  %v1481_v20 = vadd.f32 %v1480_v25, %v2426_v52  ;;  %v1552_v26 = vmul.f32 %v2440_v2, %v2440_v2  ;;  %v1614_v52 = vadd.f32 %v1613_v18, %v1551_v8 }
 0x15c   :  { %vm848_vm12 = vcmp.ge.f32.partialorder %v660_v49, 0.0  ;;  %v912_v1 = vmul.f32 0.01, %v660_v49  ;;  %vm880_vm13 = vcmp.ge.f32.partialorder %v788_v55, 0.0  ;;  %v944_v7 = vmul.f32 0.01, %v788_v55 }
 0x15d   :  { %v662_v10 = vpop.f32.mrf.mxu0  ;;  %v790_v12 = vpop.f32.mrf.mxu1  ;;  %v1482_v47 = vadd.f32 %v1481_v20, %v2440_v2  ;;  %v1615_v46 = vadd.f32 %v1614_v52, %v1552_v26  ;;  %v1555_v62 = vmul.f32 %v2493_v0, %v2493_v0 }
 0x15e   :  { %v2593_v36 = vsel %vm848_vm12, %v660_v49, %v912_v1  ;;  %v663_v48 = vadd.f32 %v2246_v17, %v662_v10  ;;  %v2596_v13 = vsel %vm880_vm13, %v788_v55, %v944_v7  ;;  %v791_v15 = vadd.f32 %v2246_v17, %v790_v12 }
 0x15f   :  { %1040 = vst [vmem:[%s2853_s3 + $0xb0] sm:$0xff] %v2593_v36  ;;  %v664_v35 = vpop.f32.mrf.mxu0  ;;  %1072 = vst [vmem:[%s2853_s3 + $0x1b0] sm:$0xff] %v2596_v13  ;;  %v792_v29 = vpop.f32.mrf.mxu1  ;;  %v1483_v49 = vadd.f32 %v1482_v47, %v2454_v19  ;;  %v1554_v55 = vmul.f32 %v2470_v37, %v2470_v37  ;;  %v1616_v19 = vadd.f32 %v1615_v46, %v1553_v34 }
 0x160   :  { %vm849_vm14 = vcmp.ge.f32.partialorder %v663_v48, 0.0  ;;  %v913_v31 = vmul.f32 0.01, %v663_v48  ;;  %vm881_vm15 = vcmp.ge.f32.partialorder %v791_v15, 0.0  ;;  %v945_v33 = vmul.f32 0.01, %v791_v15 }
 0x161   :  { %v667_v41 = vpop.f32.mrf.mxu0  ;;  %v795_v43 = vpop.f32.mrf.mxu1  ;;  %v1484_v9 = vadd.f32 %v1483_v49, %v2470_v37  ;;  %v1617_v12 = vadd.f32 %v1616_v19, %v1554_v55  ;;  %v1557_v29 = vmul.f32 %v2533_v28, %v2533_v28 }
 0x162   :  { %v2613_v61 = vsel %vm849_vm14, %v663_v48, %v913_v31  ;;  %v668_v4 = vadd.f32 %v2246_v17, %v667_v41  ;;  %v2616_v44 = vsel %vm881_vm15, %v791_v15, %v945_v33  ;;  %v796_v45 = vadd.f32 %v2246_v17, %v795_v43 }
 0x163   :  { %1041 = vst [vmem:[%s2853_s3 + $0xb8] sm:$0xff] %v2613_v61  ;;  %v669_v2 = vpop.f32.mrf.mxu0  ;;  %1073 = vst [vmem:[%s2853_s3 + $0x1b8] sm:$0xff] %v2616_v44  ;;  %v797_v56 = vpop.f32.mrf.mxu1  ;;  %v1485_v48 = vadd.f32 %v1484_v9, %v2493_v0  ;;  %v1556_v15 = vmul.f32 %v2513_v30, %v2513_v30  ;;  %v1618_v0 = vadd.f32 %v1617_v12, %v1555_v62 }
 0x164   :  { %vm850_vm0 = vcmp.ge.f32.partialorder %v668_v4, 0.0  ;;  %v914_v38 = vmul.f32 0.01, %v668_v4  ;;  %vm882_vm1 = vcmp.ge.f32.partialorder %v796_v45, 0.0  ;;  %v946_v59 = vmul.f32 0.01, %v796_v45 }
 0x165   :  { %v670_v1 = vpop.f32.mrf.mxu0  ;;  %v798_v7 = vpop.f32.mrf.mxu1  ;;  %v1486_v35 = vadd.f32 %v1485_v48, %v2513_v30  ;;  %v1619_v43 = vadd.f32 %v1618_v0, %v1556_v15  ;;  %v1559_v56 = vmul.f32 %v2573_v14, %v2573_v14 }
 0x166   :  { %v2633_v22 = vsel %vm850_vm0, %v668_v4, %v914_v38  ;;  %v671_v25 = vadd.f32 %v2246_v17, %v670_v1  ;;  %v2636_v8 = vsel %vm882_vm1, %v796_v45, %v946_v59  ;;  %v799_v10 = vadd.f32 %v2246_v17, %v798_v7 }
 0x167   :  { %1042 = vst [vmem:[%s2853_s3 + $0xc0] sm:$0xff] %v2633_v22  ;;  %v672_v37 = vpop.f32.mrf.mxu0  ;;  %1074 = vst [vmem:[%s2853_s3 + $0x1c0] sm:$0xff] %v2636_v8  ;;  %v800_v18 = vpop.f32.mrf.mxu1  ;;  %v1487_v4 = vadd.f32 %v1486_v35, %v2533_v28  ;;  %v1558_v45 = vmul.f32 %v2553_v58, %v2553_v58  ;;  %v1620_v28 = vadd.f32 %v1619_v43, %v1557_v29  ;;  %vm1671_vm0 = vcmask 1040384  }
 0x168   :  { %vm851_vm2 = vcmp.ge.f32.partialorder %v671_v25, 0.0  ;;  %v915_v20 = vmul.f32 0.01, %v671_v25  ;;  %vm883_vm3 = vcmp.ge.f32.partialorder %v799_v10, 0.0  ;;  %v947_v26 = vmul.f32 0.01, %v799_v10 }
 0x169   :  { %v675_v31 = vpop.f32.mrf.mxu0  ;;  %v803_v33 = vpop.f32.mrf.mxu1  ;;  %v1488_v2 = vadd.f32 %v1487_v4, %v2553_v58  ;;  %v1621_v7 = vadd.f32 %v1620_v28, %v1558_v45  ;;  %v1561_v18 = vmul.f32 %v2613_v61, %v2613_v61 }
 0x16a   :  { %v2653_v52 = vsel %vm851_vm2, %v671_v25, %v915_v20  ;;  %v676_v47 = vadd.f32 %v2246_v17, %v675_v31  ;;  %v2656_v34 = vsel %vm883_vm3, %v799_v10, %v947_v26  ;;  %v804_v41 = vadd.f32 %v2246_v17, %v803_v33 }
 0x16b   :  { %1043 = vst [vmem:[%s2853_s3 + $0xc8] sm:$0xff] %v2653_v52  ;;  %v677_v30 = vpop.f32.mrf.mxu0  ;;  %1075 = vst [vmem:[%s2853_s3 + $0x1c8] sm:$0xff] %v2656_v34  ;;  %v805_v46 = vpop.f32.mrf.mxu1  ;;  %v1489_v25 = vadd.f32 %v1488_v2, %v2573_v14  ;;  %v1560_v10 = vmul.f32 %v2593_v36, %v2593_v36  ;;  %v1622_v37 = vadd.f32 %v1621_v7, %v1559_v56 }
 0x16c   :  { %vm852_vm4 = vcmp.ge.f32.partialorder %v676_v47, 0.0  ;;  %v916_v49 = vmul.f32 0.01, %v676_v47  ;;  %vm884_vm5 = vcmp.ge.f32.partialorder %v804_v41, 0.0  ;;  %v948_v55 = vmul.f32 0.01, %v804_v41 }
 0x16d   :  { %v678_v38 = vpop.f32.mrf.mxu0  ;;  %v806_v59 = vpop.f32.mrf.mxu1  ;;  %v1490_v14 = vadd.f32 %v1489_v25, %v2593_v36  ;;  %v1623_v33 = vadd.f32 %v1622_v37, %v1560_v10  ;;  %v1563_v46 = vmul.f32 %v2653_v52, %v2653_v52 }
 0x16e   :  { %v980_v19 = vsel %vm852_vm4, %v676_v47, %v916_v49  ;;  %v679_v9 = vadd.f32 %v2246_v17, %v678_v38  ;;  %v2674_v62 = vsel %vm884_vm5, %v804_v41, %v948_v55  ;;  %v807_v1 = vadd.f32 %v2246_v17, %v806_v59 }
 0x16f   :  { %1044 = vst [vmem:[%s2853_s3 + $0xd0] sm:$0xff] %v980_v19  ;;  %v680_v58 = vpop.f32.mrf.mxu0  ;;  %1076 = vst [vmem:[%s2853_s3 + $0x1d0] sm:$0xff] %v2674_v62  ;;  %v808_v12 = vpop.f32.mrf.mxu1  ;;  %v1491_v47 = vadd.f32 %v1490_v14, %v2613_v61  ;;  %v1562_v41 = vmul.f32 %v2633_v22, %v2633_v22  ;;  %v1624_v30 = vadd.f32 %v1623_v33, %v1561_v18 }
 0x170   :  { %vm853_vm6 = vcmp.ge.f32.partialorder %v679_v9, 0.0  ;;  %v917_v48 = vmul.f32 0.01, %v679_v9  ;;  %vm885_vm7 = vcmp.ge.f32.partialorder %v807_v1, 0.0  ;;  %v949_v15 = vmul.f32 0.01, %v807_v1 }
 0x171   :  { %v683_v20 = vpop.f32.mrf.mxu0  ;;  %v811_v26 = vpop.f32.mrf.mxu1  ;;  %v1492_v61 = vadd.f32 %v1491_v47, %v2633_v22  ;;  %v1625_v59 = vadd.f32 %v1624_v30, %v1562_v41  ;;  %v1919_v30 = vld [vmem:[%s2852_s2] ss:$0 sm:$0xff] }
 0x172   :  { %v981_v0 = vsel %vm853_vm6, %v679_v9, %v917_v48  ;;  %v684_v35 = vadd.f32 %v2246_v17, %v683_v20  ;;  %v2691_v29 = vsel %vm885_vm7, %v807_v1, %v949_v15  ;;  %v812_v31 = vadd.f32 %v2246_v17, %v811_v26 }
 0x173   :  { %1045 = vst [vmem:[%s2853_s3 + $0xd8] sm:$0xff] %v981_v0  ;;  %v685_v36 = vpop.f32.mrf.mxu0  ;;  %1077 = vst [vmem:[%s2853_s3 + $0x1d8] sm:$0xff] %v2691_v29  ;;  %v813_v43 = vpop.f32.mrf.mxu1  ;;  %v1493_v9 = vadd.f32 %v1492_v61, %v2653_v52  ;;  %v1564_v1 = vmul.f32 %v980_v19, %v980_v19  ;;  %v1626_v58 = vadd.f32 %v1625_v59, %v1563_v46 }
 0x174   :  { %vm854_vm8 = vcmp.ge.f32.partialorder %v684_v35, 0.0  ;;  %v918_v4 = vmul.f32 0.01, %v684_v35  ;;  %vm886_vm9 = vcmp.ge.f32.partialorder %v812_v31, 0.0  ;;  %v950_v45 = vmul.f32 0.01, %v812_v31 }
 0x175   :  { %v686_v49 = vpop.f32.mrf.mxu0  ;;  %v814_v55 = vpop.f32.mrf.mxu1  ;;  %v1494_v12 = vadd.f32 %v1493_v9, %v980_v19  ;;  %v1565_v48 = vmul.f32 %v981_v0, %v981_v0  ;;  %v1627_v26 = vadd.f32 %v1626_v58, %v1564_v1 }
 0x176   :  { %v982_v28 = vsel %vm854_vm8, %v684_v35, %v918_v4  ;;  %v687_v2 = vadd.f32 %v2246_v17, %v686_v49  ;;  %v2708_v56 = vsel %vm886_vm9, %v812_v31, %v950_v45  ;;  %v815_v38 = vadd.f32 %v2246_v17, %v814_v55 }
 0x177   :  { %1046 = vst [vmem:[%s2853_s3 + $0xe0] sm:$0xff] %v982_v28  ;;  %v688_v22 = vpop.f32.mrf.mxu0  ;;  %1078 = vst [vmem:[%s2853_s3 + $0x1e0] sm:$0xff] %v2708_v56  ;;  %v816_v7 = vpop.f32.mrf.mxu1  ;;  %v1495_v35 = vadd.f32 %v1494_v12, %v981_v0  ;;  %v1566_v31 = vmul.f32 %v982_v28, %v982_v28  ;;  %v1628_v36 = vadd.f32 %v1627_v26, %v1565_v48 }
 0x178   :  { %vm855_vm10 = vcmp.ge.f32.partialorder %v687_v2, 0.0  ;;  %v919_v25 = vmul.f32 0.01, %v687_v2  ;;  %vm887_vm11 = vcmp.ge.f32.partialorder %v815_v38, 0.0  ;;  %v951_v10 = vmul.f32 0.01, %v815_v38 }
 0x179   :  { %v691_v52 = vpop.f32.mrf.mxu0  ;;  %v819_v15 = vpop.f32.mrf.mxu1  ;;  %v1629_v55 = vadd.f32 %v1628_v36, %v1566_v31 }
 0x17a   :  { %v983_v37 = vsel %vm855_vm10, %v687_v2, %v919_v25  ;;  %v692_v14 = vadd.f32 %v2246_v17, %v691_v52  ;;  %v2720_v18 = vsel %vm887_vm11, %v815_v38, %v951_v10  ;;  %v820_v20 = vadd.f32 %v2246_v17, %v819_v15  ;;  %v1920_v52 = vld [vmem:[%s2853_s3 + $0x100] sm:$0xff] }
 0x17b   :  { %1047 = vst [vmem:[%s2853_s3 + $0xe8] sm:$0xff] %v983_v37  ;;  %v693_v33 = vpop.f32.mrf.mxu0  ;;  %1079 = vst [vmem:[%s2853_s3 + $0x1e8] sm:$0xff] %v2720_v18  ;;  %v821_v19 = vpop.f32.mrf.mxu1  ;;  %v1496_v17 = vadd.f32 %v1495_v35, %v982_v28  ;;  %v1567_v43 = vmul.f32 %v983_v37, %v983_v37  ;;  %v1570_v15 = vmul.f32 %v1920_v52, %v1920_v52 }
 0x17c   :  { %vm856_vm12 = vcmp.ge.f32.partialorder %v692_v14, 0.0  ;;  %v920_v47 = vmul.f32 0.01, %v692_v14  ;;  %vm888_vm13 = vcmp.ge.f32.partialorder %v820_v20, 0.0  ;;  %v952_v41 = vmul.f32 0.01, %v820_v20 }
 0x17d   :  { %v694_v0 = vpop.f32.mrf.mxu0  ;;  %v822_v4 = vpop.f32.mrf.mxu1  ;;  %v1497_v2 = vadd.f32 %v1496_v17, %v983_v37  ;;  %v1630_v22 = vadd.f32 %v1629_v55, %v1567_v43  ;;  %v1572_v33 = vmul.f32 %v2275_v50, %v2275_v50  ;;  %v1574_v43 = vmul.f32 %v2303_v6, %v2303_v6 }
 0x17e   :  { %v984_v45 = vsel %vm856_vm12, %v692_v14, %v920_v47  ;;  %v695_v61 = vadd.f32 %v1919_v30, %v694_v0  ;;  %v2733_v46 = vsel %vm888_vm13, %v820_v20, %v952_v41  ;;  %v823_v49 = vadd.f32 %v1919_v30, %v822_v4  ;;  %v1921_v20 = vld [vmem:[%s2853_s3 + $0x108] sm:$0xff] }
 0x17f   :  { %1048 = vst [vmem:[%s2853_s3 + $0xf0] sm:$0xff] %v984_v45  ;;  %v1568_v38 = vmul.f32 %v984_v45, %v984_v45  ;;  %v696_v28 = vpop.f32.mrf.mxu0  ;;  %1080 = vst [vmem:[%s2853_s3 + $0x1f0] sm:$0xff] %v2733_v46  ;;  %v824_v59 = vpop.f32.mrf.mxu1  ;;  %v1498_v7 = vadd.f32 %v1497_v2, %v984_v45  ;;  %v1571_v26 = vmul.f32 %v1921_v20, %v1921_v20 }
 0x180   :  { %vm857_vm14 = vcmp.ge.f32.partialorder %v695_v61, 0.0  ;;  %v921_v9 = vmul.f32 0.01, %v695_v61  ;;  %vm889_vm15 = vcmp.ge.f32.partialorder %v823_v49, 0.0  ;;  %v953_v1 = vmul.f32 0.01, %v823_v49 }
 0x181   :  { %v1631_v58 = vadd.f32 %v1630_v22, %v1568_v38  ;;  %v1573_v41 = vmul.f32 %v2289_v60, %v2289_v60  ;;  %v1575_v45 = vmul.f32 %v2317_v16, %v2317_v16 }
 0x182   :  { %v985_v25 = vsel %vm857_vm14, %v695_v61, %v921_v9  ;;  %v2742_v10 = vsel %vm889_vm15, %v823_v49, %v953_v1 }
 0x183   :  { %1049 = vst [vmem:[%s2853_s3 + $0xf8] sm:$0xff] %v985_v25  ;;  %v1499_v12 = vadd.f32 %v1498_v7, %v985_v25  ;;  %v1569_v48 = vmul.f32 %v985_v25, %v985_v25  ;;  %1081 = vst [vmem:[%s2853_s3 + $0x1f8] sm:$0xff] %v2742_v10  ;;  %s1945_s3 = smov [#allocation2]  }
 0x184   :  { %s1682_s9 = sshll.u32 %s1945_s3, 4  ;;  %s1683_s9 = int_to_ptr.vmem [resolvable:$true] %s1682_s9 }
 0x185   :  { %v1500_v37 = vadd.f32 %v1920_v52, %v1499_v12  ;;  %v1632_v14 = vadd.f32 %v1631_v58, %v1569_v48  ;;  %s1922_s10 = scalar_lea.vmem %s1683_s9, 32  ;;  %p1927_p1 = scmp.lt.s32.totalorder %s1683_s9, %s1683_s9 }
 0x186   :  { %p1923_p0 = scmp.ne.s32.totalorder %s1683_s9, %s1922_s10  ;;  %p1928_p2 = scmp.lt.s32.totalorder %s1922_s10, %s1922_s10 }
 0x187   :  { %v1501_v35 = vadd.f32 %v1921_v20, %v1500_v37  ;;  %v1633_v31 = vadd.f32 %v1632_v14, %v1570_v15 }
 0x188   :  { %p1929_p3 = por %p1928_p2, %p1927_p1 }
 0x189   :  { %v1502_v19 = vadd.f32 %v1501_v35, %v2275_v50  ;;  %v1634_v47 = vadd.f32 %v1633_v31, %v1571_v26  ;;  %v1576_v50 = vmul.f32 %v2331_v27, %v2331_v27 }
 0x18a   :  { %p1930_p4 = pnand %p1929_p3, %p1923_p0 }
 0x18b   :  { %v1503_v36 = vadd.f32 %v1502_v19, %v2289_v60  ;;  %v1635_v17 = vadd.f32 %v1634_v47, %v1572_v33  ;;  %v1577_v60 = vmul.f32 %v2345_v39, %v2345_v39  ;;  %v1587_v33 = vmul.f32 %v2496_v3, %v2496_v3 }
 0x18d   :  { %v1504_v0 = vadd.f32 %v1503_v36, %v2303_v6  ;;  %v1636_v4 = vadd.f32 %v1635_v17, %v1573_v41  ;;  %v1578_v6 = vmul.f32 %v2359_v51, %v2359_v51  ;;  %v1588_v41 = vmul.f32 %v2516_v32, %v2516_v32 }
 0x18e   :  { %v1589_v17 = vmul.f32 %v2536_v57, %v2536_v57 }
 0x18f   :  { %v1505_v30 = vadd.f32 %v1504_v0, %v2317_v16  ;;  %v1637_v61 = vadd.f32 %v1636_v4, %v1574_v43  ;;  %v1579_v16 = vmul.f32 %v2373_v63, %v2373_v63  ;;  %v1590_v0 = vmul.f32 %v2556_v23, %v2556_v23 }
 0x191   :  { %v1506_v49 = vadd.f32 %v1505_v30, %v2331_v27  ;;  %v1638_v55 = vadd.f32 %v1637_v61, %v1575_v45  ;;  %v1580_v27 = vmul.f32 %v2387_v11, %v2387_v11  ;;  %v1591_v45 = vmul.f32 %v2576_v53, %v2576_v53 }
 0x192   :  { %v1592_v61 = vmul.f32 %v2596_v13, %v2596_v13 }
 0x193   :  { %v1507_v2 = vadd.f32 %v1506_v49, %v2345_v39  ;;  %v1639_v38 = vadd.f32 %v1638_v55, %v1576_v50  ;;  %v1581_v39 = vmul.f32 %v2401_v24, %v2401_v24  ;;  %v1593_v49 = vmul.f32 %v2616_v44, %v2616_v44 }
 0x195   :  { %v1640_v28 = vadd.f32 %v1639_v38, %v1577_v60  ;;  %v1508_v59 = vadd.f32 %v1507_v2, %v2359_v51  ;;  %v1582_v51 = vmul.f32 %v2415_v40, %v2415_v40  ;;  %v1594_v60 = vmul.f32 %v2636_v8, %v2636_v8 }
 0x196   :  { %v1595_v38 = vmul.f32 %v2656_v34, %v2656_v34 }
 0x197   :  { %v1509_v9 = vadd.f32 %v1508_v59, %v2373_v63  ;;  %v1641_v1 = vadd.f32 %v1640_v28, %v1578_v6  ;;  %v1583_v63 = vmul.f32 %v2429_v54, %v2429_v54  ;;  %v1596_v28 = vmul.f32 %v2674_v62, %v2674_v62 }
 0x199   :  { %v1510_v22 = vadd.f32 %v1509_v9, %v2387_v11  ;;  %v1642_v7 = vadd.f32 %v1641_v1, %v1579_v16  ;;  %v1584_v11 = vmul.f32 %v2443_v5, %v2443_v5  ;;  %v1597_v16 = vmul.f32 %v2691_v29, %v2691_v29 }
 0x19a   :  { %v1598_v1 = vmul.f32 %v2708_v56, %v2708_v56 }
 0x19b   :  { %v1511_v25 = vadd.f32 %v1510_v22, %v2401_v24  ;;  %v1643_v58 = vadd.f32 %v1642_v7, %v1580_v27  ;;  %v1585_v24 = vmul.f32 %v2457_v21, %v2457_v21  ;;  %v1599_v22 = vmul.f32 %v2720_v18, %v2720_v18 }
 0x19d   :  { %v1512_v12 = vadd.f32 %v1511_v25, %v2415_v40  ;;  %v1644_v48 = vadd.f32 %v1643_v58, %v1581_v39  ;;  %v1586_v40 = vmul.f32 %v2473_v42, %v2473_v42  ;;  %v1600_v39 = vmul.f32 %v2733_v46, %v2733_v46 }
 0x19e   :  { %v1601_v58 = vmul.f32 %v2742_v10, %v2742_v10 }
 0x19f   :  { %v1513_v52 = vadd.f32 %v1512_v12, %v2429_v54  ;;  %v1645_v15 = vadd.f32 %v1644_v48, %v1582_v51 }
 0x1a1   :  { %v1514_v37 = vadd.f32 %v1513_v52, %v2443_v5  ;;  %v1646_v14 = vadd.f32 %v1645_v15, %v1583_v63 }
 0x1a3   :  { %v1515_v20 = vadd.f32 %v1514_v37, %v2457_v21  ;;  %v1647_v26 = vadd.f32 %v1646_v14, %v1584_v11 }
 0x1a5   :  { %v1516_v35 = vadd.f32 %v1515_v20, %v2473_v42  ;;  %v1648_v31 = vadd.f32 %v1647_v26, %v1585_v24 }
 0x1a7   :  { %v1517_v54 = vadd.f32 %v1516_v35, %v2496_v3  ;;  %v1649_v19 = vadd.f32 %v1648_v31, %v1586_v40 }
 0x1a9   :  { %v1650_v5 = vadd.f32 %v1649_v19, %v1587_v33  ;;  %v1518_v47 = vadd.f32 %v1517_v54, %v2516_v32 }
 0x1ab   :  { %v1651_v21 = vadd.f32 %v1650_v5, %v1588_v41  ;;  %v1519_v36 = vadd.f32 %v1518_v47, %v2536_v57 }
 0x1ad   :  { %v1652_v42 = vadd.f32 %v1651_v21, %v1589_v17  ;;  %v1520_v43 = vadd.f32 %v1519_v36, %v2556_v23 }
 0x1af   :  { %v1653_v3 = vadd.f32 %v1652_v42, %v1590_v0  ;;  %v1521_v4 = vadd.f32 %v1520_v43, %v2576_v53 }
 0x1b1   :  { %v1654_v30 = vadd.f32 %v1653_v3, %v1591_v45  ;;  %v1522_v32 = vadd.f32 %v1521_v4, %v2596_v13 }
 0x1b3   :  { %v1655_v50 = vadd.f32 %v1654_v30, %v1592_v61  ;;  %v1523_v57 = vadd.f32 %v1522_v32, %v2616_v44 }
 0x1b5   :  { %v1656_v55 = vadd.f32 %v1655_v50, %v1593_v49  ;;  %v1524_v23 = vadd.f32 %v1523_v57, %v2636_v8 }
 0x1b7   :  { %v1657_v2 = vadd.f32 %v1656_v55, %v1594_v60  ;;  %v1525_v53 = vadd.f32 %v1524_v23, %v2656_v34 }
 0x1b9   :  { %v1658_v6 = vadd.f32 %v1657_v2, %v1595_v38  ;;  %v1526_v13 = vadd.f32 %v1525_v53, %v2674_v62 }
 0x1bb   :  { %v1659_v59 = vadd.f32 %v1658_v6, %v1596_v28  ;;  %v1527_v44 = vadd.f32 %v1526_v13, %v2691_v29 }
 0x1bd   :  { %v1660_v9 = vadd.f32 %v1659_v59, %v1597_v16  ;;  %v1528_v8 = vadd.f32 %v1527_v44, %v2708_v56 }
 0x1bf   :  { %v1661_v27 = vadd.f32 %v1660_v9, %v1598_v1  ;;  %v1529_v34 = vadd.f32 %v1528_v8, %v2720_v18 }
 0x1c1   :  { %v1662_v7 = vadd.f32 %v1661_v27, %v1599_v22  ;;  %v1530_v62 = vadd.f32 %v1529_v34, %v2733_v46 }
 0x1c3   :  { %v1663_v25 = vadd.f32 %v1662_v7, %v1600_v39  ;;  %v1531_v29 = vadd.f32 %v1530_v62, %v2742_v10 }
 0x1c5   :  { %v1532_v51 = vrot.slane %v1531_v29, 4  ;;  %v1664_v56 = vadd.f32 %v1663_v25, %v1601_v58 }
 0x1c7   :  { %v1533_v12 = vadd.f32 %v1532_v51, %v1531_v29  ;;  %v1665_v48 = vrot.slane %v1664_v56, 4 }
 0x1c9   :  { %v1534_v63 = vrot.slane %v1533_v12, 2  ;;  %v1666_v52 = vadd.f32 %v1665_v48, %v1664_v56 }
 0x1cb   :  { %v1535_v15 = vadd.f32 %v1534_v63, %v1533_v12  ;;  %v1667_v18 = vrot.slane %v1666_v52, 2 }
 0x1cd   :  { %v1536_v11 = vrot.slane %v1535_v15, 1  ;;  %v1668_v37 = vadd.f32 %v1667_v18, %v1666_v52 }
 0x1cf   :  { %v1669_v14 = vrot.slane %v1668_v37, 1  ;;  %v1537_v46 = vadd.f32 %v1536_v11, %v1535_v15 }
 0x1d1   :  { %v1670_v24 = vadd.f32 %v1669_v14, %v1668_v37 }
 0x1d3   :  { %v1672_v20 = vsel %vm1671_vm0, %v1537_v46, %v1670_v24 }
 0x1d4   :  { %1673 = vst [vmem:[#allocation2] sm:$0x3] %v1672_v20 }
 0x1d5   :  { %1933 = shalt.err (!%p1930_p4)
}
 0x1d6   :  { %1685 = dma.vmem_to_hbm [thread:$0]  %s1683_s9, 32, %s2854_s4, [#allocation3]  }
 0x1d7   :  { %1942 = dma.done.wait [#allocation3], 32  }
 0x1d8   :  { %1943 = vsyncadd [#allocation3], 4294967264 }
 0x1d9   :  { %1691 = vsyncpa [#allocation3], 1 }

</bundles_post_ra>
